<compile_context>
chip_gen: v7x
topology: tpu7x:2x2x1
jax: 0.10.0
libtpu: 0.0.40
codegen_flags: <defaults>
</compile_context>

<pallas_src>
import functools
import math

import numpy as np
import jax
import jax.numpy as jnp
from jax import lax
from jax.experimental import pallas as pl
from jax.experimental.pallas import tpu as pltpu


def _up2_matrix(n):
    """(2n, n) bilinear interpolation matrix: scale_factor=2, align_corners=True."""
    out = 2 * n
    if n == 1:
        return jnp.ones((out, 1), jnp.float32)
    src = np.arange(out, dtype=np.float64) * (n - 1) / (out - 1)
    lo = np.clip(np.floor(src).astype(np.int64), 0, n - 2)
    frac = (src - lo).astype(np.float32)
    w = np.zeros((out, n), np.float32)
    w[np.arange(out), lo] = 1.0 - frac
    w[np.arange(out), lo + 1] = frac
    return jnp.asarray(w)


def _decoder_kernel(up_ref, ex_ref, w_up_ref, w1_ref, w2_ref, bias_ref, o_ref,
                    *, H2, W2, Cout, apply_bn_relu):
    """One batch element per grid step.

    up_ref  : (1, H2, W2, Cin)      bf16  bilinearly upsampled input (NHWC)
    ex_ref  : (1, H2, W2, Cex)      bf16  concat([skip, depth_up]) (NHWC)
    w_up_ref: (9, Cin,      Cout)   bf16  per-tap weights, BN scale folded
    w1_ref  : (9, Cout+Cex, Cout)   bf16  per-tap weights, BN scale folded
    w2_ref  : (9, Cout,     Cout)   bf16  (scale folded iff apply_bn_relu)
    bias_ref: (3, Cout)             f32   folded BN biases [b_up, b1, b2]
    o_ref   : (1, M, Cout)          f32   output (row-major over H2*W2 pixels)
    """
    M = H2 * W2

    def conv3x3(data, w_ref):
        # 3x3 same-padding conv = 9 accumulating K=C matmuls on shifted
        # windows of the zero-padded image.  The 1-pixel zero pad is built
        # with two concatenates (no scratch zero-fill, no persistence
        # assumptions across grid steps / cores).
        C = data.shape[-1]
        zc = jnp.zeros((H2, 1, C), jnp.bfloat16)
        zr = jnp.zeros((1, W2 + 2, C), jnp.bfloat16)
        padded = jnp.concatenate(
            [zr, jnp.concatenate([zc, data, zc], axis=1), zr], axis=0)
        acc = jnp.zeros((M, Cout), jnp.float32)
        for ky in range(3):
            for kx in range(3):
                win = padded[ky:ky + H2, kx:kx + W2, :].reshape(M, C)
                acc = acc + jnp.dot(win, w_ref[ky * 3 + kx],
                                    preferred_element_type=jnp.float32)
        return acc

    def bias_relu(acc, idx):
        # BN scale already folded into the weights; only bias + ReLU remain.
        return jnp.maximum(acc + bias_ref[idx:idx + 1, :], 0.0)

    # --- up-convolution: conv3x3(bilinear_x2(inp)) -> BN -> ReLU ------------
    a = bias_relu(conv3x3(up_ref[0], w_up_ref), 0)                # (M, Cout) f32

    # --- convolution1 on concat([a, skip, depth_up], channels) -> BN -> ReLU
    a_bf = a.astype(jnp.bfloat16).reshape(H2, W2, Cout)
    cat = jnp.concatenate([a_bf, ex_ref[0]], axis=-1)             # (H2, W2, Cout+Cex)
    b = bias_relu(conv3x3(cat, w1_ref), 1)

    # --- convolution2 (-> BN -> ReLU iff apply_bn_relu) ----------------------
    acc = conv3x3(b.astype(jnp.bfloat16).reshape(H2, W2, Cout), w2_ref)
    if apply_bn_relu:
        acc = bias_relu(acc, 2)

    o_ref[0] = acc


def decoder_block_pallas(inp, skip, depth, params, *, apply_bn_relu=True):
    """inp: (N, Cin, H, W); skip: (N, Cskip, 2H, 2W) or None;
    depth: (N, 1, H, W) or None.  Returns (N, Cout, 2H, 2W) float32."""
    w_up, w1, w2 = params["w_up"], params["w1"], params["w2"]
    N, Cin, H, W = inp.shape
    Cout = w_up.shape[0]
    H2, W2 = 2 * H, 2 * W
    M = H2 * W2
    eps = 1e-5

    # ---- glue: exact bilinear x2 upsampling (align_corners=True) -----------
    A_h, A_w = _up2_matrix(H), _up2_matrix(W)
    up_nhwc = jnp.einsum('nchw,Hh,Ww->nHWc', inp, A_h, A_w).astype(jnp.bfloat16)

    extras = []
    if skip is not None:
        extras.append(jnp.transpose(skip, (0, 2, 3, 1)))
    if depth is not None:
        extras.append(jnp.einsum('nchw,Hh,Ww->nHWc', depth, A_h, A_w))
    if not extras:
        # TODO(synk): skip=None and depth=None path (conv1 input = up-conv only).
        raise NotImplementedError("decoder_block_pallas needs skip and/or depth")
    extra = jnp.concatenate(extras, axis=-1).astype(jnp.bfloat16)  # (N,H2,W2,Cex)
    Cex = extra.shape[-1]
    assert w1.shape[1] == Cout + Cex, (w1.shape, Cout, Cex)

    # ---- glue: fold eval-mode BatchNorm; scale goes into the weights -------
    def fold(p):
        g, b, m, v = p
        s = g / jnp.sqrt(v + eps)
        return s, b - m * s

    def w_taps(w_oihw, scale=None):
        # (O, I, 3, 3) -> (9, I, O), rows ordered (ky, kx); BN scale folded in.
        o, i = w_oihw.shape[0], w_oihw.shape[1]
        w = jnp.transpose(w_oihw, (2, 3, 1, 0)).reshape(9, i, o)
        if scale is not None:
            w = w * scale[None, None, :]
        return w.astype(jnp.bfloat16)

    s0, b0 = fold(params["bn_up"])
    s1, b1 = fold(params["bn1"])
    if apply_bn_relu:
        s2, b2 = fold(params["bn2"])
    else:
        s2, b2 = None, jnp.zeros((Cout,), jnp.float32)
    w_up_k = w_taps(w_up, s0)                 # (9, Cin,       Cout)
    w1_k = w_taps(w1, s1)                     # (9, Cout+Cex,  Cout)
    w2_k = w_taps(w2, s2)                     # (9, Cout,      Cout)
    bias = jnp.stack([b0, b1, b2], axis=0).astype(jnp.float32)     # (3, Cout)

    kernel = functools.partial(_decoder_kernel, H2=H2, W2=W2, Cout=Cout,
                               apply_bn_relu=apply_bn_relu)

    out = pl.pallas_call(
        kernel,
        out_shape=jax.ShapeDtypeStruct((N, M, Cout), jnp.float32),
        grid_spec=pltpu.PrefetchScalarGridSpec(
            num_scalar_prefetch=0,
            grid=(N,),
            in_specs=[
                pl.BlockSpec((1, H2, W2, Cin), lambda n: (n, 0, 0, 0)),
                pl.BlockSpec((1, H2, W2, Cex), lambda n: (n, 0, 0, 0)),
                pl.BlockSpec((9, Cin, Cout), lambda n: (0, 0, 0)),
                pl.BlockSpec((9, Cout + Cex, Cout), lambda n: (0, 0, 0)),
                pl.BlockSpec((9, Cout, Cout), lambda n: (0, 0, 0)),
                pl.BlockSpec((3, Cout), lambda n: (0, 0)),
            ],
            out_specs=pl.BlockSpec((1, M, Cout), lambda n: (n, 0, 0)),
        ),
        compiler_params=pltpu.CompilerParams(
            dimension_semantics=("parallel",),
            vmem_limit_bytes=32 * 1024 * 1024),
    )(up_nhwc, extra, w_up_k, w1_k, w2_k, bias)

    # ---- glue: (N, M, Cout) -> NHWC (pure view) -> NCHW ---------------------
    out = out.reshape(N, H2, W2, Cout)
    return jnp.transpose(out, (0, 3, 1, 2))


def decoder_block_reference(inp, skip, depth, params, *, apply_bn_relu=True):
    """Pure-JAX f32 reference mirroring the PyTorch module (eval-mode BN)."""
    eps = 1e-5
    N, Cin, H, W = inp.shape
    A_h, A_w = _up2_matrix(H), _up2_matrix(W)
    dn = ("NCHW", "OIHW", "NCHW")

    def conv(x, w):
        return lax.conv_general_dilated(x, w, (1, 1), ((1, 1), (1, 1)),
                                        dimension_numbers=dn)

    def bn(x, p):
        g, b, m, v = p
        s = (g / jnp.sqrt(v + eps))[None, :, None, None]
        return (x - m[None, :, None, None]) * s + b[None, :, None, None]

    up = jnp.einsum('nchw,Hh,Ww->ncHW', inp, A_h, A_w)
    x = jnp.maximum(bn(conv(up, params["w_up"]), params["bn_up"]), 0.0)
    pieces = [x]
    if skip is not None:
        pieces.append(skip)
    if depth is not None:
        pieces.append(jnp.einsum('nchw,Hh,Ww->ncHW', depth, A_h, A_w))
    x = jnp.concatenate(pieces, axis=1)
    x = jnp.maximum(bn(conv(x, params["w1"]), params["bn1"]), 0.0)
    y = conv(x, params["w2"])
    if apply_bn_relu:
        y = jnp.maximum(bn(y, params["bn2"]), 0.0)
    return y


if __name__ == "__main__":
    # DecoderBlock(input_channels=64, output_channels=32, kernel_size=3,
    #              apply_bn_relu=True, plus_one=True)
    N, Cin, Cout, H, W = 2, 64, 32, 8, 8
    Cskip = Cin - Cout        # concat channels: Cout + Cskip + 1 == Cin + 1
    apply_bn_relu = True

    key = jax.random.PRNGKey(0)
    keys = jax.random.split(key, 9)

    inp = jax.random.normal(keys[0], (N, Cin, H, W), dtype=jnp.float32)
    skip = jax.random.normal(keys[1], (N, Cskip, 2 * H, 2 * W), dtype=jnp.float32)
    depth = jax.random.normal(keys[2], (N, 1, H, W), dtype=jnp.float32)

    def conv_w(k, o, i):  # PyTorch Conv2d default init: U(-1/sqrt(fan_in), +)
        b = 1.0 / math.sqrt(i * 9)
        return jax.random.uniform(k, (o, i, 3, 3), jnp.float32, -b, b)

    def bn_p(k):
        k1, k2, k3, k4 = jax.random.split(k, 4)
        gamma = jax.random.uniform(k1, (Cout,), jnp.float32, 0.8, 1.2)
        beta = 0.1 * jax.random.normal(k2, (Cout,), jnp.float32)
        mean = 0.1 * jax.random.normal(k3, (Cout,), jnp.float32)
        var = jax.random.uniform(k4, (Cout,), jnp.float32, 0.8, 1.2)
        return (gamma, beta, mean, var)

    params = {
        "w_up": conv_w(keys[3], Cout, Cin),
        "w1": conv_w(keys[4], Cout, Cin + 1),   # plus_one=True
        "w2": conv_w(keys[5], Cout, Cout),
        "bn_up": bn_p(keys[6]),
        "bn1": bn_p(keys[7]),
        "bn2": bn_p(keys[8]),
    }

    out = decoder_block_pallas(inp, skip, depth, params,
                               apply_bn_relu=apply_bn_relu)
    out = jax.block_until_ready(out)

    ref = decoder_block_reference(inp, skip, depth, params,
                                  apply_bn_relu=apply_bn_relu)
    ref = jax.block_until_ready(ref)

    assert out.shape == (N, Cout, 2 * H, 2 * W), out.shape
    max_err = float(jnp.max(jnp.abs(out - ref)))
    # bf16 MXU operands (inputs, activations, BN-folded weights) with f32
    # accumulation -> loosened tolerance.
    assert jnp.allclose(out, ref, rtol=4e-2, atol=4e-2), max_err

    print("KERNEL_OK")
</pallas_src>

<mosaic_0001>
module attributes {stable_mosaic.version = 11 : i64} {
  func.func @_decoder_kernel(%arg0: i32, %arg1: memref<1x16x16x64xbf16, #tpu.memory_space<vmem>>, %arg2: memref<1x16x16x33xbf16, #tpu.memory_space<vmem>>, %arg3: memref<9x64x32xbf16, #tpu.memory_space<vmem>>, %arg4: memref<9x65x32xbf16, #tpu.memory_space<vmem>>, %arg5: memref<9x32x32xbf16, #tpu.memory_space<vmem>>, %arg6: memref<3x32xf32, #tpu.memory_space<vmem>>, %arg7: memref<1x256x32xf32, #tpu.memory_space<vmem>>) attributes {dimension_semantics = [#tpu.dimension_semantics<parallel>], iteration_bounds = array<i64: 2>, scalar_prefetch = 0 : i64, scratch_operands = 0 : i64, tpu.core_type = #tpu.core_type<tc>, window_params = [{transform_indices = @transform_0, window_bounds = array<i64: 1, 16, 16, 64>}, {transform_indices = @transform_1, window_bounds = array<i64: 1, 16, 16, 33>}, {pipeline_mode = #tpu.pipeline_mode<synchronous>, transform_indices = @transform_2, window_bounds = array<i64: 9, 64, 32>}, {pipeline_mode = #tpu.pipeline_mode<synchronous>, transform_indices = @transform_3, window_bounds = array<i64: 9, 65, 32>}, {pipeline_mode = #tpu.pipeline_mode<synchronous>, transform_indices = @transform_4, window_bounds = array<i64: 9, 32, 32>}, {pipeline_mode = #tpu.pipeline_mode<synchronous>, transform_indices = @transform_5, window_bounds = array<i64: 3, 32>}, {transform_indices = @transform_6, window_bounds = array<i64: 1, 256, 32>}]} {
    %c0 = arith.constant 0 : index
    %c0_0 = arith.constant 0 : index
    %c0_1 = arith.constant 0 : index
    %c0_2 = arith.constant 0 : index
    %0 = vector.load %arg1[%c0, %c0_0, %c0_1, %c0_2] : memref<1x16x16x64xbf16, #tpu.memory_space<vmem>>, vector<1x16x16x64xbf16>
    %1 = vector.shape_cast %0 : vector<1x16x16x64xbf16> to vector<16x16x64xbf16>
    %cst = arith.constant 0.000000e+00 : bf16
    %2 = vector.broadcast %cst : bf16 to vector<16x1x64xbf16>
    %cst_3 = arith.constant 0.000000e+00 : bf16
    %3 = vector.broadcast %cst_3 : bf16 to vector<1x18x64xbf16>
    %4 = tpu.concatenate %2, %1, %2 in 1 : vector<16x1x64xbf16>, vector<16x16x64xbf16>, vector<16x1x64xbf16> -> vector<16x18x64xbf16>
    %5 = tpu.concatenate %3, %4, %3 in 0 : vector<1x18x64xbf16>, vector<16x18x64xbf16>, vector<1x18x64xbf16> -> vector<18x18x64xbf16>
    %cst_4 = arith.constant 0.000000e+00 : f32
    %6 = vector.broadcast %cst_4 : f32 to vector<256x32xf32>
    %7 = vector.extract_strided_slice %5 {offsets = [0, 0, 0], sizes = [16, 16, 64], strides = [1, 1, 1]} : vector<18x18x64xbf16> to vector<16x16x64xbf16>
    %8 = vector.shape_cast %7 : vector<16x16x64xbf16> to vector<256x64xbf16>
    %c0_5 = arith.constant 0 : index
    %c0_6 = arith.constant 0 : index
    %c0_7 = arith.constant 0 : index
    %9 = vector.load %arg3[%c0_5, %c0_6, %c0_7] : memref<9x64x32xbf16, #tpu.memory_space<vmem>>, vector<1x64x32xbf16>
    %10 = vector.shape_cast %9 : vector<1x64x32xbf16> to vector<64x32xbf16>
    %cst_8 = arith.constant dense<0.000000e+00> : vector<256x32xf32>
    %11 = tpu.matmul %8, %10, %cst_8 {dimension_numbers = #tpu.dot_dimension_numbers<[1], [0], [0], [1], [0, 0, 1, 1], [], []>} : vector<256x64xbf16>, vector<64x32xbf16>, vector<256x32xf32> -> vector<256x32xf32>
    %12 = arith.addf %6, %11 : vector<256x32xf32>
    %13 = vector.extract_strided_slice %5 {offsets = [0, 1, 0], sizes = [16, 16, 64], strides = [1, 1, 1]} : vector<18x18x64xbf16> to vector<16x16x64xbf16>
    %14 = vector.shape_cast %13 : vector<16x16x64xbf16> to vector<256x64xbf16>
    %c1 = arith.constant 1 : index
    %c0_9 = arith.constant 0 : index
    %c0_10 = arith.constant 0 : index
    %15 = vector.load %arg3[%c1, %c0_9, %c0_10] : memref<9x64x32xbf16, #tpu.memory_space<vmem>>, vector<1x64x32xbf16>
    %16 = vector.shape_cast %15 : vector<1x64x32xbf16> to vector<64x32xbf16>
    %cst_11 = arith.constant dense<0.000000e+00> : vector<256x32xf32>
    %17 = tpu.matmul %14, %16, %cst_11 {dimension_numbers = #tpu.dot_dimension_numbers<[1], [0], [0], [1], [0, 0, 1, 1], [], []>} : vector<256x64xbf16>, vector<64x32xbf16>, vector<256x32xf32> -> vector<256x32xf32>
    %18 = arith.addf %12, %17 : vector<256x32xf32>
    %19 = vector.extract_strided_slice %5 {offsets = [0, 2, 0], sizes = [16, 16, 64], strides = [1, 1, 1]} : vector<18x18x64xbf16> to vector<16x16x64xbf16>
    %20 = vector.shape_cast %19 : vector<16x16x64xbf16> to vector<256x64xbf16>
    %c2 = arith.constant 2 : index
    %c0_12 = arith.constant 0 : index
    %c0_13 = arith.constant 0 : index
    %21 = vector.load %arg3[%c2, %c0_12, %c0_13] : memref<9x64x32xbf16, #tpu.memory_space<vmem>>, vector<1x64x32xbf16>
    %22 = vector.shape_cast %21 : vector<1x64x32xbf16> to vector<64x32xbf16>
    %cst_14 = arith.constant dense<0.000000e+00> : vector<256x32xf32>
    %23 = tpu.matmul %20, %22, %cst_14 {dimension_numbers = #tpu.dot_dimension_numbers<[1], [0], [0], [1], [0, 0, 1, 1], [], []>} : vector<256x64xbf16>, vector<64x32xbf16>, vector<256x32xf32> -> vector<256x32xf32>
    %24 = arith.addf %18, %23 : vector<256x32xf32>
    %25 = vector.extract_strided_slice %5 {offsets = [1, 0, 0], sizes = [16, 16, 64], strides = [1, 1, 1]} : vector<18x18x64xbf16> to vector<16x16x64xbf16>
    %26 = vector.shape_cast %25 : vector<16x16x64xbf16> to vector<256x64xbf16>
    %c3 = arith.constant 3 : index
    %c0_15 = arith.constant 0 : index
    %c0_16 = arith.constant 0 : index
    %27 = vector.load %arg3[%c3, %c0_15, %c0_16] : memref<9x64x32xbf16, #tpu.memory_space<vmem>>, vector<1x64x32xbf16>
    %28 = vector.shape_cast %27 : vector<1x64x32xbf16> to vector<64x32xbf16>
    %cst_17 = arith.constant dense<0.000000e+00> : vector<256x32xf32>
    %29 = tpu.matmul %26, %28, %cst_17 {dimension_numbers = #tpu.dot_dimension_numbers<[1], [0], [0], [1], [0, 0, 1, 1], [], []>} : vector<256x64xbf16>, vector<64x32xbf16>, vector<256x32xf32> -> vector<256x32xf32>
    %30 = arith.addf %24, %29 : vector<256x32xf32>
    %31 = vector.extract_strided_slice %5 {offsets = [1, 1, 0], sizes = [16, 16, 64], strides = [1, 1, 1]} : vector<18x18x64xbf16> to vector<16x16x64xbf16>
    %32 = vector.shape_cast %31 : vector<16x16x64xbf16> to vector<256x64xbf16>
    %c4 = arith.constant 4 : index
    %c0_18 = arith.constant 0 : index
    %c0_19 = arith.constant 0 : index
    %33 = vector.load %arg3[%c4, %c0_18, %c0_19] : memref<9x64x32xbf16, #tpu.memory_space<vmem>>, vector<1x64x32xbf16>
    %34 = vector.shape_cast %33 : vector<1x64x32xbf16> to vector<64x32xbf16>
    %cst_20 = arith.constant dense<0.000000e+00> : vector<256x32xf32>
    %35 = tpu.matmul %32, %34, %cst_20 {dimension_numbers = #tpu.dot_dimension_numbers<[1], [0], [0], [1], [0, 0, 1, 1], [], []>} : vector<256x64xbf16>, vector<64x32xbf16>, vector<256x32xf32> -> vector<256x32xf32>
    %36 = arith.addf %30, %35 : vector<256x32xf32>
    %37 = vector.extract_strided_slice %5 {offsets = [1, 2, 0], sizes = [16, 16, 64], strides = [1, 1, 1]} : vector<18x18x64xbf16> to vector<16x16x64xbf16>
    %38 = vector.shape_cast %37 : vector<16x16x64xbf16> to vector<256x64xbf16>
    %c5 = arith.constant 5 : index
    %c0_21 = arith.constant 0 : index
    %c0_22 = arith.constant 0 : index
    %39 = vector.load %arg3[%c5, %c0_21, %c0_22] : memref<9x64x32xbf16, #tpu.memory_space<vmem>>, vector<1x64x32xbf16>
    %40 = vector.shape_cast %39 : vector<1x64x32xbf16> to vector<64x32xbf16>
    %cst_23 = arith.constant dense<0.000000e+00> : vector<256x32xf32>
    %41 = tpu.matmul %38, %40, %cst_23 {dimension_numbers = #tpu.dot_dimension_numbers<[1], [0], [0], [1], [0, 0, 1, 1], [], []>} : vector<256x64xbf16>, vector<64x32xbf16>, vector<256x32xf32> -> vector<256x32xf32>
    %42 = arith.addf %36, %41 : vector<256x32xf32>
    %43 = vector.extract_strided_slice %5 {offsets = [2, 0, 0], sizes = [16, 16, 64], strides = [1, 1, 1]} : vector<18x18x64xbf16> to vector<16x16x64xbf16>
    %44 = vector.shape_cast %43 : vector<16x16x64xbf16> to vector<256x64xbf16>
    %c6 = arith.constant 6 : index
    %c0_24 = arith.constant 0 : index
    %c0_25 = arith.constant 0 : index
    %45 = vector.load %arg3[%c6, %c0_24, %c0_25] : memref<9x64x32xbf16, #tpu.memory_space<vmem>>, vector<1x64x32xbf16>
    %46 = vector.shape_cast %45 : vector<1x64x32xbf16> to vector<64x32xbf16>
    %cst_26 = arith.constant dense<0.000000e+00> : vector<256x32xf32>
    %47 = tpu.matmul %44, %46, %cst_26 {dimension_numbers = #tpu.dot_dimension_numbers<[1], [0], [0], [1], [0, 0, 1, 1], [], []>} : vector<256x64xbf16>, vector<64x32xbf16>, vector<256x32xf32> -> vector<256x32xf32>
    %48 = arith.addf %42, %47 : vector<256x32xf32>
    %49 = vector.extract_strided_slice %5 {offsets = [2, 1, 0], sizes = [16, 16, 64], strides = [1, 1, 1]} : vector<18x18x64xbf16> to vector<16x16x64xbf16>
    %50 = vector.shape_cast %49 : vector<16x16x64xbf16> to vector<256x64xbf16>
    %c7 = arith.constant 7 : index
    %c0_27 = arith.constant 0 : index
    %c0_28 = arith.constant 0 : index
    %51 = vector.load %arg3[%c7, %c0_27, %c0_28] : memref<9x64x32xbf16, #tpu.memory_space<vmem>>, vector<1x64x32xbf16>
    %52 = vector.shape_cast %51 : vector<1x64x32xbf16> to vector<64x32xbf16>
    %cst_29 = arith.constant dense<0.000000e+00> : vector<256x32xf32>
    %53 = tpu.matmul %50, %52, %cst_29 {dimension_numbers = #tpu.dot_dimension_numbers<[1], [0], [0], [1], [0, 0, 1, 1], [], []>} : vector<256x64xbf16>, vector<64x32xbf16>, vector<256x32xf32> -> vector<256x32xf32>
    %54 = arith.addf %48, %53 : vector<256x32xf32>
    %55 = vector.extract_strided_slice %5 {offsets = [2, 2, 0], sizes = [16, 16, 64], strides = [1, 1, 1]} : vector<18x18x64xbf16> to vector<16x16x64xbf16>
    %56 = vector.shape_cast %55 : vector<16x16x64xbf16> to vector<256x64xbf16>
    %c8 = arith.constant 8 : index
    %c0_30 = arith.constant 0 : index
    %c0_31 = arith.constant 0 : index
    %57 = vector.load %arg3[%c8, %c0_30, %c0_31] : memref<9x64x32xbf16, #tpu.memory_space<vmem>>, vector<1x64x32xbf16>
    %58 = vector.shape_cast %57 : vector<1x64x32xbf16> to vector<64x32xbf16>
    %cst_32 = arith.constant dense<0.000000e+00> : vector<256x32xf32>
    %59 = tpu.matmul %56, %58, %cst_32 {dimension_numbers = #tpu.dot_dimension_numbers<[1], [0], [0], [1], [0, 0, 1, 1], [], []>} : vector<256x64xbf16>, vector<64x32xbf16>, vector<256x32xf32> -> vector<256x32xf32>
    %60 = arith.addf %54, %59 : vector<256x32xf32>
    %c0_33 = arith.constant 0 : index
    %c0_34 = arith.constant 0 : index
    %61 = vector.load %arg6[%c0_33, %c0_34] : memref<3x32xf32, #tpu.memory_space<vmem>>, vector<1x32xf32>
    %62 = vector.broadcast %61 : vector<1x32xf32> to vector<256x32xf32>
    %63 = arith.addf %60, %62 : vector<256x32xf32>
    %cst_35 = arith.constant 0.000000e+00 : f32
    %64 = vector.broadcast %cst_35 : f32 to vector<256x32xf32>
    %65 = arith.maximumf %63, %64 : vector<256x32xf32>
    %66 = arith.truncf %65 : vector<256x32xf32> to vector<256x32xbf16>
    %67 = vector.shape_cast %66 : vector<256x32xbf16> to vector<16x16x32xbf16>
    %c0_36 = arith.constant 0 : index
    %c0_37 = arith.constant 0 : index
    %c0_38 = arith.constant 0 : index
    %c0_39 = arith.constant 0 : index
    %68 = vector.load %arg2[%c0_36, %c0_37, %c0_38, %c0_39] : memref<1x16x16x33xbf16, #tpu.memory_space<vmem>>, vector<1x16x16x33xbf16>
    %69 = vector.shape_cast %68 : vector<1x16x16x33xbf16> to vector<16x16x33xbf16>
    %70 = tpu.concatenate %67, %69 in 2 : vector<16x16x32xbf16>, vector<16x16x33xbf16> -> vector<16x16x65xbf16>
    %cst_40 = arith.constant 0.000000e+00 : bf16
    %71 = vector.broadcast %cst_40 : bf16 to vector<16x1x65xbf16>
    %cst_41 = arith.constant 0.000000e+00 : bf16
    %72 = vector.broadcast %cst_41 : bf16 to vector<1x18x65xbf16>
    %73 = tpu.concatenate %71, %70, %71 in 1 : vector<16x1x65xbf16>, vector<16x16x65xbf16>, vector<16x1x65xbf16> -> vector<16x18x65xbf16>
    %74 = tpu.concatenate %72, %73, %72 in 0 : vector<1x18x65xbf16>, vector<16x18x65xbf16>, vector<1x18x65xbf16> -> vector<18x18x65xbf16>
    %cst_42 = arith.constant 0.000000e+00 : f32
    %75 = vector.broadcast %cst_42 : f32 to vector<256x32xf32>
    %76 = vector.extract_strided_slice %74 {offsets = [0, 0, 0], sizes = [16, 16, 65], strides = [1, 1, 1]} : vector<18x18x65xbf16> to vector<16x16x65xbf16>
    %77 = vector.shape_cast %76 : vector<16x16x65xbf16> to vector<256x65xbf16>
    %c0_43 = arith.constant 0 : index
    %c0_44 = arith.constant 0 : index
    %c0_45 = arith.constant 0 : index
    %78 = vector.load %arg4[%c0_43, %c0_44, %c0_45] : memref<9x65x32xbf16, #tpu.memory_space<vmem>>, vector<1x65x32xbf16>
    %79 = vector.shape_cast %78 : vector<1x65x32xbf16> to vector<65x32xbf16>
    %cst_46 = arith.constant dense<0.000000e+00> : vector<256x32xf32>
    %80 = tpu.matmul %77, %79, %cst_46 {dimension_numbers = #tpu.dot_dimension_numbers<[1], [0], [0], [1], [0, 0, 1, 1], [], []>} : vector<256x65xbf16>, vector<65x32xbf16>, vector<256x32xf32> -> vector<256x32xf32>
    %81 = arith.addf %75, %80 : vector<256x32xf32>
    %82 = vector.extract_strided_slice %74 {offsets = [0, 1, 0], sizes = [16, 16, 65], strides = [1, 1, 1]} : vector<18x18x65xbf16> to vector<16x16x65xbf16>
    %83 = vector.shape_cast %82 : vector<16x16x65xbf16> to vector<256x65xbf16>
    %c1_47 = arith.constant 1 : index
    %c0_48 = arith.constant 0 : index
    %c0_49 = arith.constant 0 : index
    %84 = vector.load %arg4[%c1_47, %c0_48, %c0_49] : memref<9x65x32xbf16, #tpu.memory_space<vmem>>, vector<1x65x32xbf16>
    %85 = vector.shape_cast %84 : vector<1x65x32xbf16> to vector<65x32xbf16>
    %cst_50 = arith.constant dense<0.000000e+00> : vector<256x32xf32>
    %86 = tpu.matmul %83, %85, %cst_50 {dimension_numbers = #tpu.dot_dimension_numbers<[1], [0], [0], [1], [0, 0, 1, 1], [], []>} : vector<256x65xbf16>, vector<65x32xbf16>, vector<256x32xf32> -> vector<256x32xf32>
    %87 = arith.addf %81, %86 : vector<256x32xf32>
    %88 = vector.extract_strided_slice %74 {offsets = [0, 2, 0], sizes = [16, 16, 65], strides = [1, 1, 1]} : vector<18x18x65xbf16> to vector<16x16x65xbf16>
    %89 = vector.shape_cast %88 : vector<16x16x65xbf16> to vector<256x65xbf16>
    %c2_51 = arith.constant 2 : index
    %c0_52 = arith.constant 0 : index
    %c0_53 = arith.constant 0 : index
    %90 = vector.load %arg4[%c2_51, %c0_52, %c0_53] : memref<9x65x32xbf16, #tpu.memory_space<vmem>>, vector<1x65x32xbf16>
    %91 = vector.shape_cast %90 : vector<1x65x32xbf16> to vector<65x32xbf16>
    %cst_54 = arith.constant dense<0.000000e+00> : vector<256x32xf32>
    %92 = tpu.matmul %89, %91, %cst_54 {dimension_numbers = #tpu.dot_dimension_numbers<[1], [0], [0], [1], [0, 0, 1, 1], [], []>} : vector<256x65xbf16>, vector<65x32xbf16>, vector<256x32xf32> -> vector<256x32xf32>
    %93 = arith.addf %87, %92 : vector<256x32xf32>
    %94 = vector.extract_strided_slice %74 {offsets = [1, 0, 0], sizes = [16, 16, 65], strides = [1, 1, 1]} : vector<18x18x65xbf16> to vector<16x16x65xbf16>
    %95 = vector.shape_cast %94 : vector<16x16x65xbf16> to vector<256x65xbf16>
    %c3_55 = arith.constant 3 : index
    %c0_56 = arith.constant 0 : index
    %c0_57 = arith.constant 0 : index
    %96 = vector.load %arg4[%c3_55, %c0_56, %c0_57] : memref<9x65x32xbf16, #tpu.memory_space<vmem>>, vector<1x65x32xbf16>
    %97 = vector.shape_cast %96 : vector<1x65x32xbf16> to vector<65x32xbf16>
    %cst_58 = arith.constant dense<0.000000e+00> : vector<256x32xf32>
    %98 = tpu.matmul %95, %97, %cst_58 {dimension_numbers = #tpu.dot_dimension_numbers<[1], [0], [0], [1], [0, 0, 1, 1], [], []>} : vector<256x65xbf16>, vector<65x32xbf16>, vector<256x32xf32> -> vector<256x32xf32>
    %99 = arith.addf %93, %98 : vector<256x32xf32>
    %100 = vector.extract_strided_slice %74 {offsets = [1, 1, 0], sizes = [16, 16, 65], strides = [1, 1, 1]} : vector<18x18x65xbf16> to vector<16x16x65xbf16>
    %101 = vector.shape_cast %100 : vector<16x16x65xbf16> to vector<256x65xbf16>
    %c4_59 = arith.constant 4 : index
    %c0_60 = arith.constant 0 : index
    %c0_61 = arith.constant 0 : index
    %102 = vector.load %arg4[%c4_59, %c0_60, %c0_61] : memref<9x65x32xbf16, #tpu.memory_space<vmem>>, vector<1x65x32xbf16>
    %103 = vector.shape_cast %102 : vector<1x65x32xbf16> to vector<65x32xbf16>
    %cst_62 = arith.constant dense<0.000000e+00> : vector<256x32xf32>
    %104 = tpu.matmul %101, %103, %cst_62 {dimension_numbers = #tpu.dot_dimension_numbers<[1], [0], [0], [1], [0, 0, 1, 1], [], []>} : vector<256x65xbf16>, vector<65x32xbf16>, vector<256x32xf32> -> vector<256x32xf32>
    %105 = arith.addf %99, %104 : vector<256x32xf32>
    %106 = vector.extract_strided_slice %74 {offsets = [1, 2, 0], sizes = [16, 16, 65], strides = [1, 1, 1]} : vector<18x18x65xbf16> to vector<16x16x65xbf16>
    %107 = vector.shape_cast %106 : vector<16x16x65xbf16> to vector<256x65xbf16>
    %c5_63 = arith.constant 5 : index
    %c0_64 = arith.constant 0 : index
    %c0_65 = arith.constant 0 : index
    %108 = vector.load %arg4[%c5_63, %c0_64, %c0_65] : memref<9x65x32xbf16, #tpu.memory_space<vmem>>, vector<1x65x32xbf16>
    %109 = vector.shape_cast %108 : vector<1x65x32xbf16> to vector<65x32xbf16>
    %cst_66 = arith.constant dense<0.000000e+00> : vector<256x32xf32>
    %110 = tpu.matmul %107, %109, %cst_66 {dimension_numbers = #tpu.dot_dimension_numbers<[1], [0], [0], [1], [0, 0, 1, 1], [], []>} : vector<256x65xbf16>, vector<65x32xbf16>, vector<256x32xf32> -> vector<256x32xf32>
    %111 = arith.addf %105, %110 : vector<256x32xf32>
    %112 = vector.extract_strided_slice %74 {offsets = [2, 0, 0], sizes = [16, 16, 65], strides = [1, 1, 1]} : vector<18x18x65xbf16> to vector<16x16x65xbf16>
    %113 = vector.shape_cast %112 : vector<16x16x65xbf16> to vector<256x65xbf16>
    %c6_67 = arith.constant 6 : index
    %c0_68 = arith.constant 0 : index
    %c0_69 = arith.constant 0 : index
    %114 = vector.load %arg4[%c6_67, %c0_68, %c0_69] : memref<9x65x32xbf16, #tpu.memory_space<vmem>>, vector<1x65x32xbf16>
    %115 = vector.shape_cast %114 : vector<1x65x32xbf16> to vector<65x32xbf16>
    %cst_70 = arith.constant dense<0.000000e+00> : vector<256x32xf32>
    %116 = tpu.matmul %113, %115, %cst_70 {dimension_numbers = #tpu.dot_dimension_numbers<[1], [0], [0], [1], [0, 0, 1, 1], [], []>} : vector<256x65xbf16>, vector<65x32xbf16>, vector<256x32xf32> -> vector<256x32xf32>
    %117 = arith.addf %111, %116 : vector<256x32xf32>
    %118 = vector.extract_strided_slice %74 {offsets = [2, 1, 0], sizes = [16, 16, 65], strides = [1, 1, 1]} : vector<18x18x65xbf16> to vector<16x16x65xbf16>
    %119 = vector.shape_cast %118 : vector<16x16x65xbf16> to vector<256x65xbf16>
    %c7_71 = arith.constant 7 : index
    %c0_72 = arith.constant 0 : index
    %c0_73 = arith.constant 0 : index
    %120 = vector.load %arg4[%c7_71, %c0_72, %c0_73] : memref<9x65x32xbf16, #tpu.memory_space<vmem>>, vector<1x65x32xbf16>
    %121 = vector.shape_cast %120 : vector<1x65x32xbf16> to vector<65x32xbf16>
    %cst_74 = arith.constant dense<0.000000e+00> : vector<256x32xf32>
    %122 = tpu.matmul %119, %121, %cst_74 {dimension_numbers = #tpu.dot_dimension_numbers<[1], [0], [0], [1], [0, 0, 1, 1], [], []>} : vector<256x65xbf16>, vector<65x32xbf16>, vector<256x32xf32> -> vector<256x32xf32>
    %123 = arith.addf %117, %122 : vector<256x32xf32>
    %124 = vector.extract_strided_slice %74 {offsets = [2, 2, 0], sizes = [16, 16, 65], strides = [1, 1, 1]} : vector<18x18x65xbf16> to vector<16x16x65xbf16>
    %125 = vector.shape_cast %124 : vector<16x16x65xbf16> to vector<256x65xbf16>
    %c8_75 = arith.constant 8 : index
    %c0_76 = arith.constant 0 : index
    %c0_77 = arith.constant 0 : index
    %126 = vector.load %arg4[%c8_75, %c0_76, %c0_77] : memref<9x65x32xbf16, #tpu.memory_space<vmem>>, vector<1x65x32xbf16>
    %127 = vector.shape_cast %126 : vector<1x65x32xbf16> to vector<65x32xbf16>
    %cst_78 = arith.constant dense<0.000000e+00> : vector<256x32xf32>
    %128 = tpu.matmul %125, %127, %cst_78 {dimension_numbers = #tpu.dot_dimension_numbers<[1], [0], [0], [1], [0, 0, 1, 1], [], []>} : vector<256x65xbf16>, vector<65x32xbf16>, vector<256x32xf32> -> vector<256x32xf32>
    %129 = arith.addf %123, %128 : vector<256x32xf32>
    %c1_79 = arith.constant 1 : index
    %c0_80 = arith.constant 0 : index
    %130 = vector.load %arg6[%c1_79, %c0_80] : memref<3x32xf32, #tpu.memory_space<vmem>>, vector<1x32xf32>
    %131 = vector.broadcast %130 : vector<1x32xf32> to vector<256x32xf32>
    %132 = arith.addf %129, %131 : vector<256x32xf32>
    %cst_81 = arith.constant 0.000000e+00 : f32
    %133 = vector.broadcast %cst_81 : f32 to vector<256x32xf32>
    %134 = arith.maximumf %132, %133 : vector<256x32xf32>
    %135 = arith.truncf %134 : vector<256x32xf32> to vector<256x32xbf16>
    %136 = vector.shape_cast %135 : vector<256x32xbf16> to vector<16x16x32xbf16>
    %cst_82 = arith.constant 0.000000e+00 : bf16
    %137 = vector.broadcast %cst_82 : bf16 to vector<16x1x32xbf16>
    %cst_83 = arith.constant 0.000000e+00 : bf16
    %138 = vector.broadcast %cst_83 : bf16 to vector<1x18x32xbf16>
    %139 = tpu.concatenate %137, %136, %137 in 1 : vector<16x1x32xbf16>, vector<16x16x32xbf16>, vector<16x1x32xbf16> -> vector<16x18x32xbf16>
    %140 = tpu.concatenate %138, %139, %138 in 0 : vector<1x18x32xbf16>, vector<16x18x32xbf16>, vector<1x18x32xbf16> -> vector<18x18x32xbf16>
    %cst_84 = arith.constant 0.000000e+00 : f32
    %141 = vector.broadcast %cst_84 : f32 to vector<256x32xf32>
    %142 = vector.extract_strided_slice %140 {offsets = [0, 0, 0], sizes = [16, 16, 32], strides = [1, 1, 1]} : vector<18x18x32xbf16> to vector<16x16x32xbf16>
    %143 = vector.shape_cast %142 : vector<16x16x32xbf16> to vector<256x32xbf16>
    %c0_85 = arith.constant 0 : index
    %c0_86 = arith.constant 0 : index
    %c0_87 = arith.constant 0 : index
    %144 = vector.load %arg5[%c0_85, %c0_86, %c0_87] : memref<9x32x32xbf16, #tpu.memory_space<vmem>>, vector<1x32x32xbf16>
    %145 = vector.shape_cast %144 : vector<1x32x32xbf16> to vector<32x32xbf16>
    %cst_88 = arith.constant dense<0.000000e+00> : vector<256x32xf32>
    %146 = tpu.matmul %143, %145, %cst_88 {dimension_numbers = #tpu.dot_dimension_numbers<[1], [0], [0], [1], [0, 0, 1, 1], [], []>} : vector<256x32xbf16>, vector<32x32xbf16>, vector<256x32xf32> -> vector<256x32xf32>
    %147 = arith.addf %141, %146 : vector<256x32xf32>
    %148 = vector.extract_strided_slice %140 {offsets = [0, 1, 0], sizes = [16, 16, 32], strides = [1, 1, 1]} : vector<18x18x32xbf16> to vector<16x16x32xbf16>
    %149 = vector.shape_cast %148 : vector<16x16x32xbf16> to vector<256x32xbf16>
    %c1_89 = arith.constant 1 : index
    %c0_90 = arith.constant 0 : index
    %c0_91 = arith.constant 0 : index
    %150 = vector.load %arg5[%c1_89, %c0_90, %c0_91] : memref<9x32x32xbf16, #tpu.memory_space<vmem>>, vector<1x32x32xbf16>
    %151 = vector.shape_cast %150 : vector<1x32x32xbf16> to vector<32x32xbf16>
    %cst_92 = arith.constant dense<0.000000e+00> : vector<256x32xf32>
    %152 = tpu.matmul %149, %151, %cst_92 {dimension_numbers = #tpu.dot_dimension_numbers<[1], [0], [0], [1], [0, 0, 1, 1], [], []>} : vector<256x32xbf16>, vector<32x32xbf16>, vector<256x32xf32> -> vector<256x32xf32>
    %153 = arith.addf %147, %152 : vector<256x32xf32>
    %154 = vector.extract_strided_slice %140 {offsets = [0, 2, 0], sizes = [16, 16, 32], strides = [1, 1, 1]} : vector<18x18x32xbf16> to vector<16x16x32xbf16>
    %155 = vector.shape_cast %154 : vector<16x16x32xbf16> to vector<256x32xbf16>
    %c2_93 = arith.constant 2 : index
    %c0_94 = arith.constant 0 : index
    %c0_95 = arith.constant 0 : index
    %156 = vector.load %arg5[%c2_93, %c0_94, %c0_95] : memref<9x32x32xbf16, #tpu.memory_space<vmem>>, vector<1x32x32xbf16>
    %157 = vector.shape_cast %156 : vector<1x32x32xbf16> to vector<32x32xbf16>
    %cst_96 = arith.constant dense<0.000000e+00> : vector<256x32xf32>
    %158 = tpu.matmul %155, %157, %cst_96 {dimension_numbers = #tpu.dot_dimension_numbers<[1], [0], [0], [1], [0, 0, 1, 1], [], []>} : vector<256x32xbf16>, vector<32x32xbf16>, vector<256x32xf32> -> vector<256x32xf32>
    %159 = arith.addf %153, %158 : vector<256x32xf32>
    %160 = vector.extract_strided_slice %140 {offsets = [1, 0, 0], sizes = [16, 16, 32], strides = [1, 1, 1]} : vector<18x18x32xbf16> to vector<16x16x32xbf16>
    %161 = vector.shape_cast %160 : vector<16x16x32xbf16> to vector<256x32xbf16>
    %c3_97 = arith.constant 3 : index
    %c0_98 = arith.constant 0 : index
    %c0_99 = arith.constant 0 : index
    %162 = vector.load %arg5[%c3_97, %c0_98, %c0_99] : memref<9x32x32xbf16, #tpu.memory_space<vmem>>, vector<1x32x32xbf16>
    %163 = vector.shape_cast %162 : vector<1x32x32xbf16> to vector<32x32xbf16>
    %cst_100 = arith.constant dense<0.000000e+00> : vector<256x32xf32>
    %164 = tpu.matmul %161, %163, %cst_100 {dimension_numbers = #tpu.dot_dimension_numbers<[1], [0], [0], [1], [0, 0, 1, 1], [], []>} : vector<256x32xbf16>, vector<32x32xbf16>, vector<256x32xf32> -> vector<256x32xf32>
    %165 = arith.addf %159, %164 : vector<256x32xf32>
    %166 = vector.extract_strided_slice %140 {offsets = [1, 1, 0], sizes = [16, 16, 32], strides = [1, 1, 1]} : vector<18x18x32xbf16> to vector<16x16x32xbf16>
    %167 = vector.shape_cast %166 : vector<16x16x32xbf16> to vector<256x32xbf16>
    %c4_101 = arith.constant 4 : index
    %c0_102 = arith.constant 0 : index
    %c0_103 = arith.constant 0 : index
    %168 = vector.load %arg5[%c4_101, %c0_102, %c0_103] : memref<9x32x32xbf16, #tpu.memory_space<vmem>>, vector<1x32x32xbf16>
    %169 = vector.shape_cast %168 : vector<1x32x32xbf16> to vector<32x32xbf16>
    %cst_104 = arith.constant dense<0.000000e+00> : vector<256x32xf32>
    %170 = tpu.matmul %167, %169, %cst_104 {dimension_numbers = #tpu.dot_dimension_numbers<[1], [0], [0], [1], [0, 0, 1, 1], [], []>} : vector<256x32xbf16>, vector<32x32xbf16>, vector<256x32xf32> -> vector<256x32xf32>
    %171 = arith.addf %165, %170 : vector<256x32xf32>
    %172 = vector.extract_strided_slice %140 {offsets = [1, 2, 0], sizes = [16, 16, 32], strides = [1, 1, 1]} : vector<18x18x32xbf16> to vector<16x16x32xbf16>
    %173 = vector.shape_cast %172 : vector<16x16x32xbf16> to vector<256x32xbf16>
    %c5_105 = arith.constant 5 : index
    %c0_106 = arith.constant 0 : index
    %c0_107 = arith.constant 0 : index
    %174 = vector.load %arg5[%c5_105, %c0_106, %c0_107] : memref<9x32x32xbf16, #tpu.memory_space<vmem>>, vector<1x32x32xbf16>
    %175 = vector.shape_cast %174 : vector<1x32x32xbf16> to vector<32x32xbf16>
    %cst_108 = arith.constant dense<0.000000e+00> : vector<256x32xf32>
    %176 = tpu.matmul %173, %175, %cst_108 {dimension_numbers = #tpu.dot_dimension_numbers<[1], [0], [0], [1], [0, 0, 1, 1], [], []>} : vector<256x32xbf16>, vector<32x32xbf16>, vector<256x32xf32> -> vector<256x32xf32>
    %177 = arith.addf %171, %176 : vector<256x32xf32>
    %178 = vector.extract_strided_slice %140 {offsets = [2, 0, 0], sizes = [16, 16, 32], strides = [1, 1, 1]} : vector<18x18x32xbf16> to vector<16x16x32xbf16>
    %179 = vector.shape_cast %178 : vector<16x16x32xbf16> to vector<256x32xbf16>
    %c6_109 = arith.constant 6 : index
    %c0_110 = arith.constant 0 : index
    %c0_111 = arith.constant 0 : index
    %180 = vector.load %arg5[%c6_109, %c0_110, %c0_111] : memref<9x32x32xbf16, #tpu.memory_space<vmem>>, vector<1x32x32xbf16>
    %181 = vector.shape_cast %180 : vector<1x32x32xbf16> to vector<32x32xbf16>
    %cst_112 = arith.constant dense<0.000000e+00> : vector<256x32xf32>
    %182 = tpu.matmul %179, %181, %cst_112 {dimension_numbers = #tpu.dot_dimension_numbers<[1], [0], [0], [1], [0, 0, 1, 1], [], []>} : vector<256x32xbf16>, vector<32x32xbf16>, vector<256x32xf32> -> vector<256x32xf32>
    %183 = arith.addf %177, %182 : vector<256x32xf32>
    %184 = vector.extract_strided_slice %140 {offsets = [2, 1, 0], sizes = [16, 16, 32], strides = [1, 1, 1]} : vector<18x18x32xbf16> to vector<16x16x32xbf16>
    %185 = vector.shape_cast %184 : vector<16x16x32xbf16> to vector<256x32xbf16>
    %c7_113 = arith.constant 7 : index
    %c0_114 = arith.constant 0 : index
    %c0_115 = arith.constant 0 : index
    %186 = vector.load %arg5[%c7_113, %c0_114, %c0_115] : memref<9x32x32xbf16, #tpu.memory_space<vmem>>, vector<1x32x32xbf16>
    %187 = vector.shape_cast %186 : vector<1x32x32xbf16> to vector<32x32xbf16>
    %cst_116 = arith.constant dense<0.000000e+00> : vector<256x32xf32>
    %188 = tpu.matmul %185, %187, %cst_116 {dimension_numbers = #tpu.dot_dimension_numbers<[1], [0], [0], [1], [0, 0, 1, 1], [], []>} : vector<256x32xbf16>, vector<32x32xbf16>, vector<256x32xf32> -> vector<256x32xf32>
    %189 = arith.addf %183, %188 : vector<256x32xf32>
    %190 = vector.extract_strided_slice %140 {offsets = [2, 2, 0], sizes = [16, 16, 32], strides = [1, 1, 1]} : vector<18x18x32xbf16> to vector<16x16x32xbf16>
    %191 = vector.shape_cast %190 : vector<16x16x32xbf16> to vector<256x32xbf16>
    %c8_117 = arith.constant 8 : index
    %c0_118 = arith.constant 0 : index
    %c0_119 = arith.constant 0 : index
    %192 = vector.load %arg5[%c8_117, %c0_118, %c0_119] : memref<9x32x32xbf16, #tpu.memory_space<vmem>>, vector<1x32x32xbf16>
    %193 = vector.shape_cast %192 : vector<1x32x32xbf16> to vector<32x32xbf16>
    %cst_120 = arith.constant dense<0.000000e+00> : vector<256x32xf32>
    %194 = tpu.matmul %191, %193, %cst_120 {dimension_numbers = #tpu.dot_dimension_numbers<[1], [0], [0], [1], [0, 0, 1, 1], [], []>} : vector<256x32xbf16>, vector<32x32xbf16>, vector<256x32xf32> -> vector<256x32xf32>
    %195 = arith.addf %189, %194 : vector<256x32xf32>
    %c2_121 = arith.constant 2 : index
    %c0_122 = arith.constant 0 : index
    %196 = vector.load %arg6[%c2_121, %c0_122] : memref<3x32xf32, #tpu.memory_space<vmem>>, vector<1x32xf32>
    %197 = vector.broadcast %196 : vector<1x32xf32> to vector<256x32xf32>
    %198 = arith.addf %195, %197 : vector<256x32xf32>
    %cst_123 = arith.constant 0.000000e+00 : f32
    %199 = vector.broadcast %cst_123 : f32 to vector<256x32xf32>
    %200 = arith.maximumf %198, %199 : vector<256x32xf32>
    %c0_124 = arith.constant 0 : index
    %c0_125 = arith.constant 0 : index
    %c0_126 = arith.constant 0 : index
    %201 = vector.load %arg7[%c0_124, %c0_125, %c0_126] : memref<1x256x32xf32, #tpu.memory_space<vmem>>, vector<1x256x32xf32>
    %202 = vector.shape_cast %201 : vector<1x256x32xf32> to vector<256x32xf32>
    %203 = vector.shape_cast %200 : vector<256x32xf32> to vector<1x256x32xf32>
    tpu.vector_store %arg7[%c0_124, %c0_125, %c0_126], %203 {strides = array<i32>} : memref<1x256x32xf32, #tpu.memory_space<vmem>>, vector<1x256x32xf32>,
    return
  }
  func.func @transform_0(%arg0: i32) -> (i32, i32, i32, i32) {
    %c0_i32 = arith.constant 0 : i32
    %c0_i32_0 = arith.constant 0 : i32
    %c0_i32_1 = arith.constant 0 : i32
    %c0_i32_2 = arith.constant 0 : i32
    return %arg0, %c0_i32, %c0_i32_0, %c0_i32_1 : i32, i32, i32, i32
  }
  func.func @transform_1(%arg0: i32) -> (i32, i32, i32, i32) {
    %c0_i32 = arith.constant 0 : i32
    %c0_i32_0 = arith.constant 0 : i32
    %c0_i32_1 = arith.constant 0 : i32
    %c0_i32_2 = arith.constant 0 : i32
    return %arg0, %c0_i32, %c0_i32_0, %c0_i32_1 : i32, i32, i32, i32
  }
  func.func @transform_2(%arg0: i32) -> (i32, i32, i32) {
    %c0_i32 = arith.constant 0 : i32
    %c0_i32_0 = arith.constant 0 : i32
    %c0_i32_1 = arith.constant 0 : i32
    %c0_i32_2 = arith.constant 0 : i32
    return %c0_i32, %c0_i32_0, %c0_i32_1 : i32, i32, i32
  }
  func.func @transform_3(%arg0: i32) -> (i32, i32, i32) {
    %c0_i32 = arith.constant 0 : i32
    %c0_i32_0 = arith.constant 0 : i32
    %c0_i32_1 = arith.constant 0 : i32
    %c0_i32_2 = arith.constant 0 : i32
    return %c0_i32, %c0_i32_0, %c0_i32_1 : i32, i32, i32
  }
  func.func @transform_4(%arg0: i32) -> (i32, i32, i32) {
    %c0_i32 = arith.constant 0 : i32
    %c0_i32_0 = arith.constant 0 : i32
    %c0_i32_1 = arith.constant 0 : i32
    %c0_i32_2 = arith.constant 0 : i32
    return %c0_i32, %c0_i32_0, %c0_i32_1 : i32, i32, i32
  }
  func.func @transform_5(%arg0: i32) -> (i32, i32) {
    %c0_i32 = arith.constant 0 : i32
    %c0_i32_0 = arith.constant 0 : i32
    %c0_i32_1 = arith.constant 0 : i32
    return %c0_i32, %c0_i32_0 : i32, i32
  }
  func.func @transform_6(%arg0: i32) -> (i32, i32, i32) {
    %c0_i32 = arith.constant 0 : i32
    %c0_i32_0 = arith.constant 0 : i32
    %c0_i32_1 = arith.constant 0 : i32
    return %arg0, %c0_i32, %c0_i32_0 : i32, i32, i32
  }
}

</mosaic_0001>

<bundles_post_ra>
// kernel: tpu_custom_call.1
= control target key start
LH: loop header
LB: loop body
LE: loop exit
PB: predicated region body
PF: predicated region fallthrough
CT: control target
= control target key end

     0   :  { %s11798_s21 = smov 0   ;;  %s14296_s0 = inlined_call_operand.vmem [shape: bf16[2,16,16,64], index: 0, kind: input, shape index: {}]   ;;  %s14297_s1 = inlined_call_operand.vmem [shape: bf16[2,16,16,33], index: 1, kind: input, shape index: {}]   ;;  %s14298_s2 = inlined_call_operand.vmem [shape: bf16[9,64,32], index: 2, kind: input, shape index: {}]   ;;  %s14299_s3 = inlined_call_operand.vmem [shape: bf16[9,65,32], index: 3, kind: input, shape index: {}]   ;;  %s14300_s4 = inlined_call_operand.vmem [shape: bf16[9,32,32], index: 4, kind: input, shape index: {}]   ;;  %s14301_s5 = inlined_call_operand.vmem [shape: f32[3,32], index: 5, kind: input, shape index: {}]   ;;  %s14302_s6 = inlined_call_operand.vmem [shape: f32[2,256,32], index: 6, kind: output, shape index: {}]  }
   0x1 LB: > { %s8495_s22 = sadd.s32 4294967295, %s11759_s21   ;;  %p8499_p0 = scmp.ge.s32.totalorder %s11759_s21, 1  ;;  %s11759_s21 = sphi %s11798_s21, %s16_s21  }
   0x2   : > { %p222_p1 = scmp.lt.s32.totalorder %s11759_s21, 3 }
   0x4   : > { %p223_p2 = pnand %p8499_p0, %p222_p1 }
   0x6   : > { %226 = sbr.rel (%p223_p2) target bundleno = 2060 (0x80c), region = 44 }
   0xd   : > { %v11618_v0 = vld [vmem:[%s14298_s2 + $0x20] sm:$0xff]   ;;  %v14303_v2 = vmov 0   ;;  %v11620_v4 = vld [vmem:[%s14298_s2 + $0x28] sm:$0xff]   ;;  %vm794_vm0 = vcmask 523264   ;;  %p257_p3 = scmp.lt.s32.totalorder %s8495_s22, 1  ;;  %v11622_v6 = vld [vmem:[%s14298_s2 + $0x30] sm:$0xff]  }
   0xe   : > { %v11619_v1 = vld [vmem:[%s14298_s2 + $0x80] sm:$0xff]   ;;  %v11813_v3 = vrot.slane %v14303_v2, 1  ;;  %9770 = vmatprep.subr.bf16.mxu1 %v11618_v0  ;;  %v11621_v5 = vld [vmem:[%s14298_s2 + $0x88] sm:$0xff]   ;;  %v11623_v7 = vld [vmem:[%s14298_s2 + $0x90] sm:$0xff]   ;;  %vm529_vm1 = vcmask 1040384   ;;  %vm1252_vm5 = vcmask 1046528  }
   0xf   : > { %9930 = vmatprep.subr.bf16.mxu0 %v11619_v1  ;;  %9771 = vmatpush3.bf16.msra.mxu1 %v11618_v0  ;;  %s14317_s22 = smov (!%p257_p3, %s8495_s22), 1  ;;  %v11624_v8 = vld [vmem:[%s14298_s2 + $0x38] sm:$0xff]   ;;  %vm530_vm2 = vsmask.f32 256  ;;  %v11849_v11 = vld [vmem:[%s14298_s2] sm:$0xff]   ;;  %v11634_v49 = vld [vmem:[%s14298_s2 + $0x8] sm:$0xff]  }
  0x10   : > { %9931 = vmatpush3.bf16.msra.mxu0 %v11619_v1  ;;  %9772 = vmatprep.subr.bf16.mxu1 %v11620_v4  ;;  %s9236_s11 = sshll.u32 %s14317_s22, 7  ;;  %v11625_v9 = vld [vmem:[%s14298_s2 + $0x98] sm:$0xff]   ;;  %vm11852_vm3 = vmand %vm529_vm1, %vm530_vm2  ;;  %v11859_v15 = vld [vmem:[%s14298_s2 + $0xa0] sm:$0xff]   ;;  %vm572_vm4 = vsmask.f32 7424  ;;  %s11762_s10 = smov 32  }
  0x11   : > { %9932 = vmatprep.subr.bf16.mxu0 %v11621_v5  ;;  %9778 = vmatprep.mubr.msk.bf16.mxu1 %vm794_vm0, %v11813_v3  ;;  %s11843_s18 = scalar_lea.vmem %s14296_s0, %s9236_s11  ;;  %s12424_s9 = scalar_lea.vmem %s14297_s1, %s9236_s11  ;;  %vm3184_vm6 = vcmask 261120   ;;  %vm3619_vm7 = vcmask 531456   ;;  %v11744_v14 = vld [vmem:[%s14300_s4 + $0x68] sm:$0xff]  }
  0x12   : > { %v11626_v10 = vld [vmem:[%s11843_s18] sm:$0xff]   ;;  %v11629_v17 = vld [vmem:[%s11843_s18 + $0x8] sm:$0xff]   ;;  %v11630_v18 = vld [vmem:[%s11843_s18 + $0x10] sm:$0xff]   ;;  %s9238_s26 = sshll.u32 %s14317_s22, 8 }
  0x13   : > { %9773 = vmatpush3.bf16.msra.mxu1 %v11620_v4  ;;  %v386_v12 = vshrl.u32 %v11626_v10, 16  ;;  %v389_v13 = vshll.u32 %v11626_v10, 16  ;;  %v393_v21 = vshrl.u32 %v11629_v17, 16  ;;  %v396_v22 = vshll.u32 %v11629_v17, 16  ;;  %v11632_v26 = vld [vmem:[%s11843_s18 + $0x18] sm:$0xff]   ;;  %v11633_v32 = vld [vmem:[%s11843_s18 + $0x20] sm:$0xff]  }
  0x14   : > { %9933 = vmatpush3.bf16.msra.mxu0 %v11621_v5  ;;  %9774 = vmatprep.subr.bf16.mxu1 %v11622_v6  ;;  %v400_v24 = vshrl.u32 %v11630_v18, 16  ;;  %v403_v25 = vshll.u32 %v11630_v18, 16  ;;  %v407_v35 = vshrl.u32 %v11632_v26, 16  ;;  %v410_v36 = vshll.u32 %v11632_v26, 16  ;;  %v11636_v54 = vld [vmem:[%s11843_s18 + $0x28] sm:$0xff]   ;;  %v11637_v59 = vld [vmem:[%s11843_s18 + $0x30] sm:$0xff]  }
  0x15   : > { %9934 = vmatprep.subr.bf16.mxu0 %v11623_v7  ;;  %v388_v16 = vrot.slane %v386_v12, 7  ;;  %v395_v28 = vrot.slane %v393_v21, 7  ;;  %v414_v44 = vshrl.u32 %v11633_v32, 16  ;;  %v11631_v4 = vld [vmem:[%s14298_s2 + $0xa8] sm:$0xff]   ;;  %v421_v10 = vshrl.u32 %v11636_v54, 16  ;;  %v11639_v12 = vld [vmem:[%s11843_s18 + $0x38] sm:$0xff]  }
  0x16   : > { %v402_v31 = vrot.slane %v400_v24, 7  ;;  %v409_v43 = vrot.slane %v407_v35, 7  ;;  %v424_v21 = vshll.u32 %v11636_v54, 16 }
  0x17   : > { %9775 = vmatpush3.bf16.msra.mxu1 %v11622_v6  ;;  %v391_v19 = vor.u32 %v389_v13, %v388_v16  ;;  %v11865_v20 = vsel %vm11852_vm3, %v388_v16, 0  ;;  %v398_v33 = vor.u32 %v396_v22, %v395_v28  ;;  %v11880_v34 = vsel %vm11852_vm3, %v395_v28, 0 }
  0x18   : > { %9935 = vmatpush3.bf16.msra.mxu0 %v11623_v7  ;;  %9776 = vmatprep.subr.bf16.mxu1 %v11624_v8  ;;  %v589_v23 = vshll.u32 %v11865_v20, 16  ;;  %v601_v39 = vshll.u32 %v11880_v34, 16  ;;  %v405_v40 = vor.u32 %v403_v25, %v402_v31  ;;  %v11889_v42 = vsel %vm11852_vm3, %v402_v31, 0 }
  0x19   : > { %9936 = vmatprep.subr.bf16.mxu0 %v11625_v9  ;;  %v11872_v27 = vsel %vm11852_vm3, 0, %v391_v19  ;;  %v11885_v41 = vsel %vm11852_vm3, 0, %v398_v33  ;;  %v613_v51 = vshll.u32 %v11889_v42, 16  ;;  %v412_v52 = vor.u32 %v410_v36, %v409_v43 }
  0x1a   : > { %v582_v29 = vshrl.u32 %v11872_v27, 16  ;;  %v584_v30 = vshll.u32 %v11872_v27, 16  ;;  %v591_v38 = vrot.slane %v589_v23, 1  ;;  %v594_v46 = vshrl.u32 %v11885_v41, 16  ;;  %v11641_v23 = vld [vmem:[%s14298_s2 + $0x10] sm:$0xff]  }
  0x1b   : > { %9777 = vmatpush3.bf16.msra.mxu1 %v11624_v8  ;;  %v596_v47 = vshll.u32 %v11885_v41, 16  ;;  %v603_v48 = vrot.slane %v601_v39, 1  ;;  %v11898_v50 = vsel %vm11852_vm3, 0, %v405_v40  ;;  %v11903_v53 = vsel %vm11852_vm3, %v409_v43, 0  ;;  %v11638_v43 = vld [vmem:[%s14298_s2 + $0xb8] sm:$0xff]  }
  0x1c   : > { %9937 = vmatpush3.bf16.msra.mxu0 %v11625_v9  ;;  %9810 = vmatprep.subr.bf16.mxu1 %v11849_v11  ;;  %v586_v37 = vrot.slane %v584_v30, 1  ;;  %v606_v57 = vshrl.u32 %v11898_v50, 16  ;;  %v608_v58 = vshll.u32 %v11898_v50, 16  ;;  %v615_v60 = vrot.slane %v613_v51, 1 }
  0x1d   : > { %9970 = vmatprep.subr.bf16.mxu0 %v11859_v15  ;;  %v598_v56 = vrot.slane %v596_v47, 1  ;;  %v11914_v61 = vsel %vm11852_vm3, 0, %v412_v52  ;;  %v625_v62 = vshll.u32 %v11903_v53, 16  ;;  %v416_v63 = vrot.slane %v414_v44, 7 }
  0x1e   : > { %v587_v45 = vor.u32 %v586_v37, %v582_v29  ;;  %v610_v1 = vrot.slane %v608_v58, 1  ;;  %v618_v5 = vshrl.u32 %v11914_v61, 16  ;;  %v620_v6 = vshll.u32 %v11914_v61, 16 }
  0x1f   : > { %v599_v0 = vor.u32 %v598_v56, %v594_v46  ;;  %v627_v7 = vrot.slane %v625_v62, 1  ;;  %v417_v8 = vshll.u32 %v11633_v32, 16  ;;  %v11925_v9 = vsel %vm11852_vm3, %v416_v63, 0 }
  0x20   : > { %v592_v55 = vsel %vm572_vm4, %v587_v45, %v591_v38  ;;  %v611_v13 = vor.u32 %v610_v1, %v606_v57  ;;  %v622_v16 = vrot.slane %v620_v6, 1  ;;  %v637_v17 = vshll.u32 %v11925_v9, 16  ;;  %v11640_v45 = vld [vmem:[%s11843_s18 + $0x40] sm:$0xff]  }
  0x21   : > { %9779 = vmatmul.mubr.msk.bf16.vlgmr.msra.gmra.mrb[0].mxu1 %vm794_vm0, %v592_v55  ;;  %9938 = vmatprep.mubr.msk.bf16.mxu0 %vm794_vm0, %v592_v55  ;;  %v419_v18 = vor.u32 %v417_v8, %v416_v63  ;;  %v423_v19 = vrot.slane %v421_v10, 7  ;;  %v428_v22 = vshrl.u32 %v11637_v59, 16  ;;  %v431_v28 = vshll.u32 %v11637_v59, 16  ;;  %v11996_v1 = vld [vmem:[%s14298_s2 + $0xc0] sm:$0xff]  }
  0x22   : > { %9811 = vmatpush3.bf16.msra.mxu1 %v11849_v11  ;;  %v11929_v11 = vsel %vm572_vm4, %v599_v0, %v603_v48  ;;  %v11941_v24 = vsel %vm572_vm4, %v611_v13, %v615_v60  ;;  %v623_v25 = vor.u32 %v622_v16, %v618_v5  ;;  %v639_v26 = vrot.slane %v637_v17, 1  ;;  %v11643_v13 = vld [vmem:[%s11843_s18 + $0x48] sm:$0xff]  }
  0x23   : > { %9812 = vmatprep.subr.bf16.mxu1 %v11634_v49  ;;  %9939 = vmatmul.mubr.msk.bf16.vlgmr.msra.gmra.mrb[0].mxu0 %vm794_vm0, %v11929_v11  ;;  %v11947_v29 = vsel %vm11852_vm3, 0, %v419_v18  ;;  %v426_v30 = vor.u32 %v424_v21, %v423_v19  ;;  %v11954_v31 = vsel %vm11852_vm3, %v423_v19, 0  ;;  %v430_v32 = vrot.slane %v428_v22, 7 }
  0x24   : > { %9782 = vmatprep.mubr.msk.bf16.mxu1 %vm794_vm0, %v11929_v11  ;;  %9971 = vmatpush3.bf16.msra.mxu0 %v11859_v15  ;;  %v11635_v15 = vld [vmem:[%s14298_s2 + $0xb0] sm:$0xff]   ;;  %v11957_v33 = vsel %vm572_vm4, %v623_v25, %v627_v7  ;;  %v630_v35 = vshrl.u32 %v11947_v29, 16  ;;  %v632_v36 = vshll.u32 %v11947_v29, 16  ;;  %v649_v37 = vshll.u32 %v11954_v31, 16  ;;  %v11647_v25 = vld [vmem:[%s14298_s2 + $0x18] sm:$0xff]  }
  0x25   : > { %9942 = vmatprep.mubr.msk.bf16.mxu0 %vm794_vm0, %v11941_v24  ;;  %9972 = vmatprep.subr.bf16.mxu0 %v11631_v4  ;;  %v11966_v38 = vsel %vm11852_vm3, 0, %v426_v30  ;;  %v433_v39 = vor.u32 %v431_v28, %v430_v32  ;;  %v11970_v40 = vsel %vm11852_vm3, %v430_v32, 0  ;;  %v435_v44 = vshrl.u32 %v11639_v12, 16 }
  0x26   : > { %9813 = vmatpush3.bf16.msra.mxu1 %v11634_v49  ;;  %v634_v46 = vrot.slane %v632_v36, 1  ;;  %v642_v47 = vshrl.u32 %v11966_v38, 16  ;;  %v644_v48 = vshll.u32 %v11966_v38, 16  ;;  %v651_v49 = vrot.slane %v649_v37, 1 }
  0x27   : > { %9814 = vmatprep.subr.bf16.mxu1 %v11641_v23  ;;  %v11982_v51 = vsel %vm11852_vm3, 0, %v433_v39  ;;  %v661_v52 = vshll.u32 %v11970_v40, 16  ;;  %v437_v54 = vrot.slane %v435_v44, 7  ;;  %v438_v55 = vshll.u32 %v11639_v12, 16 }
  0x28   : > { %9973 = vmatpush3.bf16.msra.mxu0 %v11631_v4  ;;  %v635_v56 = vor.u32 %v634_v46, %v630_v35  ;;  %v646_v57 = vrot.slane %v644_v48, 1  ;;  %v654_v58 = vshrl.u32 %v11982_v51, 16  ;;  %v656_v59 = vshll.u32 %v11982_v51, 16  ;;  %v11645_v46 = vld [vmem:[%s11843_s18 + $0x58] sm:$0xff]  }
  0x29   : > { %9783 = vmatmul.mubr.msk.bf16.gmra.mrb[4].mxu1 %vm794_vm0, %v11941_v24  ;;  %9974 = vmatprep.subr.bf16.mxu0 %v11635_v15  ;;  %v663_v60 = vrot.slane %v661_v52, 1  ;;  %v440_v62 = vor.u32 %v438_v55, %v437_v54  ;;  %v11991_v63 = vsel %vm11852_vm3, %v437_v54, 0  ;;  %v442_v0 = vshrl.u32 %v11640_v45, 16  ;;  %v12045_v52 = vld [vmem:[%s14298_s2 + $0x40] sm:$0xff]  }
  0x2a   : > { %9786 = vmatprep.mubr.msk.bf16.mxu1 %vm794_vm0, %v11957_v33  ;;  %9815 = vmatpush3.bf16.msra.mxu1 %v11641_v23  ;;  %v11999_v4 = vsel %vm572_vm4, %v635_v56, %v639_v26  ;;  %v647_v5 = vor.u32 %v646_v57, %v642_v47  ;;  %v658_v6 = vrot.slane %v656_v59, 1  ;;  %v673_v7 = vshll.u32 %v11991_v63, 16  ;;  %v11644_v23 = vld [vmem:[%s11843_s18 + $0x50] sm:$0xff]  }
  0x2b   : > { %9943 = vmatmul.mubr.msk.bf16.gmra.mrb[4].mxu0 %vm794_vm0, %v11957_v33  ;;  %v12006_v8 = vsel %vm11852_vm3, 0, %v440_v62  ;;  %v444_v10 = vrot.slane %v442_v0, 7  ;;  %v445_v12 = vshll.u32 %v11640_v45, 16  ;;  %v1255_v30 = vrot.slane %v11872_v27, 1  ;;  %9816 = vmatprep.subr.bf16.mxu1 %v11647_v25 }
  0x2c   : > { %9975 = vmatpush3.bf16.msra.mxu0 %v11635_v15  ;;  %9946 = vmatprep.mubr.msk.bf16.mxu0 %vm794_vm0, %v11999_v4  ;;  %v659_v16 = vor.u32 %v658_v6, %v654_v58  ;;  %v666_v17 = vshrl.u32 %v12006_v8, 16  ;;  %v668_v18 = vshll.u32 %v12006_v8, 16  ;;  %v12014_v19 = vsel %vm572_vm4, %v647_v5, %v651_v49 }
  0x2d   : > { %9976 = vmatprep.subr.bf16.mxu0 %v11638_v43  ;;  %v447_v21 = vor.u32 %v445_v12, %v444_v10  ;;  %v12018_v22 = vsel %vm11852_vm3, %v444_v10, 0  ;;  %v675_v15 = vrot.slane %v673_v7, 1  ;;  %v449_v36 = vshrl.u32 %v11643_v13, 16  ;;  %v11646_v12 = vld [vmem:[%s11843_s18 + $0x60] sm:$0xff]  }
  0x2e   : > { %v12027_v26 = vsel %vm572_vm4, %v659_v16, %v663_v60  ;;  %v670_v28 = vrot.slane %v668_v18, 1  ;;  %v685_v35 = vshll.u32 %v12018_v22, 16  ;;  %v452_v37 = vshll.u32 %v11643_v13, 16  ;;  %9817 = vmatpush3.bf16.msra.mxu1 %v11647_v25 }
  0x2f   : > { %v12032_v32 = vsel %vm11852_vm3, 0, %v447_v21  ;;  %v451_v47 = vrot.slane %v449_v36, 7  ;;  %v456_v48 = vshrl.u32 %v11644_v23, 16  ;;  %v459_v49 = vshll.u32 %v11644_v23, 16  ;;  %9850 = vmatprep.subr.bf16.mxu1 %v12045_v52 }
  0x30   : > { %9977 = vmatpush3.bf16.msra.mxu0 %v11638_v43  ;;  %v671_v39 = vor.u32 %v670_v28, %v666_v17  ;;  %v678_v44 = vshrl.u32 %v12032_v32, 16  ;;  %v680_v45 = vshll.u32 %v12032_v32, 16  ;;  %v1256_v43 = vrot.slane %v11865_v20, 1 }
  0x31   : > { %9787 = vmatmul.mubr.msk.bf16.gmra.mrb[8].mxu1 %vm794_vm0, %v11999_v4  ;;  %10010 = vmatprep.subr.bf16.mxu0 %v11996_v1  ;;  %v1259_v54 = vrot.slane %v11880_v34, 1  ;;  %v1258_v20 = vrot.slane %v11885_v41, 1  ;;  %v687_v56 = vrot.slane %v685_v35, 1  ;;  %v454_v57 = vor.u32 %v452_v37, %v451_v47 }
  0x32   : > { %9790 = vmatprep.mubr.msk.bf16.mxu1 %vm794_vm0, %v12014_v19  ;;  %v682_v55 = vrot.slane %v680_v45, 1  ;;  %v12053_v58 = vsel %vm11852_vm3, %v451_v47, 0  ;;  %v458_v59 = vrot.slane %v456_v48, 7  ;;  %v12057_v60 = vsel %vm572_vm4, %v671_v39, %v675_v15 }
  0x33   : > { %9947 = vmatmul.mubr.msk.bf16.gmra.mrb[8].mxu0 %vm794_vm0, %v12014_v19  ;;  %v12060_v62 = vsel %vm1252_vm5, %v1255_v30, %v1256_v43  ;;  %v697_v0 = vshll.u32 %v12053_v58, 16  ;;  %v12067_v5 = vsel %vm11852_vm3, 0, %v454_v57  ;;  %v463_v10 = vshrl.u32 %v11645_v46, 16 }
  0x34   : > { %9950 = vmatprep.mubr.msk.bf16.mxu0 %vm794_vm0, %v12027_v26  ;;  %v683_v34 = vor.u32 %v682_v55, %v678_v44  ;;  %v461_v6 = vor.u32 %v459_v49, %v458_v59  ;;  %v12071_v7 = vsel %vm11852_vm3, %v458_v59, 0  ;;  %v690_v13 = vshrl.u32 %v12067_v5, 16  ;;  %v11649_v49 = vld [vmem:[%s11843_s18 + $0x68] sm:$0xff]  }
  0x35   : > { %v692_v16 = vshll.u32 %v12067_v5, 16  ;;  %v1261_v17 = vrot.slane %v11898_v50, 1  ;;  %v1262_v18 = vrot.slane %v11889_v42, 1  ;;  %v699_v23 = vrot.slane %v697_v0, 1 }
  0x36   : > { %v12081_v21 = vsel %vm572_vm4, %v683_v34, %v687_v56  ;;  %v12085_v25 = vsel %vm11852_vm3, 0, %v461_v6  ;;  %v465_v28 = vrot.slane %v463_v10, 7  ;;  %v709_v35 = vshll.u32 %v12071_v7, 16  ;;  %v11650_v10 = vld [vmem:[%s11843_s18 + $0x70] sm:$0xff]  }
  0x37   : > { %v694_v15 = vrot.slane %v692_v16, 1  ;;  %v704_v30 = vshll.u32 %v12085_v25, 16  ;;  %v466_v36 = vshll.u32 %v11645_v46, 16  ;;  %v702_v42 = vshrl.u32 %v12085_v25, 16 }
  0x38   : > { %v12094_v37 = vsel %vm11852_vm3, %v465_v28, 0  ;;  %v470_v39 = vshrl.u32 %v11646_v12, 16  ;;  %v473_v44 = vshll.u32 %v11646_v12, 16  ;;  %v12101_v55 = vsel %vm1252_vm5, %v1258_v20, %v1259_v54  ;;  %v11648_v20 = vld [vmem:[%s14298_s2 + $0xc8] sm:$0xff]  }
  0x39   : > { %9791 = vmatmul.mubr.msk.bf16.gmra.mrb[12].mxu1 %vm794_vm0, %v12027_v26  ;;  %v695_v45 = vor.u32 %v694_v15, %v690_v13  ;;  %v706_v43 = vrot.slane %v704_v30, 1  ;;  %v468_v47 = vor.u32 %v466_v36, %v465_v28  ;;  %v721_v46 = vshll.u32 %v12094_v37, 16 }
  0x3a   : > { %9794 = vmatprep.mubr.msk.bf16.mxu1 %vm794_vm0, %v12057_v60  ;;  %v472_v48 = vrot.slane %v470_v39, 7  ;;  %v1264_v57 = vrot.slane %v11914_v61, 1  ;;  %v711_v13 = vrot.slane %v709_v35, 1  ;;  %v12126_v16 = vsel %vm1252_vm5, %v1261_v17, %v1262_v18 }
  0x3b   : > { %9951 = vmatmul.mubr.msk.bf16.gmra.mrb[12].mxu0 %vm794_vm0, %v12057_v60  ;;  %v12104_v56 = vsel %vm572_vm4, %v695_v45, %v699_v23  ;;  %v12109_v59 = vsel %vm11852_vm3, 0, %v468_v47  ;;  %v707_v12 = vor.u32 %v706_v43, %v702_v42  ;;  %v723_v23 = vrot.slane %v721_v46, 1 }
  0x3c   : > { %9978 = vmatprep.mubr.msk.bf16.mxu0 %vm794_vm0, %v12060_v62  ;;  %v714_v34 = vshrl.u32 %v12109_v59, 16  ;;  %v716_v0 = vshll.u32 %v12109_v59, 16  ;;  %v475_v6 = vor.u32 %v473_v44, %v472_v48  ;;  %v12117_v54 = vsel %vm11852_vm3, %v472_v48, 0 }
  0x3d   : > { %v477_v30 = vshrl.u32 %v11649_v49, 16  ;;  %v480_v36 = vshll.u32 %v11649_v49, 16  ;;  %v1265_v39 = vrot.slane %v11903_v53, 1  ;;  %v733_v42 = vshll.u32 %v12117_v54, 16  ;;  %v11652_v49 = vld [vmem:[%s14298_s2 + $0xd0] sm:$0xff]  }
  0x3e   : > { %v718_v28 = vrot.slane %v716_v0, 1  ;;  %v12130_v15 = vsel %vm11852_vm3, 0, %v475_v6  ;;  %v484_v35 = vshrl.u32 %v11650_v10, 16  ;;  %v487_v43 = vshll.u32 %v11650_v10, 16 }
  0x3f   : > { %v726_v44 = vshrl.u32 %v12130_v15, 16  ;;  %v728_v45 = vshll.u32 %v12130_v15, 16  ;;  %v479_v18 = vrot.slane %v477_v30, 7  ;;  %v12140_v47 = vsel %vm572_vm4, %v707_v12, %v711_v13 }
  0x40   : > { %v719_v17 = vor.u32 %v718_v28, %v714_v34  ;;  %v1267_v46 = vrot.slane %v11947_v29, 1  ;;  %v1268_v48 = vrot.slane %v11925_v9, 1  ;;  %v486_v6 = vrot.slane %v484_v35, 7 }
  0x41   : > { %9795 = vmatmul.mubr.msk.bf16.gmra.mrb[16].mxu1 %vm794_vm0, %v12081_v21  ;;  %v730_v53 = vrot.slane %v728_v45, 1  ;;  %v12154_v0 = vsel %vm11852_vm3, %v479_v18, 0  ;;  %v735_v12 = vrot.slane %v733_v42, 1  ;;  %v12164_v28 = vsel %vm1252_vm5, %v1264_v57, %v1265_v39  ;;  %v11654_v57 = vld [vmem:[%s14298_s2 + $0xd8] sm:$0xff]  }
  0x42   : > { %9798 = vmatprep.mubr.msk.bf16.mxu1 %vm794_vm0, %v12104_v56  ;;  %v12150_v34 = vsel %vm572_vm4, %v719_v17, %v723_v23  ;;  %v745_v10 = vshll.u32 %v12154_v0, 16  ;;  %v489_v23 = vor.u32 %v487_v43, %v486_v6  ;;  %v12171_v45 = vsel %vm1252_vm5, %v1267_v46, %v1268_v48 }
  0x43   : > { %9979 = vmatmul.mubr.msk.bf16.vlgmr.msra.gmra.mrb[0].mxu0 %vm794_vm0, %v12101_v55  ;;  %v731_v9 = vor.u32 %v730_v53, %v726_v44  ;;  %v12179_v42 = vsel %vm11852_vm3, %v486_v6, 0  ;;  %v1270_v35 = vrot.slane %v11966_v38, 1  ;;  %v1271_v43 = vrot.slane %v11954_v31, 1 }
  0x44   : > { %10011 = vmatpush3.bf16.msra.mxu0 %v11996_v1  ;;  %9982 = vmatprep.mubr.msk.bf16.mxu0 %vm794_vm0, %v12126_v16  ;;  %v482_v1 = vor.u32 %v480_v36, %v479_v18  ;;  %v12175_v44 = vsel %vm11852_vm3, 0, %v489_v23  ;;  %v747_v39 = vrot.slane %v745_v10, 1  ;;  %v1273_v6 = vrot.slane %v11982_v51, 1 }
  0x45   : > { %10012 = vmatprep.subr.bf16.mxu0 %v11648_v20  ;;  %v752_v17 = vshll.u32 %v12175_v44, 16  ;;  %v12188_v18 = vsel %vm572_vm4, %v731_v9, %v735_v12  ;;  %v750_v46 = vshrl.u32 %v12175_v44, 16  ;;  %v1274_v10 = vrot.slane %v11970_v40, 1  ;;  %v12201_v9 = vld [vmem:[%s14298_s2 + $0xe0] sm:$0xff]  }
  0x46   : > { %v12161_v13 = vsel %vm11852_vm3, 0, %v482_v1  ;;  %v757_v1 = vshll.u32 %v12179_v42, 16  ;;  %v1276_v12 = vrot.slane %v12006_v8, 1  ;;  %v1277_v40 = vrot.slane %v11991_v63, 1  ;;  %v11655_v63 = vld [vmem:[%s11843_s18 + $0x78] sm:$0xff]   ;;  %s14196_s18 = scalar_lea.vmem %s14302_s6, %s9238_s26 }
  0x47   : > { %v738_v30 = vshrl.u32 %v12161_v13, 16  ;;  %v740_v36 = vshll.u32 %v12161_v13, 16  ;;  %v754_v48 = vrot.slane %v752_v17, 1  ;;  %v1279_v23 = vrot.slane %v12032_v32, 1 }
  0x48   : > { %10013 = vmatpush3.bf16.msra.mxu0 %v11648_v20  ;;  %v12219_v17 = vsel %vm1252_vm5, %v1273_v6, %v1274_v10  ;;  %v1297_v6 = vrot.slane %v12175_v44, 1  ;;  %v1298_v10 = vrot.slane %v12179_v42, 1  ;;  %v494_v42 = vshll.u32 %v11655_v63, 16 }
  0x49   : > { %9799 = vmatmul.mubr.msk.bf16.gmra.mrb[20].mxu1 %vm794_vm0, %v12140_v47  ;;  %10014 = vmatprep.subr.bf16.mxu0 %v11652_v49  ;;  %v742_v20 = vrot.slane %v740_v36, 1  ;;  %v759_v36 = vrot.slane %v757_v1, 1  ;;  %v1294_v1 = vrot.slane %v12161_v13, 1 }
  0x4a   : > { %9802 = vmatprep.mubr.msk.bf16.mxu1 %vm794_vm0, %v12150_v34 }
  0x4b   : > { %9983 = vmatmul.mubr.msk.bf16.gmra.mrb[4].mxu0 %vm794_vm0, %v12164_v28  ;;  %v743_v53 = vor.u32 %v742_v20, %v738_v30  ;;  %v755_v30 = vor.u32 %v754_v48, %v750_v46  ;;  %v1280_v20 = vrot.slane %v12018_v22, 1  ;;  %v1288_v46 = vrot.slane %v12109_v59, 1 }
  0x4c   : > { %9986 = vmatprep.mubr.msk.bf16.mxu0 %vm794_vm0, %v12171_v45  ;;  %10015 = vmatpush3.bf16.msra.mxu0 %v11652_v49  ;;  %v12210_v49 = vsel %vm1252_vm5, %v1270_v35, %v1271_v43  ;;  %v1283_v35 = vrot.slane %v12053_v58, 1  ;;  %v1285_v43 = vrot.slane %v12085_v25, 1  ;;  %v1289_v58 = vrot.slane %v12094_v37, 1 }
  0x4d   : > { %10016 = vmatprep.subr.bf16.mxu0 %v11654_v57  ;;  %v12204_v31 = vsel %vm572_vm4, %v743_v53, %v747_v39  ;;  %v1282_v39 = vrot.slane %v12067_v5, 1  ;;  %v1286_v53 = vrot.slane %v12071_v7, 1  ;;  %v12230_v22 = vsel %vm572_vm4, %v755_v30, %v759_v36 }
  0x4e   : > { %v1292_v48 = vrot.slane %v12117_v54, 1  ;;  %v1295_v7 = vrot.slane %v12154_v0, 1  ;;  %v491_v30 = vshrl.u32 %v11655_v63, 16  ;;  %v12244_v36 = vsel %vm1252_vm5, %v1276_v12, %v1277_v40  ;;  %v11653_v54 = vld [vmem:[%s14298_s2 + $0x48] sm:$0xff]   ;;  %v11656_v12 = vld [vmem:[%s14298_s2 + $0x50] sm:$0xff]  }
  0x4f   : > { %v12248_v37 = vsel %vm1252_vm5, %v1279_v23, %v1280_v20  ;;  %v12264_v40 = vsel %vm1252_vm5, %v1282_v39, %v1283_v35  ;;  %v12269_v23 = vsel %vm1252_vm5, %v1285_v43, %v1286_v53  ;;  %v11658_v20 = vld [vmem:[%s14298_s2 + $0x58] sm:$0xff]   ;;  %v12284_v39 = vsel %vm1252_vm5, %v1288_v46, %v1289_v58 }
  0x50   : > { %10017 = vmatpush3.bf16.msra.mxu0 %v11654_v57  ;;  %v1291_v57 = vrot.slane %v12130_v15, 1  ;;  %v493_v0 = vrot.slane %v491_v30, 7  ;;  %v12306_v46 = vsel %vm1252_vm5, %v1294_v1, %v1295_v7  ;;  %v12311_v58 = vsel %vm1252_vm5, %v1297_v6, %v1298_v10  ;;  %v11659_v7 = vld [vmem:[%s14298_s2 + $0xe8] sm:$0xff]   ;;  %v11661_v6 = vld [vmem:[%s14298_s2 + $0xf0] sm:$0xff]   ;;  %v11665_v10 = vld [vmem:[%s14298_s2 + $0x100] sm:$0xff]  }
  0x51   : > { %9803 = vmatmul.mubr.msk.bf16.gmra.mrb[24].mxu1 %vm794_vm0, %v12188_v18  ;;  %10050 = vmatprep.subr.bf16.mxu0 %v12201_v9  ;;  %v11662_v30 = vld [vmem:[%s14298_s2 + $0x68] sm:$0xff]  }
  0x52   : > { %9806 = vmatprep.mubr.msk.bf16.mxu1 %vm794_vm0, %v12204_v31  ;;  %v12289_v35 = vsel %vm1252_vm5, %v1291_v57, %v1292_v48  ;;  %v496_v43 = vor.u32 %v494_v42, %v493_v0  ;;  %v12303_v53 = vsel %vm11852_vm3, %v493_v0, 0  ;;  %v12403_v0 = vld [vmem:[%s14298_s2 + $0x80] sm:$0xff]  }
  0x53   : > { %9987 = vmatmul.mubr.msk.bf16.gmra.mrb[8].mxu0 %vm794_vm0, %v12210_v49  ;;  %v2046_v48 = vrot.slane %v12303_v53, 1  ;;  %v11670_v42 = vld [vmem:[%s12424_s9] sm:$0xff]  }
  0x54   : > { %9990 = vmatprep.mubr.msk.bf16.mxu0 %vm794_vm0, %v12219_v17  ;;  %v12299_v63 = vsel %vm11852_vm3, 0, %v496_v43  ;;  %3152 = vrot.lane.b32.xlu0 %v11670_v42, %s11762_s10  ;;  %v11675_v43 = vld [vmem:[%s12424_s9 + $0x20] sm:$0xff]   ;;  %v11752_v42 = vld [vmem:[%s14298_s2 + $0x98] sm:$0xff]  }
  0x55   : > { %v2045_v57 = vrot.slane %v12299_v63, 1 }
  0x57   : > { %v12322_v1 = vsel %vm1252_vm5, %v2045_v57, %v2046_v48  ;;  %v11668_v57 = vld [vmem:[%s14298_s2 + $0x110] sm:$0xff]   ;;  %v11674_v48 = vld [vmem:[%s12424_s9 + $0x28] sm:$0xff]  }
  0x59   : > { %9807 = vmatmul.mubr.msk.bf16.gmra.mrb[28].mxu1 %vm794_vm0, %v12230_v22 }
  0x5a   : > { %9818 = vmatprep.mubr.bf16.mxu1 %v14303_v2 }
  0x5b   : > { %9991 = vmatmul.mubr.msk.bf16.gmra.mrb[12].mxu0 %vm794_vm0, %v12244_v36 }
  0x5c   : > { %9994 = vmatprep.mubr.msk.bf16.mxu0 %vm794_vm0, %v12248_v37 }
  0x61   : > { %9819 = vmatmul.mubr.msk.bf16.vlgmr.msra.gmra.mrb[0].mxu1 %vm794_vm0, %v11872_v27 }
  0x62   : > { %9851 = vmatpush3.bf16.msra.mxu1 %v12045_v52  ;;  %9822 = vmatprep.mubr.msk.bf16.mxu1 %vm794_vm0, %v11885_v41  ;;  %v11660_v52 = vld [vmem:[%s14298_s2 + $0x60] sm:$0xff]  }
  0x63   : > { %9852 = vmatprep.subr.bf16.mxu1 %v11653_v54  ;;  %9995 = vmatmul.mubr.msk.bf16.gmra.mrb[16].mxu0 %vm794_vm0, %v12264_v40 }
  0x64   : > { %9998 = vmatprep.mubr.msk.bf16.mxu0 %vm794_vm0, %v12269_v23 }
  0x66   : > { %9853 = vmatpush3.bf16.msra.mxu1 %v11653_v54  ;;  %v11664_v54 = vld [vmem:[%s14298_s2 + $0x70] sm:$0xff]  }
  0x67   : > { %9854 = vmatprep.subr.bf16.mxu1 %v11656_v12 }
  0x69   : > { %9823 = vmatmul.mubr.msk.bf16.gmra.mrb[4].mxu1 %vm794_vm0, %v11898_v50 }
  0x6a   : > { %9826 = vmatprep.mubr.msk.bf16.mxu1 %vm794_vm0, %v11914_v61  ;;  %9855 = vmatpush3.bf16.msra.mxu1 %v11656_v12  ;;  %v11671_v12 = vld [vmem:[%s12424_s9 + $0x8] sm:$0xff]  }
  0x6b   : > { %9856 = vmatprep.subr.bf16.mxu1 %v11658_v20  ;;  %9999 = vmatmul.mubr.msk.bf16.gmra.mrb[20].mxu0 %vm794_vm0, %v12284_v39 }
  0x6c   : > { %10002 = vmatprep.mubr.msk.bf16.mxu0 %vm794_vm0, %v12289_v35  ;;  %3154 = vrot.lane.b32.xlu0 %v11671_v12, %s11762_s10 }
  0x6e   : > { %9857 = vmatpush3.bf16.msra.mxu1 %v11658_v20  ;;  %v11672_v20 = vld [vmem:[%s12424_s9 + $0x10] sm:$0xff]  }
  0x6f   : > { %9890 = vmatprep.subr.bf16.mxu1 %v11660_v52  ;;  %3156 = vrot.lane.b32.xlu1 %v11672_v20, %s11762_s10 }
  0x70   : > { %3160 = vrot.lane.b32.xlu0 %v11675_v43, %s11762_s10 }
  0x71   : > { %9827 = vmatmul.mubr.msk.bf16.gmra.mrb[8].mxu1 %vm794_vm0, %v11947_v29 }
  0x72   : > { %9830 = vmatprep.mubr.msk.bf16.mxu1 %vm794_vm0, %v11966_v38 }
  0x73   : > { %10003 = vmatmul.mubr.msk.bf16.gmra.mrb[24].mxu0 %vm794_vm0, %v12306_v46 }
  0x74   : > { %10006 = vmatprep.mubr.msk.bf16.mxu0 %vm794_vm0, %v12311_v58 }
  0x79   : > { %9831 = vmatmul.mubr.msk.bf16.gmra.mrb[12].mxu1 %vm794_vm0, %v11982_v51 }
  0x7a   : > { %9834 = vmatprep.mubr.msk.bf16.mxu1 %vm794_vm0, %v12006_v8 }
  0x7b   : > { %10007 = vmatmul.mubr.msk.bf16.gmra.mrb[28].mxu0 %vm794_vm0, %v12322_v1 }
  0x7c   : > { %10018 = vmatprep.mubr.msk.bf16.mxu0 %vm794_vm0, %v11885_v41 }
  0x81   : > { %9835 = vmatmul.mubr.msk.bf16.gmra.mrb[16].mxu1 %vm794_vm0, %v12032_v32 }
  0x82   : > { %9838 = vmatprep.mubr.msk.bf16.mxu1 %vm794_vm0, %v12067_v5 }
  0x83   : > { %10019 = vmatmul.mubr.msk.bf16.vlgmr.msra.gmra.mrb[0].mxu0 %vm794_vm0, %v11898_v50 }
  0x84   : > { %10051 = vmatpush3.bf16.msra.mxu0 %v12201_v9  ;;  %10022 = vmatprep.mubr.msk.bf16.mxu0 %vm794_vm0, %v11914_v61  ;;  %v11663_v9 = vld [vmem:[%s14298_s2 + $0xf8] sm:$0xff]  }
  0x85   : > { %10052 = vmatprep.subr.bf16.mxu0 %v11659_v7 }
  0x88   : > { %10053 = vmatpush3.bf16.msra.mxu0 %v11659_v7  ;;  %v11677_v7 = vld [vmem:[%s12424_s9 + $0x30] sm:$0xff]  }
  0x89   : > { %9839 = vmatmul.mubr.msk.bf16.gmra.mrb[20].mxu1 %vm794_vm0, %v12085_v25  ;;  %10054 = vmatprep.subr.bf16.mxu0 %v11661_v6 }
  0x8a   : > { %9842 = vmatprep.mubr.msk.bf16.mxu1 %vm794_vm0, %v12109_v59  ;;  %3164 = vrot.lane.b32.xlu0 %v11677_v7, %s11762_s10 }
  0x8b   : > { %10023 = vmatmul.mubr.msk.bf16.gmra.mrb[4].mxu0 %vm794_vm0, %v11947_v29 }
  0x8c   : > { %10026 = vmatprep.mubr.msk.bf16.mxu0 %vm794_vm0, %v11966_v38  ;;  %10055 = vmatpush3.bf16.msra.mxu0 %v11661_v6  ;;  %v11679_v6 = vld [vmem:[%s12424_s9 + $0x40] sm:$0xff]  }
  0x8d   : > { %10056 = vmatprep.subr.bf16.mxu0 %v11663_v9 }
  0x8e   : > { %3168 = vrot.lane.b32.xlu0 %v11679_v6, %s11762_s10 }
  0x90   : > { %10057 = vmatpush3.bf16.msra.mxu0 %v11663_v9  ;;  %v11678_v9 = vld [vmem:[%s12424_s9 + $0x48] sm:$0xff]  }
  0x91   : > { %9843 = vmatmul.mubr.msk.bf16.gmra.mrb[24].mxu1 %vm794_vm0, %v12130_v15  ;;  %10090 = vmatprep.subr.bf16.mxu0 %v11665_v10 }
  0x92   : > { %9846 = vmatprep.mubr.msk.bf16.mxu1 %vm794_vm0, %v12161_v13 }
  0x93   : > { %10027 = vmatmul.mubr.msk.bf16.gmra.mrb[8].mxu0 %vm794_vm0, %v11982_v51 }
  0x94   : > { %10030 = vmatprep.mubr.msk.bf16.mxu0 %vm794_vm0, %v12006_v8 }
  0x99   : > { %9847 = vmatmul.mubr.msk.bf16.gmra.mrb[28].mxu1 %vm794_vm0, %v12175_v44 }
  0x9a   : > { %9858 = vmatprep.mubr.msk.bf16.mxu1 %vm794_vm0, %v11813_v3 }
  0x9b   : > { %10031 = vmatmul.mubr.msk.bf16.gmra.mrb[12].mxu0 %vm794_vm0, %v12032_v32 }
  0x9c   : > { %10034 = vmatprep.mubr.msk.bf16.mxu0 %vm794_vm0, %v12067_v5 }
  0xa1   : > { %9859 = vmatmul.mubr.msk.bf16.vlgmr.msra.gmra.mrb[0].mxu1 %vm794_vm0, %v12060_v62  ;;  %v11666_v62 = vld [vmem:[%s14298_s2 + $0x78] sm:$0xff]  }
  0xa2   : > { %9891 = vmatpush3.bf16.msra.mxu1 %v11660_v52  ;;  %9862 = vmatprep.mubr.msk.bf16.mxu1 %vm794_vm0, %v12101_v55  ;;  %v11667_v52 = vld [vmem:[%s14298_s2 + $0x108] sm:$0xff]  }
  0xa3   : > { %9892 = vmatprep.subr.bf16.mxu1 %v11662_v30  ;;  %10035 = vmatmul.mubr.msk.bf16.gmra.mrb[16].mxu0 %vm794_vm0, %v12085_v25 }
  0xa4   : > { %10038 = vmatprep.mubr.msk.bf16.mxu0 %vm794_vm0, %v12109_v59 }
  0xa6   : > { %9893 = vmatpush3.bf16.msra.mxu1 %v11662_v30  ;;  %v11682_v30 = vld [vmem:[%s12424_s9 + $0x68] sm:$0xff]  }
  0xa7   : > { %9894 = vmatprep.subr.bf16.mxu1 %v11664_v54 }
  0xa9   : > { %9863 = vmatmul.mubr.msk.bf16.gmra.mrb[4].mxu1 %vm794_vm0, %v12126_v16 }
  0xaa   : > { %9866 = vmatprep.mubr.msk.bf16.mxu1 %vm794_vm0, %v12164_v28  ;;  %9895 = vmatpush3.bf16.msra.mxu1 %v11664_v54  ;;  %v11685_v54 = vld [vmem:[%s12424_s9 + $0x70] sm:$0xff]  }
  0xab   : > { %9896 = vmatprep.subr.bf16.mxu1 %v11666_v62  ;;  %10039 = vmatmul.mubr.msk.bf16.gmra.mrb[20].mxu0 %vm794_vm0, %v12130_v15 }
  0xac   : > { %10042 = vmatprep.mubr.msk.bf16.mxu0 %vm794_vm0, %v12161_v13 }
  0xae   : > { %9897 = vmatpush3.bf16.msra.mxu1 %v11666_v62  ;;  %v11684_v62 = vld [vmem:[%s12424_s9 + $0x78] sm:$0xff]  }
  0xaf   : > { %10832 = vmatprep.subr.bf16.mxu1 %v12403_v0 }
  0xb1   : > { %9867 = vmatmul.mubr.msk.bf16.gmra.mrb[8].mxu1 %vm794_vm0, %v12171_v45 }
  0xb2   : > { %9870 = vmatprep.mubr.msk.bf16.mxu1 %vm794_vm0, %v12210_v49 }
  0xb3   : > { %10043 = vmatmul.mubr.msk.bf16.gmra.mrb[24].mxu0 %vm794_vm0, %v12175_v44 }
  0xb4   : > { %10046 = vmatprep.mubr.msk.bf16.mxu0 %vm794_vm0, %v12299_v63 }
  0xb9   : > { %9871 = vmatmul.mubr.msk.bf16.gmra.mrb[12].mxu1 %vm794_vm0, %v12219_v17 }
  0xba   : > { %9874 = vmatprep.mubr.msk.bf16.mxu1 %vm794_vm0, %v12244_v36 }
  0xbb   : > { %10047 = vmatmul.mubr.bf16.gmra.mrb[28].mxu0 %v14303_v2 }
  0xbc   : > { %10058 = vmatprep.mubr.msk.bf16.mxu0 %vm794_vm0, %v11929_v11  ;;  %v11673_v11 = vld [vmem:[%s12424_s9 + $0x18] sm:$0xff]  }
  0xbd   : > { %3158 = vrot.lane.b32.xlu1 %v11673_v11, %s11762_s10 }
  0xc1   : > { %9875 = vmatmul.mubr.msk.bf16.gmra.mrb[16].mxu1 %vm794_vm0, %v12248_v37  ;;  %3162 = vrot.lane.b32.xlu1 %v11674_v48, %s11762_s10 }
  0xc2   : > { %9878 = vmatprep.mubr.msk.bf16.mxu1 %vm794_vm0, %v12264_v40 }
  0xc3   : > { %10059 = vmatmul.mubr.msk.bf16.vlgmr.msra.gmra.mrb[0].mxu0 %vm794_vm0, %v11941_v24  ;;  %v11669_v24 = vld [vmem:[%s14298_s2 + $0x118] sm:$0xff]  }
  0xc4   : > { %10091 = vmatpush3.bf16.msra.mxu0 %v11665_v10  ;;  %10062 = vmatprep.mubr.msk.bf16.mxu0 %vm794_vm0, %v11957_v33  ;;  %v11676_v33 = vld [vmem:[%s12424_s9 + $0x38] sm:$0xff]   ;;  %v11681_v10 = vld [vmem:[%s12424_s9 + $0x50] sm:$0xff]  }
  0xc5   : > { %10092 = vmatprep.subr.bf16.mxu0 %v11667_v52  ;;  %3166 = vrot.lane.b32.xlu1 %v11676_v33, %s11762_s10 }
  0xc6   : > { %3172 = vrot.lane.b32.xlu0 %v11681_v10, %s11762_s10  ;;  %v3153_v11 = vpop.permute.xlu0 %3152 }
  0xc8   : > { %10093 = vmatpush3.bf16.msra.mxu0 %v11667_v52 }
  0xc9   : > { %9879 = vmatmul.mubr.msk.bf16.gmra.mrb[20].mxu1 %vm794_vm0, %v12269_v23  ;;  %10094 = vmatprep.subr.bf16.mxu0 %v11668_v57 }
  0xca   : > { %9882 = vmatprep.mubr.msk.bf16.mxu1 %vm794_vm0, %v12284_v39  ;;  %3170 = vrot.lane.b32.xlu1 %v11678_v9, %s11762_s10 }
  0xcb   : > { %10063 = vmatmul.mubr.msk.bf16.gmra.mrb[4].mxu0 %vm794_vm0, %v11999_v4  ;;  %v11680_v4 = vld [vmem:[%s12424_s9 + $0x58] sm:$0xff]  }
  0xcc   : > { %10066 = vmatprep.mubr.msk.bf16.mxu0 %vm794_vm0, %v12014_v19  ;;  %10095 = vmatpush3.bf16.msra.mxu0 %v11668_v57  ;;  %v11683_v19 = vld [vmem:[%s12424_s9 + $0x60] sm:$0xff]  }
  0xcd   : > { %10096 = vmatprep.subr.bf16.mxu0 %v11669_v24  ;;  %3176 = vrot.lane.b32.xlu0 %v11683_v19, %s11762_s10 }
  0xce   : > { %3174 = vrot.lane.b32.xlu1 %v11680_v4, %s11762_s10 }
  0xd0   : > { %10097 = vmatpush3.bf16.msra.mxu0 %v11669_v24 }
  0xd1   : > { %9883 = vmatmul.mubr.msk.bf16.gmra.mrb[24].mxu1 %vm794_vm0, %v12289_v35  ;;  %3180 = vrot.lane.b32.xlu0 %v11685_v54, %s11762_s10 }
  0xd2   : > { %9886 = vmatprep.mubr.msk.bf16.mxu1 %vm794_vm0, %v12306_v46  ;;  %3178 = vrot.lane.b32.xlu1 %v11682_v30, %s11762_s10 }
  0xd3   : > { %10067 = vmatmul.mubr.msk.bf16.gmra.mrb[8].mxu0 %vm794_vm0, %v12027_v26  ;;  %v1805_v26 = vshll.u32 %v12299_v63, 16 }
  0xd4   : > { %10070 = vmatprep.mubr.msk.bf16.mxu0 %vm794_vm0, %v12057_v60 }
  0xd5   : > { %v1807_v60 = vrot.slane %v1805_v26, 1 }
  0xd6   : > { %3182 = vrot.lane.b32.xlu1 %v11684_v62, %s11762_s10 }
  0xd9   : > { %9887 = vmatmul.mubr.msk.bf16.gmra.mrb[28].mxu1 %vm794_vm0, %v12311_v58 }
  0xda   : > { %9898 = vmatprep.mubr.msk.bf16.mxu1 %vm794_vm0, %v11872_v27  ;;  %v11750_v27 = vld [vmem:[%s14298_s2 + $0x88] sm:$0xff]  }
  0xdb   : > { %10071 = vmatmul.mubr.msk.bf16.gmra.mrb[12].mxu0 %vm794_vm0, %v12081_v21 }
  0xdc   : > { %10074 = vmatprep.mubr.msk.bf16.mxu0 %vm794_vm0, %v12104_v56 }
  0xde   : > { %v3155_v54 = vpop.permute.xlu0 %3154 }
  0xe1   : > { %9899 = vmatmul.mubr.msk.bf16.vlgmr.msra.gmra.mrb[0].mxu1 %vm794_vm0, %v11885_v41  ;;  %v11751_v41 = vld [vmem:[%s14298_s2 + $0x90] sm:$0xff]  }
  0xe2   : > { %10836 = vmatpush3.bf16.msra.mxu1 %v12403_v0  ;;  %9902 = vmatprep.mubr.msk.bf16.mxu1 %vm794_vm0, %v11898_v50  ;;  %v1803_v50 = vshrl.u32 %v12299_v63, 16  ;;  %v1810_v0 = vshll.u32 %v12303_v53, 16 }
  0xe3   : > { %10833 = vmatprep.subr.bf16.mxu1 %v11750_v27  ;;  %10075 = vmatmul.mubr.msk.bf16.gmra.mrb[16].mxu0 %vm794_vm0, %v12140_v47 }
  0xe4   : > { %10078 = vmatprep.mubr.msk.bf16.mxu0 %vm794_vm0, %v12150_v34 }
  0xe6   : > { %10837 = vmatpush3.bf16.msra.mxu1 %v11750_v27 }
  0xe7   : > { %10834 = vmatprep.subr.bf16.mxu1 %v11751_v41 }
  0xe9   : > { %9903 = vmatmul.mubr.msk.bf16.gmra.mrb[4].mxu1 %vm794_vm0, %v11914_v61  ;;  %v1808_v61 = vor.u32 %v1807_v60, %v1803_v50 }
  0xea   : > { %9906 = vmatprep.mubr.msk.bf16.mxu1 %vm794_vm0, %v11947_v29  ;;  %10838 = vmatpush3.bf16.msra.mxu1 %v11751_v41  ;;  %v1812_v29 = vrot.slane %v1810_v0, 1 }
  0xeb   : > { %10835 = vmatprep.subr.bf16.mxu1 %v11752_v42  ;;  %10079 = vmatmul.mubr.msk.bf16.gmra.mrb[20].mxu0 %vm794_vm0, %v12188_v18 }
  0xec   : > { %10082 = vmatprep.mubr.msk.bf16.mxu0 %vm794_vm0, %v12204_v31  ;;  %v1813_v53 = vsel %vm572_vm4, %v1808_v61, %v1812_v29 }
  0xee   : > { %10839 = vmatpush3.bf16.msra.mxu1 %v11752_v42 }
  0xf1   : > { %9907 = vmatmul.mubr.msk.bf16.gmra.mrb[8].mxu1 %vm794_vm0, %v11966_v38  ;;  %v11686_v38 = vld [vmem:[%s14299_s3 + $0x24] sm:$0xff]  }
  0xf2   : > { %9910 = vmatprep.mubr.msk.bf16.mxu1 %vm794_vm0, %v11982_v51  ;;  %10130 = vmatprep.subr.bf16.mxu1 %v11686_v38  ;;  %v11687_v51 = vld [vmem:[%s14299_s3 + $0x2c] sm:$0xff]  }
  0xf3   : > { %10083 = vmatmul.mubr.msk.bf16.gmra.mrb[24].mxu0 %vm794_vm0, %v12230_v22 }
  0xf4   : > { %10086 = vmatprep.mubr.msk.bf16.mxu0 %vm794_vm0, %v1813_v53 }
  0xf9   : > { %9911 = vmatmul.mubr.msk.bf16.gmra.mrb[12].mxu1 %vm794_vm0, %v12006_v8  ;;  %v11688_v8 = vld [vmem:[%s14299_s3 + $0x34] sm:$0xff]  }
  0xfa   : > { %9914 = vmatprep.mubr.msk.bf16.mxu1 %vm794_vm0, %v12032_v32  ;;  %v11689_v32 = vld [vmem:[%s14299_s3 + $0x3c] sm:$0xff]  }
  0xfb   : > { %10087 = vmatmul.mubr.msk.bf16.gmra.mrb[28].mxu0 %vm794_vm0, %v11813_v3 }
  0xfc   : > { %10098 = vmatprep.mubr.msk.bf16.mxu0 %vm794_vm0, %v12101_v55  ;;  %v12632_v55 = vld [vmem:[%s14299_s3] sm:$0xff]  }
 0x101   : > { %9915 = vmatmul.mubr.msk.bf16.gmra.mrb[16].mxu1 %vm794_vm0, %v12067_v5  ;;  %v11690_v5 = vld [vmem:[%s14299_s3 + $0x44] ss:$0 sps:$4 sm:$0x11]  }
 0x102   : > { %9918 = vmatprep.mubr.msk.bf16.mxu1 %vm794_vm0, %v12085_v25 }
 0x103   : > { %10099 = vmatmul.mubr.msk.bf16.vlgmr.msra.gmra.mrb[0].mxu0 %vm794_vm0, %v12126_v16 }
 0x104   : > { %10102 = vmatprep.mubr.msk.bf16.mxu0 %vm794_vm0, %v12164_v28 }
 0x109   : > { %9919 = vmatmul.mubr.msk.bf16.gmra.mrb[20].mxu1 %vm794_vm0, %v12109_v59 }
 0x10a   : > { %9922 = vmatprep.mubr.msk.bf16.mxu1 %vm794_vm0, %v12130_v15 }
 0x10b   : > { %10103 = vmatmul.mubr.msk.bf16.gmra.mrb[4].mxu0 %vm794_vm0, %v12171_v45 }
 0x10c   : > { %10106 = vmatprep.mubr.msk.bf16.mxu0 %vm794_vm0, %v12210_v49 }
 0x111   : > { %9923 = vmatmul.mubr.msk.bf16.gmra.mrb[24].mxu1 %vm794_vm0, %v12161_v13 }
 0x112   : > { %9926 = vmatprep.mubr.msk.bf16.mxu1 %vm794_vm0, %v12175_v44 }
 0x113   : > { %10107 = vmatmul.mubr.msk.bf16.gmra.mrb[8].mxu0 %vm794_vm0, %v12219_v17 }
 0x114   : > { %10110 = vmatprep.mubr.msk.bf16.mxu0 %vm794_vm0, %v12244_v36 }
 0x119   : > { %9927 = vmatmul.mubr.msk.bf16.gmra.mrb[28].mxu1 %vm794_vm0, %v12299_v63 }
 0x11a   : > { %9954 = vmatprep.mubr.msk.bf16.mxu1 %vm794_vm0, %v12081_v21  ;;  %v12624_v21 = vsel %vm529_vm1, 65535, %v14303_v2 }
 0x11b   : > { %10111 = vmatmul.mubr.msk.bf16.gmra.mrb[12].mxu0 %vm794_vm0, %v12248_v37  ;;  %v3671_v25 = vand.u32 %v11690_v5, %v12624_v21 }
 0x11c   : > { %10114 = vmatprep.mubr.msk.bf16.mxu0 %vm794_vm0, %v12264_v40  ;;  %v12650_v40 = vld [vmem:[%s14301_s5] ss:$0 sm:$0xff] }
 0x121   : > { %9955 = vmatmul.mubr.msk.bf16.vlgmr.msra.gmra.mrb[16].mxu1 %vm794_vm0, %v12104_v56 }
 0x122   : > { %9958 = vmatprep.mubr.msk.bf16.mxu1 %vm794_vm0, %v12140_v47  ;;  %10131 = vmatpush3.bf16.msra.mxu1 %v11686_v38 }
 0x123   : > { %10115 = vmatmul.mubr.msk.bf16.gmra.mrb[16].mxu0 %vm794_vm0, %v12269_v23  ;;  %10132 = vmatprep.subr.bf16.mxu1 %v11687_v51 }
 0x124   : > { %10118 = vmatprep.mubr.msk.bf16.mxu0 %vm794_vm0, %v12284_v39 }
 0x126   : > { %10133 = vmatpush3.bf16.msra.mxu1 %v11687_v51 }
 0x127   : > { %10134 = vmatprep.subr.bf16.mxu1 %v11688_v8 }
 0x129   : > { %9959 = vmatmul.mubr.msk.bf16.gmra.mrb[20].mxu1 %vm794_vm0, %v12150_v34 }
 0x12a   : > { %9962 = vmatprep.mubr.msk.bf16.mxu1 %vm794_vm0, %v12188_v18  ;;  %10135 = vmatpush3.bf16.msra.mxu1 %v11688_v8 }
 0x12b   : > { %10119 = vmatmul.mubr.msk.bf16.gmra.mrb[20].mxu0 %vm794_vm0, %v12289_v35  ;;  %10136 = vmatprep.subr.bf16.mxu1 %v11689_v32 }
 0x12c   : > { %10122 = vmatprep.mubr.msk.bf16.mxu0 %vm794_vm0, %v12306_v46 }
 0x12e   : > { %10137 = vmatpush3.bf16.msra.mxu1 %v11689_v32 }
 0x12f   : > { %10138 = vmatprep.subr.bf16.mxu1 %v3671_v25 }
 0x131   : > { %9963 = vmatmul.mubr.msk.bf16.gmra.mrb[24].mxu1 %vm794_vm0, %v12204_v31 }
 0x132   : > { %9966 = vmatprep.mubr.msk.bf16.mxu1 %vm794_vm0, %v12230_v22  ;;  %10139 = vmatpush3.bf16.msra.mxu1 %v3671_v25  ;;  %v3157_v25 = vpop.permute.xlu1 %3156 }
 0x133   : > { %10123 = vmatmul.mubr.msk.bf16.gmra.mrb[24].mxu0 %vm794_vm0, %v12311_v58  ;;  %10172 = vmatprep.subr.bf16.mxu1 %v12632_v55 }
 0x134   : > { %10126 = vmatprep.mubr.msk.bf16.mxu0 %vm794_vm0, %v12322_v1 }
 0x139   : > { %9967 = vmatmul.mubr.msk.bf16.gmra.mrb[28].mxu1 %vm794_vm0, %v1813_v53 }
 0x13a   : > { %10140 = vmatprep.mubr.msk.bf16.mxu1 %vm3619_vm7, %v11813_v3 }
 0x13b   : > { %10127 = vmatmul.mubr.msk.bf16.gmra.mrb[28].mxu0 %vm794_vm0, %v11813_v3 }
 0x13c   : > { %10512 = vmatprep.mubr.msk.bf16.mxu0 %vm3184_vm6, %v11813_v3 }
 0x1b4   : > { %v9900_v56 = vpop.f32.mrb[0].mxu1 }
 0x1b5   : > { %v1644_v59 = vpop.f32.mrb[1].mxu1 }
 0x1b6   : > { %v9901_v16 = vpop.f32.mrb[2].mxu1 }
 0x1b7   : > { %v1647_v15 = vpop.f32.mrb[3].mxu1 }
 0x1bc   : > { %v9904_v47 = vpop.f32.mrb[4].mxu1 }
 0x1bd   : > { %v1660_v34 = vpop.f32.mrb[5].mxu1 }
 0x1be   : > { %v9905_v13 = vpop.f32.mrb[6].mxu1 }
 0x1bf   : > { %v1663_v28 = vpop.f32.mrb[7].mxu1 }
 0x1c4   : > { %v9908_v45 = vpop.f32.mrb[8].mxu1 }
 0x1c5   : > { %v1676_v44 = vpop.f32.mrb[9].mxu1 }
 0x1c6   : > { %v12635_v18 = vpop.f32.mrb[10].mxu1 }
 0x1c7   : > { %v12637_v31 = vpop.f32.mrb[11].mxu1 }
 0x1cc   : > { %v12639_v49 = vpop.f32.mrb[12].mxu1 }
 0x1cd   : > { %v12641_v17 = vpop.f32.mrb[13].mxu1 }
 0x1ce   : > { %v12643_v22 = vpop.f32.mrb[14].mxu1 }
 0x1cf   : > { %v12645_v36 = vpop.f32.mrb[15].mxu1 }
 0x1d6   : > { %v10100_v37 = vpop.f32.mrb[0].mxu0 }
 0x1d7   : > { %v10840_v23 = vadd.f32 %v10100_v37, %v9900_v56  ;;  %v2796_v39 = vpop.f32.mrb[1].mxu0 }
 0x1d8   : > { %v10841_v35 = vadd.f32 %v2796_v39, %v1644_v59  ;;  %v10101_v63 = vpop.f32.mrb[2].mxu0 }
 0x1d9   : > { %v2962_v46 = vadd.f32 %v10840_v23, %v12650_v40  ;;  %v10842_v58 = vadd.f32 %v10101_v63, %v9901_v16  ;;  %v2799_v1 = vpop.f32.mrb[3].mxu0 }
 0x1da   : > { %v2960_v12 = vadd.f32 %v10841_v35, %v12650_v40  ;;  %v10843_v20 = vadd.f32 %v2799_v1, %v1647_v15 }
 0x1db   : > { %v2963_v52 = vadd.f32 %v10842_v58, %v12650_v40  ;;  %v2994_v57 = vmax.f32 %v2962_v46, 0.0 }
 0x1dc   : > { %v2961_v43 = vadd.f32 %v10843_v20, %v12650_v40  ;;  %v2992_v7 = vmax.f32 %v2960_v12, 0.0  ;;  %v3159_v20 = vpop.permute.xlu1 %3158 }
 0x1dd   : > { %v2995_v48 = vmax.f32 %v2963_v52, 0.0 }
 0x1de   : > { %v2993_v24 = vmax.f32 %v2961_v43, 0.0  ;;  %v10104_v33 = vpop.f32.mrb[4].mxu0 }
 0x1df   : > { %v3025_v6 = vpack.c.bf16 %v2995_v48, %v2994_v57  ;;  %v10844_v9 = vadd.f32 %v10104_v33, %v9904_v47  ;;  %v2812_v10 = vpop.f32.mrb[5].mxu0 }
 0x1e0   : > { %v3024_v4 = vpack.c.bf16 %v2993_v24, %v2992_v7  ;;  %v10845_v19 = vadd.f32 %v2812_v10, %v1660_v34  ;;  %v10105_v30 = vpop.f32.mrb[6].mxu0 }
 0x1e1   : > { %v10846_v62 = vadd.f32 %v10105_v30, %v9905_v13  ;;  %v2815_v27 = vpop.f32.mrb[7].mxu0  ;;  %v2966_v41 = vadd.f32 %v10844_v9, %v12650_v40  ;;  %v3190_v0 = vsel %vm3184_vm6, %v3025_v6, %v3155_v54 }
 0x1e2   : > { %v3187_v26 = vsel %vm3184_vm6, %v3024_v4, %v3153_v11  ;;  %v10847_v42 = vadd.f32 %v2815_v27, %v1663_v28  ;;  %v2964_v53 = vadd.f32 %v10845_v19, %v12650_v40  ;;  %v3239_v59 = vshrl.u32 %v3190_v0, 16 }
 0x1e3   : > { %v3233_v50 = vshrl.u32 %v3187_v26, 16  ;;  %v2967_v60 = vadd.f32 %v10846_v62, %v12650_v40  ;;  %v3236_v29 = vshll.u32 %v3187_v26, 16  ;;  %v2998_v51 = vmax.f32 %v2966_v41, 0.0 }
 0x1e4   : > { %v2965_v8 = vadd.f32 %v10847_v42, %v12650_v40  ;;  %v2996_v34 = vmax.f32 %v2964_v53, 0.0  ;;  %v3241_v1 = vrot.slane %v3239_v59, 7  ;;  %v3242_v43 = vshll.u32 %v3190_v0, 16 }
 0x1e5   : > { %v3235_v61 = vrot.slane %v3233_v50, 7  ;;  %v2999_v38 = vmax.f32 %v2967_v60, 0.0 }
 0x1e6   : > { %v10108_v32 = vpop.f32.mrb[8].mxu0  ;;  %v2997_v13 = vmax.f32 %v2965_v8, 0.0  ;;  %v3244_v19 = vor.u32 %v3242_v43, %v3241_v1 }
 0x1e7   : > { %v3238_v5 = vor.u32 %v3236_v29, %v3235_v61  ;;  %v2828_v56 = vpop.f32.mrb[9].mxu0  ;;  %v3027_v16 = vpack.c.bf16 %v2999_v38, %v2998_v51  ;;  %v10848_v28 = vadd.f32 %v10108_v32, %v9908_v45  ;;  %v12669_v35 = vsel %vm11852_vm3, %v3235_v61, 0  ;;  %v3163_v38 = vpop.permute.xlu1 %3162  ;;  %v11692_v32 = vld [vmem:[%s14299_s3 + $0x8] sm:$0xff]  }
 0x1e8   : > { %v10109_v15 = vpop.f32.mrb[10].mxu0  ;;  %v10849_v39 = vadd.f32 %v2828_v56, %v1676_v44  ;;  %v3026_v63 = vpack.c.bf16 %v2997_v13, %v2996_v34  ;;  %v3410_v44 = vshll.u32 %v12669_v35, 16  ;;  %v3161_v56 = vpop.permute.xlu0 %3160 }
 0x1e9   : > { %v12664_v47 = vsel %vm11852_vm3, 0, %v3238_v5  ;;  %v2831_v37 = vpop.f32.mrb[11].mxu0  ;;  %v2970_v46 = vadd.f32 %v10848_v28, %v12650_v40  ;;  %v10850_v58 = vadd.f32 %v10109_v15, %v12635_v18  ;;  %v3196_v10 = vsel %vm3184_vm6, %v3027_v16, %v3159_v20 }
 0x1ea   : > { %v3405_v23 = vshll.u32 %v12664_v47, 16  ;;  %v2968_v12 = vadd.f32 %v10849_v39, %v12650_v40  ;;  %v10851_v45 = vadd.f32 %v2831_v37, %v12637_v31  ;;  %v3403_v6 = vshrl.u32 %v12664_v47, 16 }
 0x1eb   : > { %v2971_v52 = vadd.f32 %v10850_v58, %v12650_v40  ;;  %v3002_v48 = vmax.f32 %v2970_v46, 0.0  ;;  %v3193_v9 = vsel %vm3184_vm6, %v3026_v63, %v3157_v25  ;;  %v3251_v60 = vshrl.u32 %v3196_v10, 16  ;;  %v11693_v58 = vld [vmem:[%s14299_s3 + $0x10] sm:$0xff]  }
 0x1ec   : > { %v3407_v11 = vrot.slane %v3405_v23, 1  ;;  %v2969_v24 = vadd.f32 %v10851_v45, %v12650_v40  ;;  %v3000_v30 = vmax.f32 %v2968_v12, 0.0  ;;  %v3245_v50 = vshrl.u32 %v3193_v9, 16 }
 0x1ed   : > { %v3003_v7 = vmax.f32 %v2971_v52, 0.0  ;;  %v3412_v61 = vrot.slane %v3410_v44, 1  ;;  %v3253_v13 = vrot.slane %v3251_v60, 7  ;;  %v3248_v23 = vshll.u32 %v3193_v9, 16 }
 0x1ee   : > { %v10112_v57 = vpop.f32.mrb[12].mxu0  ;;  %v3001_v62 = vmax.f32 %v2969_v24, 0.0  ;;  %v3408_v26 = vor.u32 %v3407_v11, %v3403_v6  ;;  %v3247_v34 = vrot.slane %v3245_v50, 7 }
 0x1ef   : > { %v10852_v33 = vadd.f32 %v10112_v57, %v12639_v49  ;;  %v2844_v18 = vpop.f32.mrb[13].mxu0  ;;  %v3029_v54 = vpack.c.bf16 %v3003_v7, %v3002_v48  ;;  %v12685_v49 = vsel %vm11852_vm3, %v3241_v1, 0 }
 0x1f0   : > { %v10853_v31 = vadd.f32 %v2844_v18, %v12641_v17  ;;  %v10113_v4 = vpop.f32.mrb[14].mxu0  ;;  %v3028_v0 = vpack.c.bf16 %v3001_v62, %v3000_v30  ;;  %v12689_v17 = vsel %vm11852_vm3, 0, %v3244_v19  ;;  %v3422_v5 = vshll.u32 %v12685_v49, 16 }
 0x1f1   : > { %v2847_v27 = vpop.f32.mrb[15].mxu0  ;;  %v2974_v53 = vadd.f32 %v10852_v33, %v12650_v40  ;;  %v10854_v51 = vadd.f32 %v10113_v4, %v12643_v22  ;;  %v12702_v16 = vsel %vm572_vm4, %v3408_v26, %v3412_v61  ;;  %v3254_v22 = vshll.u32 %v3196_v10, 16  ;;  %v3167_v4 = vpop.permute.xlu1 %3166  ;;  %v11694_v26 = vld [vmem:[%s14299_s3 + $0x18] sm:$0xff]  }
 0x1f2   : > { %v2972_v25 = vadd.f32 %v10853_v31, %v12650_v40  ;;  %v10855_v59 = vadd.f32 %v2847_v27, %v12645_v36  ;;  %10141 = vmatmul.mubr.msk.bf16.vlgmr.msra.gmra.mrb[32].mxu1 %vm3619_vm7, %v12702_v16  ;;  %v3417_v36 = vshll.u32 %v12689_v17, 16  ;;  %v12714_v12 = vsel %vm3184_vm6, %v3029_v54, %v3163_v38 }
 0x1f3   : > { %v2975_v28 = vadd.f32 %v10854_v51, %v12650_v40  ;;  %10173 = vmatpush3.bf16.msra.mxu1 %v12632_v55  ;;  %v3006_v1 = vmax.f32 %v2974_v53, 0.0  ;;  %v12717_v52 = vsel %vm3184_vm6, %v3028_v0, %v3161_v56  ;;  %v11695_v55 = vld [vmem:[%s14299_s3 + $0x20] ss:$0 sps:$4 sm:$0x11]   ;;  %v3250_v48 = vor.u32 %v3248_v23, %v3247_v34 }
 0x1f4   : > { %v9956_v41 = vpop.f32.mrb[16].mxu1  ;;  %v2973_v39 = vadd.f32 %v10855_v59, %v12650_v40  ;;  %10174 = vmatprep.subr.bf16.mxu1 %v11692_v32  ;;  %v3004_v11 = vmax.f32 %v2972_v25, 0.0  ;;  %v3419_v43 = vrot.slane %v3417_v36, 1  ;;  %v3256_v7 = vor.u32 %v3254_v22, %v3253_v13  ;;  %v3165_v59 = vpop.permute.xlu0 %3164 }
 0x1f5   : > { %v1948_v42 = vpop.f32.mrb[17].mxu1  ;;  %v3007_v20 = vmax.f32 %v2975_v28, 0.0  ;;  %v3415_v33 = vshrl.u32 %v12689_v17, 16  ;;  %v12729_v6 = vsel %vm11852_vm3, %v3247_v34, 0  ;;  %v3263_v9 = vshrl.u32 %v12714_v12, 16 }
 0x1f6   : > { %v9957_v29 = vpop.f32.mrb[18].mxu1  ;;  %v10116_v15 = vpop.f32.mrb[16].mxu0  ;;  %v3005_v44 = vmax.f32 %v2973_v39, 0.0  ;;  %v3257_v10 = vshrl.u32 %v12717_v52, 16  ;;  %v3424_v30 = vrot.slane %v3422_v5, 1  ;;  %v3894_v61 = vand.u32 %v11695_v55, %v12624_v21 }
 0x1f7   : > { %v12693_v8 = vpop.f32.mrb[19].mxu1  ;;  %v2860_v37 = vpop.f32.mrb[17].mxu0  ;;  %v10856_v63 = vadd.f32 %v10116_v15, %v9956_v41  ;;  %v3031_v24 = vpack.c.bf16 %v3007_v20, %v3006_v1  ;;  %10175 = vmatpush3.bf16.msra.mxu1 %v11692_v32  ;;  %v3420_v54 = vor.u32 %v3419_v43, %v3415_v33  ;;  %v12742_v41 = vsel %vm11852_vm3, %v3253_v13, 0 }
 0x1f8   : > { %v10117_v46 = vpop.f32.mrb[18].mxu0  ;;  %v3030_v31 = vpack.c.bf16 %v3005_v44, %v3004_v11  ;;  %v10857_v62 = vadd.f32 %v2860_v37, %v1948_v42  ;;  %10176 = vmatprep.subr.bf16.mxu1 %v11693_v58  ;;  %v12748_v42 = vsel %vm11852_vm3, 0, %v3250_v48  ;;  %v3434_v53 = vshll.u32 %v12729_v6, 16 }
 0x1f9   : > { %v2863_v45 = vpop.f32.mrb[19].mxu0  ;;  %v2978_v50 = vadd.f32 %v10856_v63, %v12650_v40  ;;  %v10858_v60 = vadd.f32 %v10117_v46, %v9957_v29  ;;  %v12752_v38 = vsel %vm572_vm4, %v3420_v54, %v3424_v30  ;;  %v12755_v51 = vsel %vm3184_vm6, %v3031_v24, %v3167_v4 }
 0x1fa   : > { %v12759_v5 = vsel %vm11852_vm3, 0, %v3256_v7  ;;  %v3265_v29 = vrot.slane %v3263_v9, 7  ;;  %v3259_v25 = vrot.slane %v3257_v10, 7  ;;  %10144 = vmatprep.mubr.msk.bf16.mxu1 %vm3619_vm7, %v12752_v38  ;;  %v3446_v34 = vshll.u32 %v12742_v41, 16 }
 0x1fb   : > { %v2979_v56 = vadd.f32 %v10858_v60, %v12650_v40  ;;  %10177 = vmatpush3.bf16.msra.mxu1 %v11693_v58  ;;  %v3260_v13 = vshll.u32 %v12717_v52, 16  ;;  %v2976_v22 = vadd.f32 %v10857_v62, %v12650_v40  ;;  %v10859_v28 = vadd.f32 %v2863_v45, %v12693_v8 }
 0x1fc   : > { %v12722_v57 = vpop.f32.mrb[20].mxu1  ;;  %10178 = vmatprep.subr.bf16.mxu1 %v11694_v26  ;;  %v3010_v23 = vmax.f32 %v2978_v50, 0.0  ;;  %v3275_v39 = vshrl.u32 %v12755_v51, 16  ;;  %v3429_v63 = vshll.u32 %v12748_v42, 16  ;;  %v3436_v58 = vrot.slane %v3434_v53, 1  ;;  %v3171_v53 = vpop.permute.xlu1 %3170 }
 0x1fd   : > { %v12725_v18 = vpop.f32.mrb[21].mxu1  ;;  %v3011_v36 = vmax.f32 %v2979_v56, 0.0  ;;  %v12775_v1 = vsel %vm3184_vm6, %v3030_v31, %v3165_v59  ;;  %v2977_v20 = vadd.f32 %v10859_v28, %v12650_v40  ;;  %v3441_v52 = vshll.u32 %v12759_v5, 16  ;;  %v3169_v28 = vpop.permute.xlu0 %3168 }
 0x1fe   : > { %v12733_v19 = vpop.f32.mrb[22].mxu1  ;;  %v10120_v0 = vpop.f32.mrb[20].mxu0  ;;  %v3266_v45 = vshll.u32 %v12714_v12, 16  ;;  %v12784_v55 = vsel %vm11852_vm3, %v3265_v29, 0  ;;  %v3262_v11 = vor.u32 %v3260_v13, %v3259_v25  ;;  %v3008_v48 = vmax.f32 %v2976_v22, 0.0  ;;  %v12794_v12 = vld [vmem:[%s14299_s3 + $0x48] sm:$0xff]  }
 0x1ff   : > { %v12735_v27 = vpop.f32.mrb[23].mxu1  ;;  %v2876_v32 = vpop.f32.mrb[21].mxu0  ;;  %v3033_v44 = vpack.c.bf16 %v3011_v36, %v3010_v23  ;;  %10179 = vmatpush3.bf16.msra.mxu1 %v11694_v26  ;;  %v3009_v7 = vmax.f32 %v2977_v20, 0.0  ;;  %v3427_v24 = vshrl.u32 %v12748_v42, 16  ;;  %v3431_v33 = vrot.slane %v3429_v63, 1 }
 0x200   : > { %v10121_v15 = vpop.f32.mrb[22].mxu0  ;;  %10180 = vmatprep.subr.bf16.mxu1 %v3894_v61  ;;  %v12798_v10 = vsel %vm11852_vm3, %v3259_v25, 0  ;;  %v3277_v31 = vrot.slane %v3275_v39, 7  ;;  %v3269_v4 = vshrl.u32 %v12775_v1, 16  ;;  %v3439_v30 = vshrl.u32 %v12759_v5, 16 }
 0x201   : > { %v12768_v37 = vpop.f32.mrb[23].mxu0  ;;  %v3032_v62 = vpack.c.bf16 %v3009_v7, %v3008_v48  ;;  %v3432_v26 = vor.u32 %v3431_v33, %v3427_v24  ;;  %v3443_v50 = vrot.slane %v3441_v52, 1  ;;  %v10860_v60 = vadd.f32 %v10120_v0, %v12722_v57 }
 0x202   : > { %v3448_v59 = vrot.slane %v3446_v34, 1  ;;  %v3268_v13 = vor.u32 %v3266_v45, %v3265_v29  ;;  %v10861_v22 = vadd.f32 %v2876_v32, %v12725_v18  ;;  %v10862_v25 = vadd.f32 %v10121_v15, %v12733_v19 }
 0x203   : > { %10181 = vmatpush3.bf16.msra.mxu1 %v3894_v61  ;;  %v3470_v39 = vshll.u32 %v12784_v55, 16  ;;  %v12809_v36 = vsel %vm572_vm4, %v3432_v26, %v3436_v58  ;;  %v3444_v63 = vor.u32 %v3443_v50, %v3439_v30  ;;  %v2982_v20 = vadd.f32 %v10860_v60, %v12650_v40 }
 0x204   : > { %v12772_v46 = vpop.f32.mrb[24].mxu1  ;;  %10214 = vmatprep.subr.bf16.mxu1 %v12794_v12  ;;  %v12817_v18 = vsel %vm11852_vm3, 0, %v3262_v11  ;;  %v3458_v19 = vshll.u32 %v12798_v10, 16  ;;  %10145 = vmatmul.mubr.msk.bf16.gmra.mrb[36].mxu1 %vm3619_vm7, %v12809_v36  ;;  %v12823_v0 = vsel %vm3184_vm6, %v3033_v44, %v3171_v53  ;;  %v2983_v61 = vadd.f32 %v10862_v25, %v12650_v40 }
 0x205   : > { %v12779_v8 = vpop.f32.mrb[25].mxu1  ;;  %v12830_v29 = vsel %vm11852_vm3, %v3277_v31, 0  ;;  %v3271_v15 = vrot.slane %v3269_v4, 7  ;;  %v12833_v34 = vsel %vm572_vm4, %v3444_v63, %v3448_v59  ;;  %v3211_v58 = vsel %vm3184_vm6, %v3032_v62, %v3169_v28 }
 0x206   : > { %v12786_v43 = vpop.f32.mrb[26].mxu1  ;;  %v12802_v54 = vpop.f32.mrb[24].mxu0  ;;  %14311 = vst [vmem:[#allocation2_spill] sm:$0xff] %v12833_v34  ;;  %10148 = vmatprep.mubr.msk.bf16.mxu1 %vm3619_vm7, %v12833_v34  ;;  %v3014_v45 = vmax.f32 %v2982_v20, 0.0  ;;  %v2980_v11 = vadd.f32 %v10861_v22, %v12650_v40  ;;  %v3015_v44 = vmax.f32 %v2983_v61, 0.0  ;;  %v10863_v48 = vadd.f32 %v12768_v37, %v12735_v27 }
 0x207   : > { %v12789_v9 = vpop.f32.mrb[27].mxu1  ;;  %v2892_v56 = vpop.f32.mrb[25].mxu0  ;;  %v12847_v24 = vsel %vm11852_vm3, 0, %v3268_v13  ;;  %v3472_v33 = vrot.slane %v3470_v39, 1  ;;  %v3278_v4 = vshll.u32 %v12755_v51, 16  ;;  %v3287_v30 = vshrl.u32 %v12823_v0, 16 }
 0x208   : > { %v10125_v23 = vpop.f32.mrb[26].mxu0  ;;  %v3272_v26 = vshll.u32 %v12775_v1, 16  ;;  %v3035_v50 = vpack.c.bf16 %v3015_v44, %v3014_v45  ;;  %v3281_v60 = vshrl.u32 %v3211_v58, 16  ;;  %v2981_v53 = vadd.f32 %v10863_v48, %v12650_v40 }
 0x209   : > { %v12812_v57 = vpop.f32.mrb[27].mxu0  ;;  %v3460_v37 = vrot.slane %v3458_v19, 1  ;;  %v3280_v59 = vor.u32 %v3278_v4, %v3277_v31  ;;  %v3494_v13 = vshll.u32 %v12830_v29, 16  ;;  %v3453_v22 = vshll.u32 %v12817_v18, 16 }
 0x20a   : > { %v3274_v51 = vor.u32 %v3272_v26, %v3271_v15  ;;  %v12863_v28 = vsel %vm11852_vm3, %v3271_v15, 0  ;;  %v3012_v1 = vmax.f32 %v2980_v11, 0.0  ;;  %v3013_v39 = vmax.f32 %v2981_v53, 0.0  ;;  %v3175_v26 = vpop.permute.xlu1 %3174 }
 0x20b   : > { %v3289_v20 = vrot.slane %v3287_v30, 7  ;;  %v3451_v61 = vshrl.u32 %v12817_v18, 16  ;;  %v3455_v19 = vrot.slane %v3453_v22, 1  ;;  %v3465_v31 = vshll.u32 %v12847_v24, 16 }
 0x20c   : > { %v12826_v32 = vpop.f32.mrb[28].mxu1  ;;  %v3283_v44 = vrot.slane %v3281_v60, 7  ;;  %v3034_v48 = vpack.c.bf16 %v3013_v39, %v3012_v1  ;;  %v10864_v4 = vadd.f32 %v12802_v54, %v12772_v46  ;;  %v10865_v15 = vadd.f32 %v2892_v56, %v12779_v8  ;;  %v3173_v39 = vpop.permute.xlu0 %3172 }
 0x20d   : > { %v12836_v52 = vpop.f32.mrb[29].mxu1  ;;  %v3456_v11 = vor.u32 %v3455_v19, %v3451_v61  ;;  %v3463_v53 = vshrl.u32 %v12847_v24, 16  ;;  %v3467_v2 = vrot.slane %v3465_v31, 1  ;;  %v10866_v30 = vadd.f32 %v10125_v23, %v12786_v43 }
 0x20e   : > { %v12843_v7 = vpop.f32.mrb[30].mxu1  ;;  %v12855_v27 = vpop.f32.mrb[28].mxu0  ;;  %v12878_v22 = vsel %vm11852_vm3, 0, %v3274_v51  ;;  %v3482_v34 = vshll.u32 %v12863_v28, 16  ;;  %v3284_v60 = vshll.u32 %v3211_v58, 16  ;;  %v2986_v1 = vadd.f32 %v10864_v4, %v12650_v40 }
 0x20f   : > { %v12851_v62 = vpop.f32.mrb[31].mxu1  ;;  %v12859_v25 = vpop.f32.mrb[29].mxu0  ;;  %v12883_v46 = vsel %vm572_vm4, %v3456_v11, %v3460_v37  ;;  %v3468_v8 = vor.u32 %v3467_v2, %v3463_v53  ;;  %v3220_v54 = vsel %vm3184_vm6, %v3035_v50, %v3175_v26  ;;  %v2987_v56 = vadd.f32 %v10866_v30, %v12650_v40 }
 0x210   : > { %v12865_v63 = vpop.f32.mrb[30].mxu0  ;;  %v12889_v43 = vsel %vm11852_vm3, %v3289_v20, 0  ;;  %v3286_v23 = vor.u32 %v3284_v60, %v3283_v44  ;;  %v12893_v51 = vsel %vm11852_vm3, %v3283_v44, 0  ;;  %10149 = vmatmul.mubr.msk.bf16.gmra.mrb[40].mxu1 %vm3619_vm7, %v12883_v46  ;;  %v2984_v58 = vadd.f32 %v10865_v15, %v12650_v40 }
 0x211   : > { %v12869_v45 = vpop.f32.mrb[31].mxu0  ;;  %v12899_v2 = vsel %vm572_vm4, %v3468_v8, %v3472_v33  ;;  %v3018_v50 = vmax.f32 %v2986_v1, 0.0  ;;  %v3019_v37 = vmax.f32 %v2987_v56, 0.0  ;;  %v10867_v61 = vadd.f32 %v12812_v57, %v12789_v9 }
 0x212   : > { %14312 = vst [vmem:[#allocation3_spill] sm:$0xff] %v12899_v2  ;;  %v12905_v19 = vsel %vm11852_vm3, 0, %v3280_v59  ;;  %v3290_v31 = vshll.u32 %v12823_v0, 16  ;;  %10152 = vmatprep.mubr.msk.bf16.mxu1 %vm3619_vm7, %v12899_v2  ;;  %v3299_v44 = vshrl.u32 %v3220_v54, 16  ;;  %v3217_v4 = vsel %vm3184_vm6, %v3034_v48, %v3173_v39  ;;  %v3179_v48 = vpop.permute.xlu1 %3178 }
 0x213   : > { %v3496_v15 = vrot.slane %v3494_v13, 1  ;;  %v3484_v33 = vrot.slane %v3482_v34, 1  ;;  %v3037_v26 = vpack.c.bf16 %v3019_v37, %v3018_v50  ;;  %v2985_v11 = vadd.f32 %v10867_v61, %v12650_v40  ;;  %v3177_v37 = vpop.permute.xlu0 %3176 }
 0x214   : > { %v3292_v53 = vor.u32 %v3290_v31, %v3289_v20  ;;  %v3518_v9 = vshll.u32 %v12889_v43, 16  ;;  %v3506_v57 = vshll.u32 %v12893_v51, 16  ;;  %v3477_v59 = vshll.u32 %v12878_v22, 16 }
 0x215   : > { %v12917_v0 = vsel %vm11852_vm3, 0, %v3286_v23  ;;  %v3016_v30 = vmax.f32 %v2984_v58, 0.0  ;;  %v3293_v60 = vshrl.u32 %v3217_v4, 16  ;;  %v3017_v1 = vmax.f32 %v2985_v11, 0.0 }
 0x216   : > { %v3301_v13 = vrot.slane %v3299_v44, 7  ;;  %v3475_v34 = vshrl.u32 %v12878_v22, 16  ;;  %v3479_v8 = vrot.slane %v3477_v59, 1  ;;  %v3489_v20 = vshll.u32 %v12905_v19, 16 }
 0x217   : > { %v3036_v56 = vpack.c.bf16 %v3017_v1, %v3016_v30  ;;  %v3487_v39 = vshrl.u32 %v12905_v19, 16  ;;  %v10868_v50 = vadd.f32 %v12855_v27, %v12826_v32  ;;  %v10869_v23 = vadd.f32 %v12859_v25, %v12836_v52 }
 0x218   : > { %v3480_v58 = vor.u32 %v3479_v8, %v3475_v34  ;;  %v3491_v61 = vrot.slane %v3489_v20, 1  ;;  %v3226_v31 = vsel %vm3184_vm6, %v3037_v26, %v3179_v48  ;;  %v10870_v44 = vadd.f32 %v12865_v63, %v12843_v7 }
 0x219   : > { %v3302_v11 = vshll.u32 %v3220_v54, 16  ;;  %v3295_v59 = vrot.slane %v3293_v60, 7  ;;  %v3296_v2 = vshll.u32 %v3217_v4, 16  ;;  %v2990_v30 = vadd.f32 %v10868_v50, %v12650_v40 }
 0x21a   : > { %v12931_v1 = vsel %vm572_vm4, %v3480_v58, %v3484_v33  ;;  %v3492_v32 = vor.u32 %v3491_v61, %v3487_v39  ;;  %v2991_v27 = vadd.f32 %v10870_v44, %v12650_v40  ;;  %v3223_v52 = vsel %vm3184_vm6, %v3036_v56, %v3177_v37 }
 0x21b   : > { %v3304_v25 = vor.u32 %v3302_v11, %v3301_v13  ;;  %10153 = vmatmul.mubr.msk.bf16.gmra.mrb[44].mxu1 %vm3619_vm7, %v12931_v1  ;;  %v2988_v26 = vadd.f32 %v10869_v23, %v12650_v40  ;;  %v3311_v7 = vshrl.u32 %v3226_v31, 16  ;;  %v3305_v63 = vshrl.u32 %v3223_v52, 16 }
 0x21c   : > { %v12939_v54 = vsel %vm572_vm4, %v3492_v32, %v3496_v15  ;;  %v3022_v4 = vmax.f32 %v2990_v30, 0.0  ;;  %v3023_v60 = vmax.f32 %v2991_v27, 0.0  ;;  %v10871_v33 = vadd.f32 %v12869_v45, %v12851_v62 }
 0x21d   : > { %v3298_v48 = vor.u32 %v3296_v2, %v3295_v59  ;;  %10156 = vmatprep.mubr.msk.bf16.mxu1 %vm3619_vm7, %v12939_v54  ;;  %v12947_v34 = vsel %vm11852_vm3, 0, %v3292_v53  ;;  %v3307_v20 = vrot.slane %v3305_v63, 7  ;;  %v3520_v15 = vrot.slane %v3518_v9, 1  ;;  %v3181_v9 = vpop.permute.xlu0 %3180 }
 0x21e   : > { %v12949_v8 = vpack.c.bf16 %v3023_v60, %v3022_v4  ;;  %v2989_v56 = vadd.f32 %v10871_v33, %v12650_v40  ;;  %v3508_v39 = vrot.slane %v3506_v57, 1  ;;  %v12954_v50 = vsel %vm11852_vm3, 0, %v3304_v25 }
 0x21f   : > { %v3501_v62 = vshll.u32 %v12917_v0, 16  ;;  %v3020_v45 = vmax.f32 %v2988_v26, 0.0  ;;  %v3313_v2 = vrot.slane %v3311_v7, 7  ;;  %v3308_v23 = vshll.u32 %v3223_v52, 16 }
 0x220   : > { %v3021_v37 = vmax.f32 %v2989_v56, 0.0  ;;  %v12959_v53 = vsel %vm11852_vm3, 0, %v3298_v48  ;;  %v3499_v58 = vshrl.u32 %v12917_v0, 16  ;;  %v3513_v40 = vshll.u32 %v12947_v34, 16 }
 0x221   : > { %v3503_v61 = vrot.slane %v3501_v62, 1  ;;  %v12965_v57 = vsel %vm11852_vm3, %v3295_v59, 0  ;;  %v3314_v44 = vshll.u32 %v3226_v31, 16  ;;  %v3310_v11 = vor.u32 %v3308_v23, %v3307_v20 }
 0x222   : > { %v3038_v30 = vpack.c.bf16 %v3021_v37, %v3020_v45  ;;  %v12969_v32 = vsel %vm11852_vm3, %v3301_v13, 0  ;;  %v3511_v52 = vshrl.u32 %v12947_v34, 16  ;;  %v3515_v25 = vrot.slane %v3513_v40, 1 }
 0x223   : > { %v3504_v27 = vor.u32 %v3503_v61, %v3499_v58  ;;  %v3316_v26 = vor.u32 %v3314_v44, %v3313_v2  ;;  %v3525_v63 = vshll.u32 %v12959_v53, 16  ;;  %v3537_v4 = vshll.u32 %v12954_v50, 16 }
 0x224   : > { %v3229_v7 = vsel %vm3184_vm6, %v3038_v30, %v3181_v9  ;;  %v3530_v59 = vshll.u32 %v12965_v57, 16  ;;  %v3516_v60 = vor.u32 %v3515_v25, %v3511_v52  ;;  %v12981_v13 = vsel %vm11852_vm3, 0, %v3310_v11 }
 0x225   : > { %v12977_v31 = vsel %vm572_vm4, %v3504_v27, %v3508_v39  ;;  %v3317_v33 = vshrl.u32 %v3229_v7, 16  ;;  %v3523_v48 = vshrl.u32 %v12959_v53, 16  ;;  %v3527_v56 = vrot.slane %v3525_v63, 1 }
 0x226   : > { %10157 = vmatmul.mubr.msk.bf16.gmra.mrb[48].mxu1 %vm3619_vm7, %v12977_v31  ;;  %v3539_v62 = vrot.slane %v3537_v4, 1  ;;  %v12987_v45 = vsel %vm572_vm4, %v3516_v60, %v3520_v15  ;;  %v3320_v37 = vshll.u32 %v3229_v7, 16  ;;  %v3542_v39 = vshll.u32 %v12969_v32, 16 }
 0x227   : > { %v3319_v23 = vrot.slane %v3317_v33, 7  ;;  %v12992_v58 = vsel %vm11852_vm3, 0, %v3316_v26  ;;  %10160 = vmatprep.mubr.msk.bf16.mxu1 %vm3619_vm7, %v12987_v45  ;;  %v3528_v61 = vor.u32 %v3527_v56, %v3523_v48  ;;  %v3535_v40 = vshrl.u32 %v12954_v50, 16 }
 0x228   : > { %v3532_v9 = vrot.slane %v3530_v59, 1  ;;  %v3549_v11 = vshll.u32 %v12981_v13, 16  ;;  %v13000_v15 = vsel %vm11852_vm3, %v3307_v20, 0  ;;  %v3561_v25 = vshll.u32 %v12992_v58, 16 }
 0x229   : > { %v3322_v44 = vor.u32 %v3320_v37, %v3319_v23  ;;  %v3540_v30 = vor.u32 %v3539_v62, %v3535_v40  ;;  %v3544_v26 = vrot.slane %v3542_v39, 1  ;;  %v13012_v63 = vsel %vm11852_vm3, %v3313_v2, 0 }
 0x22a   : > { %v13003_v27 = vsel %vm572_vm4, %v3528_v61, %v3532_v9  ;;  %v3551_v52 = vrot.slane %v3549_v11, 1  ;;  %v3554_v4 = vshll.u32 %v13000_v15, 16  ;;  %v3547_v20 = vshrl.u32 %v12981_v13, 16 }
 0x22b   : > { %v13008_v7 = vsel %vm11852_vm3, 0, %v3322_v44  ;;  %v13019_v59 = vsel %vm572_vm4, %v3540_v30, %v3544_v26  ;;  %v3563_v60 = vrot.slane %v3561_v25, 1  ;;  %v3566_v2 = vshll.u32 %v13012_v63, 16 }
 0x22c   : > { %v3552_v33 = vor.u32 %v3551_v52, %v3547_v20  ;;  %v3573_v48 = vshll.u32 %v13008_v7, 16  ;;  %v3559_v56 = vshrl.u32 %v12992_v58, 16  ;;  %v3556_v62 = vrot.slane %v3554_v4, 1  ;;  %v11697_v4 = vld [vmem:[%s14299_s3 + $0x50] sm:$0xff]   ;;  %v11698_v20 = vld [vmem:[%s14299_s3 + $0x58] sm:$0xff]  }
 0x22d   : > { %v13028_v37 = vsel %vm11852_vm3, %v3319_v23, 0  ;;  %v3568_v9 = vrot.slane %v3566_v2, 1  ;;  %v3571_v11 = vshrl.u32 %v13008_v7, 16  ;;  %v14313_v26 = vmov 0  }
 0x22e   : > { %10161 = vmatmul.mubr.msk.bf16.gmra.mrb[52].mxu1 %vm3619_vm7, %v13003_v27  ;;  %v3564_v39 = vor.u32 %v3563_v60, %v3559_v56  ;;  %v13031_v61 = vsel %vm572_vm4, %v3552_v33, %v3556_v62  ;;  %v3575_v40 = vrot.slane %v3573_v48, 1  ;;  %v3578_v44 = vshll.u32 %v13028_v37, 16  ;;  %v11699_v60 = vld [vmem:[%s14299_s3 + $0x60] sm:$0xff]   ;;  %v11700_v33 = vld [vmem:[%s14299_s3 + $0x68] ss:$0 sps:$4 sm:$0x11]  }
 0x22f   : > { %10164 = vmatprep.mubr.msk.bf16.mxu1 %vm3619_vm7, %v13019_v59  ;;  %v11701_v48 = vld [vmem:[%s14299_s3 + $0x6c] sm:$0xff]   ;;  %v4087_v2 = vrot.slane %v12664_v47, 1  ;;  %v4090_v56 = vrot.slane %v12689_v17, 1  ;;  %v4088_v62 = vrot.slane %v12669_v35, 1  ;;  %v11703_v35 = vld [vmem:[%s14299_s3 + $0x7c] sm:$0xff]  }
 0x230   : > { %v13038_v30 = vsel %vm572_vm4, %v3564_v39, %v3568_v9  ;;  %v3576_v23 = vor.u32 %v3575_v40, %v3571_v11  ;;  %v3580_v52 = vrot.slane %v3578_v44, 1  ;;  %v4091_v39 = vrot.slane %v12685_v49, 1  ;;  %v11702_v40 = vld [vmem:[%s14299_s3 + $0x74] sm:$0xff]  }
 0x231   : > { %v13105_v9 = vsel %vm1252_vm5, %v4087_v2, %v4088_v62  ;;  %v4093_v49 = vrot.slane %v12748_v42, 1  ;;  %v4096_v11 = vrot.slane %v12759_v5, 1  ;;  %v4103_v2 = vrot.slane %v12784_v55, 1 }
 0x232   : > { %v13043_v25 = vsel %vm572_vm4, %v3576_v23, %v3580_v52  ;;  %v13110_v44 = vsel %vm1252_vm5, %v4090_v56, %v4091_v39  ;;  %v4094_v23 = vrot.slane %v12729_v6, 1  ;;  %v4097_v52 = vrot.slane %v12742_v41, 1  ;;  %v11706_v56 = vld [vmem:[%s14299_s3 + $0x90] sm:$0xff]  }
 0x233   : > { %v4105_v55 = vrot.slane %v12878_v22, 1 }
 0x234   : > { %v13133_v6 = vsel %vm1252_vm5, %v4096_v11, %v4097_v52  ;;  %v4114_v52 = vrot.slane %v12947_v34, 1 }
 0x236   : > { %10165 = vmatmul.mubr.msk.bf16.gmra.mrb[56].mxu1 %vm3619_vm7, %v13031_v61 }
 0x237   : > { %10168 = vmatprep.mubr.msk.bf16.mxu1 %vm3619_vm7, %v13038_v30 }
 0x23e   : > { %10169 = vmatmul.mubr.msk.bf16.gmra.mrb[60].mxu1 %vm3619_vm7, %v13043_v25 }
 0x23f   : > { %10182 = vmatprep.mubr.bf16.mxu1 %v14313_v26 }
 0x246   : > { %10183 = vmatmul.mubr.msk.bf16.vlgmr.msra.gmra.mrb[32].mxu1 %vm3619_vm7, %v12664_v47 }
 0x247   : > { %10215 = vmatpush3.bf16.msra.mxu1 %v12794_v12  ;;  %10186 = vmatprep.mubr.msk.bf16.mxu1 %vm3619_vm7, %v12689_v17  ;;  %v4217_v12 = vand.u32 %v11700_v33, %v12624_v21  ;;  %v4099_v33 = vrot.slane %v12817_v18, 1 }
 0x248   : > { %10216 = vmatprep.subr.bf16.mxu1 %v11697_v4 }
 0x24b   : > { %10217 = vmatpush3.bf16.msra.mxu1 %v11697_v4  ;;  %v11704_v4 = vld [vmem:[%s14299_s3 + $0x84] sm:$0xff]  }
 0x24c   : > { %10218 = vmatprep.subr.bf16.mxu1 %v11698_v20 }
 0x24e   : > { %10187 = vmatmul.mubr.msk.bf16.gmra.mrb[36].mxu1 %vm3619_vm7, %v12748_v42 }
 0x24f   : > { %10190 = vmatprep.mubr.msk.bf16.mxu1 %vm3619_vm7, %v12759_v5  ;;  %10219 = vmatpush3.bf16.msra.mxu1 %v11698_v20  ;;  %v11705_v20 = vld [vmem:[%s14299_s3 + $0x8c] ss:$0 sps:$4 sm:$0x11]  }
 0x250   : > { %10220 = vmatprep.subr.bf16.mxu1 %v11699_v60  ;;  %v4453_v41 = vand.u32 %v11705_v20, %v12624_v21 }
 0x253   : > { %10221 = vmatpush3.bf16.msra.mxu1 %v11699_v60  ;;  %v13128_v60 = vsel %vm1252_vm5, %v4093_v49, %v4094_v23  ;;  %v4111_v23 = vrot.slane %v12917_v0, 1 }
 0x254   : > { %10222 = vmatprep.subr.bf16.mxu1 %v4217_v12 }
 0x256   : > { %10191 = vmatmul.mubr.msk.bf16.gmra.mrb[40].mxu1 %vm3619_vm7, %v12817_v18 }
 0x257   : > { %10194 = vmatprep.mubr.msk.bf16.mxu1 %vm3619_vm7, %v12847_v24  ;;  %10223 = vmatpush3.bf16.msra.mxu1 %v4217_v12  ;;  %v4102_v12 = vrot.slane %v12847_v24, 1 }
 0x258   : > { %10256 = vmatprep.subr.bf16.mxu1 %v11701_v48 }
 0x259   : > { %v13151_v39 = vsel %vm1252_vm5, %v4102_v12, %v4103_v2  ;;  %v4123_v2 = vrot.slane %v12981_v13, 1 }
 0x25e   : > { %10195 = vmatmul.mubr.msk.bf16.gmra.mrb[44].mxu1 %vm3619_vm7, %v12878_v22 }
 0x25f   : > { %10198 = vmatprep.mubr.msk.bf16.mxu1 %vm3619_vm7, %v12905_v19 }
 0x266   : > { %10199 = vmatmul.mubr.msk.bf16.gmra.mrb[48].mxu1 %vm3619_vm7, %v12917_v0 }
 0x267   : > { %10202 = vmatprep.mubr.msk.bf16.mxu1 %vm3619_vm7, %v12947_v34 }
 0x26e   : > { %10203 = vmatmul.mubr.msk.bf16.gmra.mrb[52].mxu1 %vm3619_vm7, %v12959_v53 }
 0x26f   : > { %10206 = vmatprep.mubr.msk.bf16.mxu1 %vm3619_vm7, %v12954_v50 }
 0x276   : > { %10207 = vmatmul.mubr.msk.bf16.gmra.mrb[56].mxu1 %vm3619_vm7, %v12981_v13 }
 0x277   : > { %10210 = vmatprep.mubr.msk.bf16.mxu1 %vm3619_vm7, %v12992_v58 }
 0x27e   : > { %10211 = vmatmul.mubr.msk.bf16.gmra.mrb[60].mxu1 %vm3619_vm7, %v13008_v7 }
 0x27f   : > { %10224 = vmatprep.mubr.msk.bf16.mxu1 %vm3619_vm7, %v11813_v3 }
 0x286   : > { %10225 = vmatmul.mubr.msk.bf16.vlgmr.msra.gmra.mrb[32].mxu1 %vm3619_vm7, %v13105_v9 }
 0x287   : > { %10257 = vmatpush3.bf16.msra.mxu1 %v11701_v48  ;;  %10228 = vmatprep.mubr.msk.bf16.mxu1 %vm3619_vm7, %v13110_v44  ;;  %v4100_v48 = vrot.slane %v12798_v10, 1  ;;  %v4108_v10 = vrot.slane %v12905_v19, 1 }
 0x288   : > { %10258 = vmatprep.subr.bf16.mxu1 %v11702_v40 }
 0x289   : > { %v13146_v62 = vsel %vm1252_vm5, %v4099_v33, %v4100_v48  ;;  %v4120_v33 = vrot.slane %v12954_v50, 1 }
 0x28b   : > { %10259 = vmatpush3.bf16.msra.mxu1 %v11702_v40  ;;  %v4106_v40 = vrot.slane %v12863_v28, 1  ;;  %v4112_v28 = vrot.slane %v12893_v51, 1  ;;  %v4118_v51 = vrot.slane %v12965_v57, 1  ;;  %v4124_v57 = vrot.slane %v13000_v15, 1 }
 0x28c   : > { %10260 = vmatprep.subr.bf16.mxu1 %v11703_v35 }
 0x28d   : > { %v13160_v49 = vsel %vm1252_vm5, %v4105_v55, %v4106_v40  ;;  %v4126_v55 = vrot.slane %v12992_v58, 1 }
 0x28e   : > { %10229 = vmatmul.mubr.msk.bf16.gmra.mrb[36].mxu1 %vm3619_vm7, %v13128_v60 }
 0x28f   : > { %10232 = vmatprep.mubr.msk.bf16.mxu1 %vm3619_vm7, %v13133_v6  ;;  %10261 = vmatpush3.bf16.msra.mxu1 %v11703_v35  ;;  %v4109_v35 = vrot.slane %v12830_v29, 1  ;;  %v4115_v29 = vrot.slane %v12889_v43, 1  ;;  %v4121_v43 = vrot.slane %v12969_v32, 1  ;;  %v4127_v32 = vrot.slane %v13012_v63, 1  ;;  %v11707_v63 = vld [vmem:[%s14299_s3 + $0x98] sm:$0xff]  }
 0x290   : > { %10262 = vmatprep.subr.bf16.mxu1 %v11704_v4 }
 0x291   : > { %v13165_v11 = vsel %vm1252_vm5, %v4108_v10, %v4109_v35  ;;  %v13179_v20 = vsel %vm1252_vm5, %v4114_v52, %v4115_v29  ;;  %v13193_v48 = vsel %vm1252_vm5, %v4120_v33, %v4121_v43  ;;  %v13202_v10 = vsel %vm1252_vm5, %v4123_v2, %v4124_v57  ;;  %v11710_v52 = vld [vmem:[%s14299_s3 + $0xb0] ss:$0 sps:$4 sm:$0x11]   ;;  %v3183_v29 = vpop.permute.xlu1 %3182  ;;  %v11713_v57 = vld [vmem:[%s14299_s3 + $0xc4] sm:$0xff]  }
 0x292   : > { %v13207_v40 = vsel %vm1252_vm5, %v4126_v55, %v4127_v32  ;;  %v4129_v35 = vrot.slane %v13008_v7, 1  ;;  %v11715_v32 = vld [vmem:[%s14299_s3 + $0xd4] ss:$0 sps:$4 sm:$0x11]  }
 0x293   : > { %10263 = vmatpush3.bf16.msra.mxu1 %v11704_v4  ;;  %v13174_v4 = vsel %vm1252_vm5, %v4111_v23, %v4112_v28  ;;  %v4130_v23 = vrot.slane %v13028_v37, 1  ;;  %v11708_v37 = vld [vmem:[%s14299_s3 + $0xa0] sm:$0xff]   ;;  %v11711_v28 = vld [vmem:[%s14299_s3 + $0xb4] sm:$0xff]  }
 0x294   : > { %10264 = vmatprep.subr.bf16.mxu1 %v4453_v41 }
 0x295   : > { %v13214_v15 = vsel %vm1252_vm5, %v4129_v35, %v4130_v23  ;;  %v14314_v35 = vld [vmem:[#allocation2_spill] sm:$0xff]  ;;  %v4941_v23 = vand.u32 %v11715_v32, %v12624_v21 }
 0x296   : > { %10233 = vmatmul.mubr.msk.bf16.gmra.mrb[40].mxu1 %vm3619_vm7, %v13146_v62 }
 0x297   : > { %10236 = vmatprep.mubr.msk.bf16.mxu1 %vm3619_vm7, %v13151_v39  ;;  %10265 = vmatpush3.bf16.msra.mxu1 %v4453_v41  ;;  %v4117_v41 = vrot.slane %v12959_v53, 1 }
 0x298   : > { %10298 = vmatprep.subr.bf16.mxu1 %v11706_v56 }
 0x299   : > { %v13188_v12 = vsel %vm1252_vm5, %v4117_v41, %v4118_v51  ;;  %v3232_v41 = vsel %vm3184_vm6, %v12949_v8, %v3183_v29  ;;  %v11712_v8 = vld [vmem:[%s14299_s3 + $0xbc] sm:$0xff]  }
 0x29a   : > { %v3323_v33 = vshrl.u32 %v3232_v41, 16  ;;  %v3326_v43 = vshll.u32 %v3232_v41, 16 }
 0x29c   : > { %v3325_v51 = vrot.slane %v3323_v33, 7 }
 0x29e   : > { %10237 = vmatmul.mubr.msk.bf16.gmra.mrb[44].mxu1 %vm3619_vm7, %v13160_v49  ;;  %v3328_v2 = vor.u32 %v3326_v43, %v3325_v51 }
 0x29f   : > { %10240 = vmatprep.mubr.msk.bf16.mxu1 %vm3619_vm7, %v13165_v11 }
 0x2a0   : > { %v13268_v55 = vsel %vm11852_vm3, 0, %v3328_v2  ;;  %v11718_v2 = vld [vmem:[%s14299_s3 + $0xe8] sm:$0xff]  }
 0x2a1   : > { %v4648_v29 = vshrl.u32 %v13268_v55, 16  ;;  %v4897_v32 = vrot.slane %v13268_v55, 1 }
 0x2a6   : > { %10241 = vmatmul.mubr.msk.bf16.gmra.mrb[48].mxu1 %vm3619_vm7, %v13174_v4 }
 0x2a7   : > { %10244 = vmatprep.mubr.msk.bf16.mxu1 %vm3619_vm7, %v13179_v20 }
 0x2ae   : > { %10245 = vmatmul.mubr.msk.bf16.gmra.mrb[52].mxu1 %vm3619_vm7, %v13188_v12 }
 0x2af   : > { %10248 = vmatprep.mubr.msk.bf16.mxu1 %vm3619_vm7, %v13193_v48 }
 0x2b6   : > { %10249 = vmatmul.mubr.msk.bf16.gmra.mrb[56].mxu1 %vm3619_vm7, %v13202_v10 }
 0x2b7   : > { %10252 = vmatprep.mubr.msk.bf16.mxu1 %vm3619_vm7, %v13207_v40 }
 0x2be   : > { %10253 = vmatmul.mubr.msk.bf16.gmra.mrb[60].mxu1 %vm3619_vm7, %v13214_v15 }
 0x2bf   : > { %10266 = vmatprep.mubr.msk.bf16.mxu1 %vm3619_vm7, %v12664_v47  ;;  %v11709_v47 = vld [vmem:[%s14299_s3 + $0xa8] sm:$0xff]  }
 0x2c6   : > { %10267 = vmatmul.mubr.msk.bf16.vlgmr.msra.gmra.mrb[32].mxu1 %vm3619_vm7, %v12689_v17 }
 0x2c7   : > { %10299 = vmatpush3.bf16.msra.mxu1 %v11706_v56  ;;  %10270 = vmatprep.mubr.msk.bf16.mxu1 %vm3619_vm7, %v12748_v42  ;;  %v4700_v56 = vand.u32 %v11710_v52, %v12624_v21  ;;  %v3392_v52 = vsel %vm11852_vm3, %v3325_v51, 0  ;;  %v11717_v51 = vld [vmem:[%s14299_s3 + $0xe0] sm:$0xff]  }
 0x2c8   : > { %10300 = vmatprep.subr.bf16.mxu1 %v11707_v63 }
 0x2cb   : > { %10301 = vmatpush3.bf16.msra.mxu1 %v11707_v63  ;;  %v11716_v63 = vld [vmem:[%s14299_s3 + $0xd8] sm:$0xff]  }
 0x2cc   : > { %10302 = vmatprep.subr.bf16.mxu1 %v11708_v37 }
 0x2ce   : > { %10271 = vmatmul.mubr.msk.bf16.gmra.mrb[36].mxu1 %vm3619_vm7, %v12759_v5 }
 0x2cf   : > { %10274 = vmatprep.mubr.msk.bf16.mxu1 %vm3619_vm7, %v12817_v18  ;;  %10303 = vmatpush3.bf16.msra.mxu1 %v11708_v37  ;;  %v14315_v37 = vld [vmem:[#allocation3_spill] sm:$0xff] }
 0x2d0   : > { %10304 = vmatprep.subr.bf16.mxu1 %v11709_v47 }
 0x2d3   : > { %10305 = vmatpush3.bf16.msra.mxu1 %v11709_v47  ;;  %v4650_v47 = vshll.u32 %v13268_v55, 16 }
 0x2d4   : > { %10306 = vmatprep.subr.bf16.mxu1 %v4700_v56 }
 0x2d6   : > { %10275 = vmatmul.mubr.msk.bf16.gmra.mrb[40].mxu1 %vm3619_vm7, %v12847_v24 }
 0x2d7   : > { %10278 = vmatprep.mubr.msk.bf16.mxu1 %vm3619_vm7, %v12878_v22  ;;  %10307 = vmatpush3.bf16.msra.mxu1 %v4700_v56  ;;  %v4652_v56 = vrot.slane %v4650_v47, 1  ;;  %v11722_v47 = vld [vmem:[%s14299_s3 + $0x104] sm:$0xff]  }
 0x2d8   : > { %10340 = vmatprep.subr.bf16.mxu1 %v11711_v28 }
 0x2d9   : > { %v4653_v41 = vor.u32 %v4652_v56, %v4648_v29  ;;  %v11725_v56 = vld [vmem:[%s14299_s3 + $0x11c] ss:$0 sps:$4 sm:$0x11]  }
 0x2de   : > { %10279 = vmatmul.mubr.msk.bf16.gmra.mrb[44].mxu1 %vm3619_vm7, %v12905_v19 }
 0x2df   : > { %10282 = vmatprep.mubr.msk.bf16.mxu1 %vm3619_vm7, %v12917_v0 }
 0x2e6   : > { %10283 = vmatmul.mubr.msk.bf16.gmra.mrb[48].mxu1 %vm3619_vm7, %v12947_v34 }
 0x2e7   : > { %10286 = vmatprep.mubr.msk.bf16.mxu1 %vm3619_vm7, %v12959_v53 }
 0x2ee   : > { %10287 = vmatmul.mubr.msk.bf16.gmra.mrb[52].mxu1 %vm3619_vm7, %v12954_v50 }
 0x2ef   : > { %10290 = vmatprep.mubr.msk.bf16.mxu1 %vm3619_vm7, %v12981_v13 }
 0x2f6   : > { %10291 = vmatmul.mubr.msk.bf16.gmra.mrb[56].mxu1 %vm3619_vm7, %v12992_v58 }
 0x2f7   : > { %10294 = vmatprep.mubr.msk.bf16.mxu1 %vm3619_vm7, %v13008_v7 }
 0x2fe   : > { %10295 = vmatmul.mubr.msk.bf16.gmra.mrb[60].mxu1 %vm3619_vm7, %v13268_v55 }
 0x2ff   : > { %10308 = vmatprep.mubr.msk.bf16.mxu1 %vm3619_vm7, %v12702_v16  ;;  %v11714_v16 = vld [vmem:[%s14299_s3 + $0xcc] sm:$0xff]  }
 0x306   : > { %10309 = vmatmul.mubr.msk.bf16.vlgmr.msra.gmra.mrb[32].mxu1 %vm3619_vm7, %v12752_v38 }
 0x307   : > { %10341 = vmatpush3.bf16.msra.mxu1 %v11711_v28  ;;  %10312 = vmatprep.mubr.msk.bf16.mxu1 %vm3619_vm7, %v12809_v36  ;;  %v4655_v28 = vshll.u32 %v3392_v52, 16 }
 0x308   : > { %10342 = vmatprep.subr.bf16.mxu1 %v11712_v8 }
 0x309   : > { %v4657_v33 = vrot.slane %v4655_v28, 1 }
 0x30b   : > { %10343 = vmatpush3.bf16.msra.mxu1 %v11712_v8  ;;  %v13323_v43 = vsel %vm572_vm4, %v4653_v41, %v4657_v33  ;;  %v11720_v8 = vld [vmem:[%s14299_s3 + $0xf8] ss:$0 sps:$4 sm:$0x11]  }
 0x30c   : > { %10344 = vmatprep.subr.bf16.mxu1 %v11713_v57 }
 0x30e   : > { %10313 = vmatmul.mubr.msk.bf16.gmra.mrb[36].mxu1 %vm3619_vm7, %v14314_v35 }
 0x30f   : > { %10316 = vmatprep.mubr.msk.bf16.mxu1 %vm3619_vm7, %v12883_v46  ;;  %10345 = vmatpush3.bf16.msra.mxu1 %v11713_v57  ;;  %v5174_v57 = vand.u32 %v11720_v8, %v12624_v21 }
 0x310   : > { %10346 = vmatprep.subr.bf16.mxu1 %v11714_v16 }
 0x313   : > { %10347 = vmatpush3.bf16.msra.mxu1 %v11714_v16  ;;  %v11721_v16 = vld [vmem:[%s14299_s3 + $0xfc] sm:$0xff]  }
 0x314   : > { %10348 = vmatprep.subr.bf16.mxu1 %v4941_v23 }
 0x316   : > { %10317 = vmatmul.mubr.msk.bf16.gmra.mrb[40].mxu1 %vm3619_vm7, %v14315_v37 }
 0x317   : > { %10320 = vmatprep.mubr.msk.bf16.mxu1 %vm3619_vm7, %v12931_v1  ;;  %10349 = vmatpush3.bf16.msra.mxu1 %v4941_v23  ;;  %v4898_v23 = vrot.slane %v3392_v52, 1  ;;  %v11723_v52 = vld [vmem:[%s14299_s3 + $0x10c] sm:$0xff]  }
 0x318   : > { %10382 = vmatprep.subr.bf16.mxu1 %v11716_v63 }
 0x31e   : > { %10321 = vmatmul.mubr.msk.bf16.gmra.mrb[44].mxu1 %vm3619_vm7, %v12939_v54 }
 0x31f   : > { %10324 = vmatprep.mubr.msk.bf16.mxu1 %vm3619_vm7, %v12977_v31 }
 0x326   : > { %10325 = vmatmul.mubr.msk.bf16.gmra.mrb[48].mxu1 %vm3619_vm7, %v12987_v45 }
 0x327   : > { %10328 = vmatprep.mubr.msk.bf16.mxu1 %vm3619_vm7, %v13003_v27 }
 0x32e   : > { %10329 = vmatmul.mubr.msk.bf16.gmra.mrb[52].mxu1 %vm3619_vm7, %v13019_v59 }
 0x32f   : > { %10332 = vmatprep.mubr.msk.bf16.mxu1 %vm3619_vm7, %v13031_v61 }
 0x336   : > { %10333 = vmatmul.mubr.msk.bf16.gmra.mrb[56].mxu1 %vm3619_vm7, %v13038_v30 }
 0x337   : > { %10336 = vmatprep.mubr.msk.bf16.mxu1 %vm3619_vm7, %v13043_v25 }
 0x33e   : > { %10337 = vmatmul.mubr.msk.bf16.gmra.mrb[60].mxu1 %vm3619_vm7, %v13323_v43 }
 0x33f   : > { %10350 = vmatprep.mubr.msk.bf16.mxu1 %vm3619_vm7, %v13105_v9  ;;  %v11719_v9 = vld [vmem:[%s14299_s3 + $0xf0] sm:$0xff]  }
 0x346   : > { %10351 = vmatmul.mubr.msk.bf16.vlgmr.msra.gmra.mrb[32].mxu1 %vm3619_vm7, %v13110_v44 }
 0x347   : > { %10383 = vmatpush3.bf16.msra.mxu1 %v11716_v63  ;;  %10354 = vmatprep.mubr.msk.bf16.mxu1 %vm3619_vm7, %v13128_v60  ;;  %v13375_v63 = vsel %vm1252_vm5, %v4897_v32, %v4898_v23 }
 0x348   : > { %10384 = vmatprep.subr.bf16.mxu1 %v11717_v51 }
 0x34b   : > { %10385 = vmatpush3.bf16.msra.mxu1 %v11717_v51 }
 0x34c   : > { %10386 = vmatprep.subr.bf16.mxu1 %v11718_v2 }
 0x34e   : > { %10355 = vmatmul.mubr.msk.bf16.gmra.mrb[36].mxu1 %vm3619_vm7, %v13133_v6 }
 0x34f   : > { %10358 = vmatprep.mubr.msk.bf16.mxu1 %vm3619_vm7, %v13146_v62  ;;  %10387 = vmatpush3.bf16.msra.mxu1 %v11718_v2 }
 0x350   : > { %10388 = vmatprep.subr.bf16.mxu1 %v11719_v9 }
 0x353   : > { %10389 = vmatpush3.bf16.msra.mxu1 %v11719_v9 }
 0x354   : > { %10390 = vmatprep.subr.bf16.mxu1 %v5174_v57 }
 0x356   : > { %10359 = vmatmul.mubr.msk.bf16.gmra.mrb[40].mxu1 %vm3619_vm7, %v13151_v39 }
 0x357   : > { %10362 = vmatprep.mubr.msk.bf16.mxu1 %vm3619_vm7, %v13160_v49  ;;  %10391 = vmatpush3.bf16.msra.mxu1 %v5174_v57 }
 0x358   : > { %10424 = vmatprep.subr.bf16.mxu1 %v11721_v16 }
 0x35e   : > { %10363 = vmatmul.mubr.msk.bf16.gmra.mrb[44].mxu1 %vm3619_vm7, %v13165_v11 }
 0x35f   : > { %10366 = vmatprep.mubr.msk.bf16.mxu1 %vm3619_vm7, %v13174_v4 }
 0x366   : > { %10367 = vmatmul.mubr.msk.bf16.gmra.mrb[48].mxu1 %vm3619_vm7, %v13179_v20 }
 0x367   : > { %10370 = vmatprep.mubr.msk.bf16.mxu1 %vm3619_vm7, %v13188_v12 }
 0x36e   : > { %10371 = vmatmul.mubr.msk.bf16.gmra.mrb[52].mxu1 %vm3619_vm7, %v13193_v48 }
 0x36f   : > { %10374 = vmatprep.mubr.msk.bf16.mxu1 %vm3619_vm7, %v13202_v10 }
 0x376   : > { %10375 = vmatmul.mubr.msk.bf16.gmra.mrb[56].mxu1 %vm3619_vm7, %v13207_v40 }
 0x377   : > { %10378 = vmatprep.mubr.msk.bf16.mxu1 %vm3619_vm7, %v13214_v15 }
 0x37e   : > { %10379 = vmatmul.mubr.msk.bf16.gmra.mrb[60].mxu1 %vm3619_vm7, %v13375_v63 }
 0x37f   : > { %10392 = vmatprep.mubr.msk.bf16.mxu1 %vm3619_vm7, %v12689_v17  ;;  %v11724_v17 = vld [vmem:[%s14299_s3 + $0x114] sm:$0xff]  }
 0x386   : > { %10393 = vmatmul.mubr.msk.bf16.vlgmr.msra.gmra.mrb[32].mxu1 %vm3619_vm7, %v12748_v42  ;;  %v5407_v42 = vand.u32 %v11725_v56, %v12624_v21 }
 0x387   : > { %10425 = vmatpush3.bf16.msra.mxu1 %v11721_v16  ;;  %10396 = vmatprep.mubr.msk.bf16.mxu1 %vm3619_vm7, %v12759_v5  ;;  %v11726_v5 = vld [vmem:[%s14299_s3 + $0x120] sm:$0xff]  }
 0x388   : > { %10426 = vmatprep.subr.bf16.mxu1 %v11722_v47 }
 0x38b   : > { %10427 = vmatpush3.bf16.msra.mxu1 %v11722_v47 }
 0x38c   : > { %10428 = vmatprep.subr.bf16.mxu1 %v11723_v52 }
 0x38e   : > { %10397 = vmatmul.mubr.msk.bf16.gmra.mrb[36].mxu1 %vm3619_vm7, %v12817_v18  ;;  %v11731_v18 = vld [vmem:[%s14300_s4 + $0x10] sm:$0xff]  }
 0x38f   : > { %10400 = vmatprep.mubr.msk.bf16.mxu1 %vm3619_vm7, %v12847_v24  ;;  %10429 = vmatpush3.bf16.msra.mxu1 %v11723_v52  ;;  %v11732_v24 = vld [vmem:[%s14300_s4 + $0x18] sm:$0xff]  }
 0x390   : > { %10430 = vmatprep.subr.bf16.mxu1 %v11724_v17  ;;  %10508 = vmatprep.subr.bf16.mxu0 %v11731_v18 }
 0x391   : > { %10509 = vmatpush3.bf16.msra.mxu0 %v11731_v18 }
 0x392   : > { %10510 = vmatprep.subr.bf16.mxu0 %v11732_v24 }
 0x393   : > { %10431 = vmatpush3.bf16.msra.mxu1 %v11724_v17 }
 0x394   : > { %10432 = vmatprep.subr.bf16.mxu1 %v5407_v42 }
 0x395   : > { %10511 = vmatpush3.bf16.msra.mxu0 %v11732_v24 }
 0x396   : > { %10401 = vmatmul.mubr.msk.bf16.gmra.mrb[40].mxu1 %vm3619_vm7, %v12878_v22  ;;  %v11727_v22 = vld [vmem:[%s14299_s3 + $0x128] sm:$0xff]  }
 0x397   : > { %10404 = vmatprep.mubr.msk.bf16.mxu1 %vm3619_vm7, %v12905_v19  ;;  %10433 = vmatpush3.bf16.msra.mxu1 %v5407_v42  ;;  %v11729_v19 = vld [vmem:[%s14299_s3 + $0x138] sm:$0xff]  }
 0x398   : > { %10466 = vmatprep.subr.bf16.mxu1 %v11726_v5 }
 0x39e   : > { %10405 = vmatmul.mubr.msk.bf16.gmra.mrb[44].mxu1 %vm3619_vm7, %v12917_v0  ;;  %v11730_v0 = vld [vmem:[%s14299_s3 + $0x140] ss:$0 sps:$4 sm:$0x11]  }
 0x39f   : > { %10408 = vmatprep.mubr.msk.bf16.mxu1 %vm3619_vm7, %v12947_v34 }
 0x3a6   : > { %10409 = vmatmul.mubr.msk.bf16.gmra.mrb[48].mxu1 %vm3619_vm7, %v12959_v53 }
 0x3a7   : > { %10412 = vmatprep.mubr.msk.bf16.mxu1 %vm3619_vm7, %v12954_v50 }
 0x3ae   : > { %10413 = vmatmul.mubr.msk.bf16.gmra.mrb[52].mxu1 %vm3619_vm7, %v12981_v13 }
 0x3af   : > { %10416 = vmatprep.mubr.msk.bf16.mxu1 %vm3619_vm7, %v12992_v58 }
 0x3b6   : > { %10417 = vmatmul.mubr.msk.bf16.gmra.mrb[56].mxu1 %vm3619_vm7, %v13008_v7 }
 0x3b7   : > { %10420 = vmatprep.mubr.msk.bf16.mxu1 %vm3619_vm7, %v13268_v55 }
 0x3be   : > { %10421 = vmatmul.mubr.bf16.gmra.mrb[60].mxu1 %v14313_v26 }
 0x3bf   : > { %10434 = vmatprep.mubr.msk.bf16.mxu1 %vm3619_vm7, %v12752_v38  ;;  %v11728_v38 = vld [vmem:[%s14299_s3 + $0x130] sm:$0xff]  }
 0x3c6   : > { %10435 = vmatmul.mubr.msk.bf16.vlgmr.msra.gmra.mrb[32].mxu1 %vm3619_vm7, %v12809_v36  ;;  %v5640_v36 = vand.u32 %v11730_v0, %v12624_v21  ;;  %v13512_v21 = vld [vmem:[%s14300_s4] sm:$0xff]  }
 0x3c7   : > { %10467 = vmatpush3.bf16.msra.mxu1 %v11726_v5  ;;  %10438 = vmatprep.mubr.msk.bf16.mxu1 %vm3619_vm7, %v14314_v35 }
 0x3c8   : > { %10468 = vmatprep.subr.bf16.mxu1 %v11727_v22  ;;  %10544 = vmatprep.subr.bf16.mxu0 %v13512_v21 }
 0x3cb   : > { %10469 = vmatpush3.bf16.msra.mxu1 %v11727_v22 }
 0x3cc   : > { %10470 = vmatprep.subr.bf16.mxu1 %v11728_v38 }
 0x3ce   : > { %10439 = vmatmul.mubr.msk.bf16.gmra.mrb[36].mxu1 %vm3619_vm7, %v12883_v46  ;;  %v13518_v46 = vld [vmem:[%s14301_s5 + $0x1] ss:$0 sm:$0xff] }
 0x3cf   : > { %10442 = vmatprep.mubr.msk.bf16.mxu1 %vm3619_vm7, %v14315_v37  ;;  %10471 = vmatpush3.bf16.msra.mxu1 %v11728_v38 }
 0x3d0   : > { %10472 = vmatprep.subr.bf16.mxu1 %v11729_v19 }
 0x3d3   : > { %10473 = vmatpush3.bf16.msra.mxu1 %v11729_v19 }
 0x3d4   : > { %10474 = vmatprep.subr.bf16.mxu1 %v5640_v36 }
 0x3d6   : > { %10443 = vmatmul.mubr.msk.bf16.gmra.mrb[40].mxu1 %vm3619_vm7, %v12931_v1 }
 0x3d7   : > { %10446 = vmatprep.mubr.msk.bf16.mxu1 %vm3619_vm7, %v12939_v54  ;;  %10475 = vmatpush3.bf16.msra.mxu1 %v5640_v36 }
 0x3de   : > { %10447 = vmatmul.mubr.msk.bf16.gmra.mrb[44].mxu1 %vm3619_vm7, %v12977_v31 }
 0x3df   : > { %10450 = vmatprep.mubr.msk.bf16.mxu1 %vm3619_vm7, %v12987_v45 }
 0x3e6   : > { %10451 = vmatmul.mubr.msk.bf16.gmra.mrb[48].mxu1 %vm3619_vm7, %v13003_v27 }
 0x3e7   : > { %10454 = vmatprep.mubr.msk.bf16.mxu1 %vm3619_vm7, %v13019_v59 }
 0x3ee   : > { %10455 = vmatmul.mubr.msk.bf16.gmra.mrb[52].mxu1 %vm3619_vm7, %v13031_v61 }
 0x3ef   : > { %10458 = vmatprep.mubr.msk.bf16.mxu1 %vm3619_vm7, %v13038_v30 }
 0x3f6   : > { %10459 = vmatmul.mubr.msk.bf16.gmra.mrb[56].mxu1 %vm3619_vm7, %v13043_v25 }
 0x3f7   : > { %10462 = vmatprep.mubr.msk.bf16.mxu1 %vm3619_vm7, %v13323_v43 }
 0x3fe   : > { %10463 = vmatmul.mubr.msk.bf16.gmra.mrb[60].mxu1 %vm3619_vm7, %v11813_v3 }
 0x3ff   : > { %10476 = vmatprep.mubr.msk.bf16.mxu1 %vm3619_vm7, %v13110_v44 }
 0x406   : > { %10477 = vmatmul.mubr.msk.bf16.vlgmr.msra.gmra.mrb[32].mxu1 %vm3619_vm7, %v13128_v60 }
 0x407   : > { %10480 = vmatprep.mubr.msk.bf16.mxu1 %vm3619_vm7, %v13133_v6 }
 0x40e   : > { %10481 = vmatmul.mubr.msk.bf16.gmra.mrb[36].mxu1 %vm3619_vm7, %v13146_v62 }
 0x40f   : > { %10484 = vmatprep.mubr.msk.bf16.mxu1 %vm3619_vm7, %v13151_v39 }
 0x416   : > { %10485 = vmatmul.mubr.msk.bf16.gmra.mrb[40].mxu1 %vm3619_vm7, %v13160_v49 }
 0x417   : > { %10488 = vmatprep.mubr.msk.bf16.mxu1 %vm3619_vm7, %v13165_v11 }
 0x41e   : > { %10489 = vmatmul.mubr.msk.bf16.gmra.mrb[44].mxu1 %vm3619_vm7, %v13174_v4 }
 0x41f   : > { %10492 = vmatprep.mubr.msk.bf16.mxu1 %vm3619_vm7, %v13179_v20 }
 0x426   : > { %10493 = vmatmul.mubr.msk.bf16.gmra.mrb[48].mxu1 %vm3619_vm7, %v13188_v12 }
 0x427   : > { %10496 = vmatprep.mubr.msk.bf16.mxu1 %vm3619_vm7, %v13193_v48 }
 0x42e   : > { %10497 = vmatmul.mubr.msk.bf16.gmra.mrb[52].mxu1 %vm3619_vm7, %v13202_v10 }
 0x42f   : > { %10500 = vmatprep.mubr.msk.bf16.mxu1 %vm3619_vm7, %v13207_v40 }
 0x436   : > { %10501 = vmatmul.mubr.msk.bf16.gmra.mrb[56].mxu1 %vm3619_vm7, %v13214_v15 }
 0x437   : > { %10504 = vmatprep.mubr.msk.bf16.mxu1 %vm3619_vm7, %v13375_v63 }
 0x43e   : > { %10505 = vmatmul.mubr.msk.bf16.gmra.mrb[60].mxu1 %vm3619_vm7, %v11813_v3 }
 0x4d9   : > { %v10478_v1 = vpop.f32.mrb[32].mxu1 }
 0x4da   : > { %v5842_v54 = vadd.f32 %v10478_v1, %v13518_v46  ;;  %v5676_v34 = vpop.f32.mrb[33].mxu1 }
 0x4db   : > { %v5840_v50 = vadd.f32 %v13518_v46, %v5676_v34  ;;  %v10479_v53 = vpop.f32.mrb[34].mxu1 }
 0x4dc   : > { %v5843_v31 = vadd.f32 %v10479_v53, %v13518_v46  ;;  %v5679_v13 = vpop.f32.mrb[35].mxu1  ;;  %v5874_v58 = vmax.f32 %v5842_v54, 0.0 }
 0x4dd   : > { %v5841_v45 = vadd.f32 %v13518_v46, %v5679_v13  ;;  %v5872_v7 = vmax.f32 %v5840_v50, 0.0 }
 0x4de   : > { %v5875_v27 = vmax.f32 %v5843_v31, 0.0 }
 0x4df   : > { %v5873_v59 = vmax.f32 %v5841_v45, 0.0 }
 0x4e0   : > { %v5905_v61 = vpack.c.bf16 %v5875_v27, %v5874_v58 }
 0x4e1   : > { %v5904_v30 = vpack.c.bf16 %v5873_v59, %v5872_v7  ;;  %v10482_v25 = vpop.f32.mrb[36].mxu1  ;;  %v11734_v7 = vld [vmem:[%s14300_s4 + $0x8] sm:$0xff]  }
 0x4e2   : > { %v5928_v44 = vshrl.u32 %v5905_v61, 16  ;;  %v5846_v60 = vadd.f32 %v10482_v25, %v13518_v46  ;;  %v5692_v6 = vpop.f32.mrb[37].mxu1  ;;  %v5931_v4 = vshll.u32 %v5905_v61, 16 }
 0x4e3   : > { %v5921_v62 = vshrl.u32 %v5904_v30, 16  ;;  %v5844_v39 = vadd.f32 %v13518_v46, %v5692_v6  ;;  %v10483_v49 = vpop.f32.mrb[38].mxu1  ;;  %v5924_v10 = vshll.u32 %v5904_v30, 16 }
 0x4e4   : > { %v5930_v11 = vrot.slane %v5928_v44, 7  ;;  %v5847_v20 = vadd.f32 %v10483_v49, %v13518_v46  ;;  %v5695_v12 = vpop.f32.mrb[39].mxu1  ;;  %v5878_v55 = vmax.f32 %v5846_v60, 0.0 }
 0x4e5   : > { %v5923_v48 = vrot.slane %v5921_v62, 7  ;;  %v5845_v40 = vadd.f32 %v13518_v46, %v5695_v12  ;;  %v5876_v35 = vmax.f32 %v5844_v39, 0.0 }
 0x4e6   : > { %v5933_v15 = vor.u32 %v5931_v4, %v5930_v11  ;;  %v5879_v37 = vmax.f32 %v5847_v20, 0.0  ;;  %v13530_v28 = vsel %vm11852_vm3, %v5930_v11, 0 }
 0x4e7   : > { %v5926_v29 = vor.u32 %v5924_v10, %v5923_v48  ;;  %v13534_v41 = vsel %vm11852_vm3, %v5923_v48, 0  ;;  %v5877_v33 = vmax.f32 %v5845_v40, 0.0  ;;  %v6120_v47 = vshll.u32 %v13530_v28, 16 }
 0x4e8   : > { %v13538_v43 = vsel %vm11852_vm3, 0, %v5933_v15  ;;  %v5907_v51 = vpack.c.bf16 %v5879_v37, %v5878_v55  ;;  %v6108_v9 = vshll.u32 %v13534_v41, 16  ;;  %v13584_v55 = vld [vmem:[%s14300_s4 + $0x20] sm:$0xff]  }
 0x4e9   : > { %v13542_v2 = vsel %vm11852_vm3, 0, %v5926_v29  ;;  %v5906_v8 = vpack.c.bf16 %v5877_v33, %v5876_v35  ;;  %v10486_v57 = vpop.f32.mrb[40].mxu1  ;;  %v6113_v63 = vshrl.u32 %v13538_v43, 16  ;;  %v6115_v5 = vshll.u32 %v13538_v43, 16 }
 0x4ea   : > { %v6103_v16 = vshll.u32 %v13542_v2, 16  ;;  %v5942_v32 = vshrl.u32 %v5907_v51, 16  ;;  %v5708_v23 = vpop.f32.mrb[41].mxu1  ;;  %v5850_v17 = vadd.f32 %v10486_v57, %v13518_v46  ;;  %v6101_v38 = vshrl.u32 %v13542_v2, 16 }
 0x4eb   : > { %v5935_v52 = vshrl.u32 %v5906_v8, 16  ;;  %v5848_v56 = vadd.f32 %v13518_v46, %v5708_v23  ;;  %v10487_v42 = vpop.f32.mrb[42].mxu1  ;;  %v6110_v0 = vrot.slane %v6108_v9, 1  ;;  %v5938_v1 = vshll.u32 %v5906_v8, 16 }
 0x4ec   : > { %v5944_v18 = vrot.slane %v5942_v32, 7  ;;  %v5851_v24 = vadd.f32 %v10487_v42, %v13518_v46  ;;  %v5711_v22 = vpop.f32.mrb[43].mxu1  ;;  %v6105_v19 = vrot.slane %v6103_v16, 1  ;;  %v5945_v34 = vshll.u32 %v5907_v51, 16 }
 0x4ed   : > { %v5937_v36 = vrot.slane %v5935_v52, 7  ;;  %v5849_v54 = vadd.f32 %v13518_v46, %v5711_v22  ;;  %v5882_v50 = vmax.f32 %v5850_v17, 0.0  ;;  %v5880_v45 = vmax.f32 %v5848_v56, 0.0 }
 0x4ee   : > { %v5883_v53 = vmax.f32 %v5851_v24, 0.0  ;;  %v6106_v31 = vor.u32 %v6105_v19, %v6101_v38  ;;  %v6117_v27 = vrot.slane %v6115_v5, 1  ;;  %v5947_v59 = vor.u32 %v5945_v34, %v5944_v18 }
 0x4ef   : > { %v5940_v13 = vor.u32 %v5938_v1, %v5937_v36  ;;  %v5881_v58 = vmax.f32 %v5849_v54, 0.0  ;;  %v13559_v61 = vsel %vm11852_vm3, %v5937_v36, 0  ;;  %v6122_v39 = vrot.slane %v6120_v47, 1 }
 0x4f0   : > { %v5909_v30 = vpack.c.bf16 %v5883_v53, %v5882_v50  ;;  %v13562_v25 = vsel %vm572_vm4, %v6106_v31, %v6110_v0  ;;  %v6118_v62 = vor.u32 %v6117_v27, %v6113_v63  ;;  %v13572_v49 = vsel %vm11852_vm3, %v5944_v18, 0 }
 0x4f1   : > { %v13566_v44 = vsel %vm11852_vm3, 0, %v5940_v13  ;;  %v5908_v60 = vpack.c.bf16 %v5881_v58, %v5880_v45  ;;  %v10490_v6 = vpop.f32.mrb[44].mxu1  ;;  %10513 = vmatmul.mubr.msk.bf16.vlgmr.msra.gmra.mrb[32].mxu0 %vm3184_vm6, %v13562_v25  ;;  %v6132_v15 = vshll.u32 %v13559_v61, 16  ;;  %v13588_v35 = vsel %vm11852_vm3, 0, %v5947_v59 }
 0x4f2   : > { %v5956_v11 = vshrl.u32 %v5909_v30, 16  ;;  %v5854_v4 = vadd.f32 %v10490_v6, %v13518_v46  ;;  %10545 = vmatpush3.bf16.msra.mxu0 %v13512_v21  ;;  %v5724_v20 = vpop.f32.mrb[45].mxu1  ;;  %v13578_v10 = vsel %vm572_vm4, %v6118_v62, %v6122_v39  ;;  %v6127_v33 = vshll.u32 %v13566_v44, 16 }
 0x4f3   : > { %v5949_v12 = vshrl.u32 %v5908_v60, 16  ;;  %v5852_v48 = vadd.f32 %v13518_v46, %v5724_v20  ;;  %v10491_v40 = vpop.f32.mrb[46].mxu1  ;;  %10546 = vmatprep.subr.bf16.mxu0 %v11734_v7  ;;  %10516 = vmatprep.mubr.msk.bf16.mxu0 %vm3184_vm6, %v13578_v10  ;;  %v5959_v51 = vshll.u32 %v5909_v30, 16  ;;  %v6125_v57 = vshrl.u32 %v13566_v44, 16 }
 0x4f4   : > { %v5958_v21 = vrot.slane %v5956_v11, 7  ;;  %v5855_v37 = vadd.f32 %v10491_v40, %v13518_v46  ;;  %v5727_v29 = vpop.f32.mrb[47].mxu1  ;;  %v5952_v16 = vshll.u32 %v5908_v60, 16  ;;  %v5886_v32 = vmax.f32 %v5854_v4, 0.0 }
 0x4f5   : > { %v5951_v9 = vrot.slane %v5949_v12, 7  ;;  %v5853_v8 = vadd.f32 %v13518_v46, %v5727_v29  ;;  %v6129_v63 = vrot.slane %v6127_v33, 1  ;;  %v5884_v52 = vmax.f32 %v5852_v48, 0.0 }
 0x4f6   : > { %v5887_v23 = vmax.f32 %v5855_v37, 0.0  ;;  %10547 = vmatpush3.bf16.msra.mxu0 %v11734_v7  ;;  %v5961_v47 = vor.u32 %v5959_v51, %v5958_v21  ;;  %v6134_v56 = vrot.slane %v6132_v15, 1  ;;  %v6139_v24 = vshll.u32 %v13588_v35, 16 }
 0x4f7   : > { %v5885_v17 = vmax.f32 %v5853_v8, 0.0  ;;  %10580 = vmatprep.subr.bf16.mxu0 %v13584_v55  ;;  %v5954_v42 = vor.u32 %v5952_v16, %v5951_v9  ;;  %v6130_v18 = vor.u32 %v6129_v63, %v6125_v57  ;;  %v13600_v22 = vsel %vm11852_vm3, %v5958_v21, 0 }
 0x4f8   : > { %v5911_v5 = vpack.c.bf16 %v5887_v23, %v5886_v32  ;;  %v13604_v38 = vsel %vm11852_vm3, %v5951_v9, 0  ;;  %v6144_v36 = vshll.u32 %v13572_v49, 16  ;;  %v6137_v53 = vshrl.u32 %v13588_v35, 16 }
 0x4f9   : > { %v5910_v19 = vpack.c.bf16 %v5885_v17, %v5884_v52  ;;  %v10494_v0 = vpop.f32.mrb[48].mxu1  ;;  %v13609_v34 = vsel %vm572_vm4, %v6130_v18, %v6134_v56  ;;  %v13614_v31 = vsel %vm11852_vm3, 0, %v5961_v47  ;;  %v6141_v58 = vrot.slane %v6139_v24, 1 }
 0x4fa   : > { %v5970_v1 = vshrl.u32 %v5911_v5, 16  ;;  %v5858_v54 = vadd.f32 %v10494_v0, %v13518_v46  ;;  %v5740_v50 = vpop.f32.mrb[49].mxu1  ;;  %10517 = vmatmul.mubr.msk.bf16.gmra.mrb[36].mxu0 %vm3184_vm6, %v13609_v34  ;;  %v13621_v7 = vsel %vm11852_vm3, 0, %v5954_v42  ;;  %v6146_v11 = vrot.slane %v6144_v36, 1 }
 0x4fb   : > { %v5963_v13 = vshrl.u32 %v5910_v19, 16  ;;  %v5856_v45 = vadd.f32 %v13518_v46, %v5740_v50  ;;  %v10495_v27 = vpop.f32.mrb[50].mxu1  ;;  %v5966_v30 = vshll.u32 %v5910_v19, 16  ;;  %v6142_v39 = vor.u32 %v6141_v58, %v6137_v53 }
 0x4fc   : > { %v5972_v59 = vrot.slane %v5970_v1, 7  ;;  %v5859_v60 = vadd.f32 %v10495_v27, %v13518_v46  ;;  %v5743_v6 = vpop.f32.mrb[51].mxu1  ;;  %v5973_v20 = vshll.u32 %v5911_v5, 16  ;;  %v5890_v12 = vmax.f32 %v5858_v54, 0.0 }
 0x4fd   : > { %v5965_v62 = vrot.slane %v5963_v13, 7  ;;  %v5857_v4 = vadd.f32 %v13518_v46, %v5743_v6  ;;  %v6156_v40 = vshll.u32 %v13604_v38, 16  ;;  %v5888_v21 = vmax.f32 %v5856_v45, 0.0 }
 0x4fe   : > { %v5891_v48 = vmax.f32 %v5859_v60, 0.0  ;;  %v13627_v37 = vsel %vm572_vm4, %v6142_v39, %v6146_v11  ;;  %v5975_v33 = vor.u32 %v5973_v20, %v5972_v59  ;;  %v13631_v51 = vsel %vm11852_vm3, %v5972_v59, 0 }
 0x4ff   : > { %v5968_v15 = vor.u32 %v5966_v30, %v5965_v62  ;;  %v5889_v29 = vmax.f32 %v5857_v4, 0.0  ;;  %10520 = vmatprep.mubr.msk.bf16.mxu0 %vm3184_vm6, %v13627_v37  ;;  %v6151_v8 = vshll.u32 %v13621_v7, 16  ;;  %v13638_v57 = vsel %vm11852_vm3, %v5965_v62, 0 }
 0x500   : > { %v5913_v9 = vpack.c.bf16 %v5891_v48, %v5890_v12  ;;  %v6149_v23 = vshrl.u32 %v13621_v7, 16  ;;  %v6163_v63 = vshll.u32 %v13614_v31, 16  ;;  %v6158_v56 = vrot.slane %v6156_v40, 1 }
 0x501   : > { %v5912_v16 = vpack.c.bf16 %v5889_v29, %v5888_v21  ;;  %v10498_v32 = vpop.f32.mrb[52].mxu1  ;;  %v13644_v47 = vsel %vm11852_vm3, 0, %v5968_v15  ;;  %v6153_v17 = vrot.slane %v6151_v8, 1  ;;  %v6161_v24 = vshrl.u32 %v13614_v31, 16 }
 0x502   : > { %v5984_v52 = vshrl.u32 %v5913_v9, 16  ;;  %v5756_v42 = vpop.f32.mrb[53].mxu1  ;;  %v5862_v18 = vadd.f32 %v10498_v32, %v13518_v46  ;;  %v6165_v19 = vrot.slane %v6163_v63, 1  ;;  %v6168_v50 = vshll.u32 %v13600_v22, 16 }
 0x503   : > { %v5977_v5 = vshrl.u32 %v5912_v16, 16  ;;  %v10499_v0 = vpop.f32.mrb[54].mxu1  ;;  %v6154_v1 = vor.u32 %v6153_v17, %v6149_v23  ;;  %v5860_v54 = vadd.f32 %v13518_v46, %v5756_v42  ;;  %v5980_v45 = vshll.u32 %v5912_v16, 16 }
 0x504   : > { %v5986_v36 = vrot.slane %v5984_v52, 7  ;;  %v5759_v53 = vpop.f32.mrb[55].mxu1  ;;  %v6166_v58 = vor.u32 %v6165_v19, %v6161_v24  ;;  %v5863_v27 = vadd.f32 %v10499_v0, %v13518_v46  ;;  %v13653_v59 = vsel %vm11852_vm3, 0, %v5975_v33 }
 0x505   : > { %v5979_v13 = vrot.slane %v5977_v5, 7  ;;  %v5987_v30 = vshll.u32 %v5913_v9, 16  ;;  %v13656_v60 = vsel %vm572_vm4, %v6154_v1, %v6158_v56  ;;  %v6170_v6 = vrot.slane %v6168_v50, 1 }
 0x506   : > { %v5894_v39 = vmax.f32 %v5862_v18, 0.0  ;;  %10521 = vmatmul.mubr.msk.bf16.gmra.mrb[40].mxu0 %vm3184_vm6, %v13656_v60  ;;  %v5895_v11 = vmax.f32 %v5863_v27, 0.0  ;;  %v5861_v4 = vadd.f32 %v13518_v46, %v5759_v53  ;;  %v5892_v12 = vmax.f32 %v5860_v54, 0.0 }
 0x507   : > { %v5982_v62 = vor.u32 %v5980_v45, %v5979_v13  ;;  %v5989_v20 = vor.u32 %v5987_v30, %v5986_v36  ;;  %v13662_v48 = vsel %vm572_vm4, %v6166_v58, %v6170_v6  ;;  %v6175_v40 = vshll.u32 %v13644_v47, 16 }
 0x508   : > { %v13667_v15 = vsel %vm11852_vm3, %v5986_v36, 0  ;;  %10524 = vmatprep.mubr.msk.bf16.mxu0 %vm3184_vm6, %v13662_v48  ;;  %v5915_v21 = vpack.c.bf16 %v5895_v11, %v5894_v39  ;;  %v5893_v29 = vmax.f32 %v5861_v4, 0.0  ;;  %v6180_v9 = vshll.u32 %v13638_v57, 16 }
 0x509   : > { %v10502_v33 = vpop.f32.mrb[56].mxu1  ;;  %v13674_v8 = vsel %vm11852_vm3, 0, %v5982_v62  ;;  %v6173_v16 = vshrl.u32 %v13644_v47, 16  ;;  %v6177_v32 = vrot.slane %v6175_v40, 1  ;;  %v6187_v63 = vshll.u32 %v13653_v59, 16 }
 0x50a   : > { %v5772_v23 = vpop.f32.mrb[57].mxu1  ;;  %v5998_v52 = vshrl.u32 %v5915_v21, 16  ;;  %v5914_v17 = vpack.c.bf16 %v5893_v29, %v5892_v12  ;;  %v5866_v56 = vadd.f32 %v10502_v33, %v13518_v46  ;;  %v6185_v42 = vshrl.u32 %v13653_v59, 16 }
 0x50b   : > { %v10503_v5 = vpop.f32.mrb[58].mxu1  ;;  %v6001_v18 = vshll.u32 %v5915_v21, 16  ;;  %v6178_v24 = vor.u32 %v6177_v32, %v6173_v16  ;;  %v6182_v19 = vrot.slane %v6180_v9, 1  ;;  %v6189_v0 = vrot.slane %v6187_v63, 1 }
 0x50c   : > { %v5775_v36 = vpop.f32.mrb[59].mxu1  ;;  %v6000_v1 = vrot.slane %v5998_v52, 7  ;;  %v5991_v54 = vshrl.u32 %v5914_v17, 16  ;;  %v5864_v50 = vadd.f32 %v13518_v46, %v5772_v23  ;;  %v6192_v53 = vshll.u32 %v13631_v51, 16 }
 0x50d   : > { %v13684_v45 = vsel %vm11852_vm3, %v5979_v13, 0  ;;  %v13687_v58 = vsel %vm572_vm4, %v6178_v24, %v6182_v19  ;;  %v6190_v27 = vor.u32 %v6189_v0, %v6185_v42  ;;  %v5867_v30 = vadd.f32 %v10503_v5, %v13518_v46 }
 0x50e   : > { %v6003_v6 = vor.u32 %v6001_v18, %v6000_v1  ;;  %v5993_v62 = vrot.slane %v5991_v54, 7  ;;  %v5994_v39 = vshll.u32 %v5914_v17, 16  ;;  %10525 = vmatmul.mubr.msk.bf16.gmra.mrb[44].mxu0 %vm3184_vm6, %v13687_v58  ;;  %v6194_v11 = vrot.slane %v6192_v53, 1 }
 0x50f   : > { %v5898_v4 = vmax.f32 %v5866_v56, 0.0  ;;  %v5899_v12 = vmax.f32 %v5867_v30, 0.0  ;;  %v5865_v40 = vadd.f32 %v13518_v46, %v5775_v36  ;;  %v6199_v13 = vshll.u32 %v13674_v8, 16 }
 0x510   : > { %v13696_v21 = vsel %vm11852_vm3, 0, %v5989_v20  ;;  %v5996_v29 = vor.u32 %v5994_v39, %v5993_v62  ;;  %v5896_v33 = vmax.f32 %v5864_v50, 0.0  ;;  %v13699_v9 = vsel %vm572_vm4, %v6190_v27, %v6194_v11 }
 0x511   : > { %v10506_v16 = vpop.f32.mrb[60].mxu1  ;;  %10528 = vmatprep.mubr.msk.bf16.mxu0 %vm3184_vm6, %v13699_v9  ;;  %v5917_v32 = vpack.c.bf16 %v5899_v12, %v5898_v4  ;;  %v5897_v23 = vmax.f32 %v5865_v40, 0.0  ;;  %v6201_v52 = vrot.slane %v6199_v13, 1  ;;  %v13706_v56 = vsel %vm11852_vm3, 0, %v6003_v6 }
 0x512   : > { %v5870_v63 = vadd.f32 %v10506_v16, %v13518_v46  ;;  %v5788_v17 = vpop.f32.mrb[61].mxu1  ;;  %v6197_v20 = vshrl.u32 %v13674_v8, 16  ;;  %v6204_v42 = vshll.u32 %v13684_v45, 16  ;;  %v13713_v24 = vsel %vm11852_vm3, 0, %v5996_v29 }
 0x513   : > { %v5868_v5 = vadd.f32 %v13518_v46, %v5788_v17  ;;  %v10507_v18 = vpop.f32.mrb[62].mxu1  ;;  %v13717_v19 = vsel %vm11852_vm3, %v5993_v62, 0  ;;  %v6012_v0 = vshrl.u32 %v5917_v32, 16  ;;  %v5916_v36 = vpack.c.bf16 %v5897_v23, %v5896_v33 }
 0x514   : > { %v5791_v54 = vpop.f32.mrb[63].mxu1  ;;  %v6202_v50 = vor.u32 %v6201_v52, %v6197_v20  ;;  %v6206_v53 = vrot.slane %v6204_v42, 1  ;;  %v6209_v27 = vshrl.u32 %v13696_v21, 16  ;;  %v6211_v30 = vshll.u32 %v13696_v21, 16 }
 0x515   : > { %v6014_v6 = vrot.slane %v6012_v0, 7  ;;  %v6015_v39 = vshll.u32 %v5917_v32, 16  ;;  %v6005_v11 = vshrl.u32 %v5916_v36, 16  ;;  %v6216_v4 = vshll.u32 %v13667_v15, 16 }
 0x516   : > { %v13723_v12 = vsel %vm572_vm4, %v6202_v50, %v6206_v53  ;;  %v6213_v40 = vrot.slane %v6211_v30, 1  ;;  %v5871_v62 = vadd.f32 %v10507_v18, %v13518_v46  ;;  %v5869_v13 = vadd.f32 %v13518_v46, %v5791_v54 }
 0x517   : > { %v6007_v29 = vrot.slane %v6005_v11, 7  ;;  %v6008_v33 = vshll.u32 %v5916_v36, 16  ;;  %v5902_v16 = vmax.f32 %v5870_v63, 0.0  ;;  %10529 = vmatmul.mubr.msk.bf16.gmra.mrb[48].mxu0 %vm3184_vm6, %v13723_v12  ;;  %v5900_v23 = vmax.f32 %v5868_v5, 0.0 }
 0x518   : > { %v6214_v52 = vor.u32 %v6213_v40, %v6209_v27  ;;  %v6218_v32 = vrot.slane %v6216_v4, 1  ;;  %v5903_v17 = vmax.f32 %v5871_v62, 0.0  ;;  %v5901_v20 = vmax.f32 %v5869_v13, 0.0 }
 0x519   : > { %v13731_v42 = vsel %vm11852_vm3, %v6000_v1, 0  ;;  %v6017_v0 = vor.u32 %v6015_v39, %v6014_v6  ;;  %v6010_v50 = vor.u32 %v6008_v33, %v6007_v29  ;;  %v6223_v18 = vshll.u32 %v13713_v24, 16 }
 0x51a   : > { %v13735_v46 = vsel %vm572_vm4, %v6214_v52, %v6218_v32  ;;  %v13737_v63 = vpack.c.bf16 %v5903_v17, %v5902_v16  ;;  %v5918_v36 = vpack.c.bf16 %v5901_v20, %v5900_v23  ;;  %v6228_v5 = vshll.u32 %v13717_v19, 16 }
 0x51b   : > { %v13742_v54 = vsel %vm11852_vm3, 0, %v6010_v50  ;;  %10532 = vmatprep.mubr.msk.bf16.mxu0 %vm3184_vm6, %v13735_v46  ;;  %v6221_v1 = vshrl.u32 %v13713_v24, 16  ;;  %v6225_v53 = vrot.slane %v6223_v18, 1  ;;  %v6235_v27 = vshll.u32 %v13706_v56, 16 }
 0x51c   : > { %v13750_v30 = vsel %vm11852_vm3, %v6014_v6, 0  ;;  %v13754_v39 = vsel %vm11852_vm3, %v6007_v29, 0  ;;  %v6019_v11 = vshrl.u32 %v5918_v36, 16  ;;  %v6233_v4 = vshrl.u32 %v13706_v56, 16 }
 0x51d   : > { %v6226_v40 = vor.u32 %v6225_v53, %v6221_v1  ;;  %v6230_v62 = vrot.slane %v6228_v5, 1  ;;  %v6237_v13 = vrot.slane %v6235_v27, 1  ;;  %v6240_v33 = vshll.u32 %v13731_v42, 16 }
 0x51e   : > { %v13760_v16 = vsel %vm11852_vm3, 0, %v6017_v0  ;;  %v6021_v23 = vrot.slane %v6019_v11, 7  ;;  %v6022_v52 = vshll.u32 %v5918_v36, 16  ;;  %v6247_v6 = vshll.u32 %v13742_v54, 16 }
 0x51f   : > { %v13764_v32 = vsel %vm572_vm4, %v6226_v40, %v6230_v62  ;;  %v6238_v29 = vor.u32 %v6237_v13, %v6233_v4  ;;  %v6242_v17 = vrot.slane %v6240_v33, 1  ;;  %v6252_v20 = vshll.u32 %v13754_v39, 16 }
 0x520   : > { %v6024_v50 = vor.u32 %v6022_v52, %v6021_v23  ;;  %10533 = vmatmul.mubr.msk.bf16.gmra.mrb[52].mxu0 %vm3184_vm6, %v13764_v32  ;;  %v6245_v0 = vshrl.u32 %v13742_v54, 16  ;;  %v6249_v5 = vrot.slane %v6247_v6, 1  ;;  %v6259_v1 = vshll.u32 %v13760_v16, 16 }
 0x521   : > { %v13770_v18 = vsel %vm572_vm4, %v6238_v29, %v6242_v17  ;;  %v6264_v53 = vshll.u32 %v13750_v30, 16  ;;  %v6254_v11 = vrot.slane %v6252_v20, 1  ;;  %v13784_v40 = vsel %vm11852_vm3, %v6021_v23, 0 }
 0x522   : > { %v13775_v36 = vsel %vm11852_vm3, 0, %v6024_v50  ;;  %10536 = vmatprep.mubr.msk.bf16.mxu0 %vm3184_vm6, %v13770_v18  ;;  %v6250_v27 = vor.u32 %v6249_v5, %v6245_v0  ;;  %v6257_v62 = vshrl.u32 %v13760_v16, 16  ;;  %v6261_v13 = vrot.slane %v6259_v1, 1  ;;  %v11736_v1 = vld [vmem:[%s14300_s4 + $0x28] sm:$0xff]  }
 0x523   : > { %v6271_v4 = vshll.u32 %v13775_v36, 16  ;;  %v6266_v29 = vrot.slane %v6264_v53, 1  ;;  %v6269_v17 = vshrl.u32 %v13775_v36, 16  ;;  %v6276_v50 = vshll.u32 %v13784_v40, 16  ;;  %v11737_v53 = vld [vmem:[%s14300_s4 + $0x30] sm:$0xff]  }
 0x524   : > { %v13788_v33 = vsel %vm572_vm4, %v6250_v27, %v6254_v11  ;;  %v6262_v6 = vor.u32 %v6261_v13, %v6257_v62  ;;  %v6743_v27 = vrot.slane %v13538_v43, 1  ;;  %v6741_v11 = vrot.slane %v13534_v41, 1  ;;  %v11738_v62 = vld [vmem:[%s14300_s4 + $0x38] sm:$0xff]  }
 0x525   : > { %v6273_v52 = vrot.slane %v6271_v4, 1  ;;  %v6278_v0 = vrot.slane %v6276_v50, 1  ;;  %v6744_v4 = vrot.slane %v13530_v28, 1  ;;  %v11739_v28 = vld [vmem:[%s14300_s4 + $0x40] sm:$0xff]   ;;  %v6746_v41 = vrot.slane %v13566_v44, 1 }
 0x526   : > { %v13795_v20 = vsel %vm572_vm4, %v6262_v6, %v6266_v29  ;;  %v6749_v6 = vrot.slane %v13588_v35, 1  ;;  %v6747_v29 = vrot.slane %v13559_v61, 1  ;;  %v6755_v61 = vrot.slane %v13614_v31, 1 }
 0x527   : > { %v6274_v23 = vor.u32 %v6273_v52, %v6269_v17  ;;  %v13857_v52 = vsel %vm1252_vm5, %v6743_v27, %v6744_v4  ;;  %v6750_v17 = vrot.slane %v13572_v49, 1  ;;  %v6756_v49 = vrot.slane %v13600_v22, 1 }
 0x528   : > { %10537 = vmatmul.mubr.msk.bf16.gmra.mrb[56].mxu0 %vm3184_vm6, %v13788_v33  ;;  %v13869_v50 = vsel %vm1252_vm5, %v6746_v41, %v6747_v29  ;;  %v6758_v27 = vrot.slane %v13644_v47, 1  ;;  %v6762_v22 = vrot.slane %v13631_v51, 1  ;;  %v6764_v41 = vrot.slane %v13674_v8, 1 }
 0x529   : > { %10540 = vmatprep.mubr.msk.bf16.mxu0 %vm3184_vm6, %v13795_v20  ;;  %v13800_v5 = vsel %vm572_vm4, %v6274_v23, %v6278_v0  ;;  %v13874_v23 = vsel %vm1252_vm5, %v6749_v6, %v6750_v17  ;;  %v6752_v0 = vrot.slane %v13621_v7, 1  ;;  %v6767_v6 = vrot.slane %v13696_v21, 1 }
 0x52a   : > { %v6768_v51 = vrot.slane %v13667_v15, 1  ;;  %v6774_v15 = vrot.slane %v13731_v42, 1  ;;  %v6780_v42 = vrot.slane %v13750_v30, 1  ;;  %v11740_v30 = vld [vmem:[%s14300_s4 + $0x48] sm:$0xff]  }
 0x52c   : > { %v13916_v17 = vsel %vm1252_vm5, %v6767_v6, %v6768_v51  ;;  %v6783_v6 = vrot.slane %v13784_v40, 1  ;;  %v11741_v40 = vld [vmem:[%s14300_s4 + $0x50] sm:$0xff]  }
 0x530   : > { %10541 = vmatmul.mubr.msk.bf16.gmra.mrb[60].mxu0 %vm3184_vm6, %v13800_v5 }
 0x531   : > { %10548 = vmatprep.mubr.bf16.mxu0 %v14313_v26 }
 0x538   : > { %10549 = vmatmul.mubr.msk.bf16.vlgmr.msra.gmra.mrb[32].mxu0 %vm3184_vm6, %v13542_v2 }
 0x539   : > { %10581 = vmatpush3.bf16.msra.mxu0 %v13584_v55  ;;  %10552 = vmatprep.mubr.msk.bf16.mxu0 %vm3184_vm6, %v13538_v43  ;;  %v6740_v55 = vrot.slane %v13542_v2, 1 }
 0x53a   : > { %10582 = vmatprep.subr.bf16.mxu0 %v11736_v1 }
 0x53b   : > { %v13852_v13 = vsel %vm1252_vm5, %v6740_v55, %v6741_v11  ;;  %v13888_v55 = vsel %vm1252_vm5, %v6755_v61, %v6756_v49  ;;  %v6761_v11 = vrot.slane %v13653_v59, 1  ;;  %v6773_v61 = vrot.slane %v13706_v56, 1 }
 0x53d   : > { %10583 = vmatpush3.bf16.msra.mxu0 %v11736_v1  ;;  %v6753_v1 = vrot.slane %v13604_v38, 1  ;;  %v6759_v38 = vrot.slane %v13638_v57, 1  ;;  %v6765_v57 = vrot.slane %v13684_v45, 1  ;;  %v6771_v45 = vrot.slane %v13717_v19, 1 }
 0x53e   : > { %10616 = vmatprep.subr.bf16.mxu0 %v11737_v53  ;;  %v13930_v49 = vsel %vm1252_vm5, %v6773_v61, %v6774_v15  ;;  %v6777_v19 = vrot.slane %v13754_v39, 1  ;;  %v11742_v61 = vld [vmem:[%s14300_s4 + $0x58] sm:$0xff]  }
 0x53f   : > { %v13897_v4 = vsel %vm1252_vm5, %v6758_v27, %v6759_v38  ;;  %v13911_v29 = vsel %vm1252_vm5, %v6764_v41, %v6765_v57  ;;  %v6776_v27 = vrot.slane %v13742_v54, 1  ;;  %v6782_v41 = vrot.slane %v13775_v36, 1 }
 0x540   : > { %10553 = vmatmul.mubr.msk.bf16.gmra.mrb[36].mxu0 %vm3184_vm6, %v13566_v44  ;;  %v6029_v57 = vshll.u32 %v13737_v63, 16 }
 0x541   : > { %10556 = vmatprep.mubr.msk.bf16.mxu0 %vm3184_vm6, %v13588_v35  ;;  %v13939_v38 = vsel %vm1252_vm5, %v6776_v27, %v6777_v19  ;;  %v13951_v39 = vsel %vm1252_vm5, %v6782_v41, %v6783_v6  ;;  %v11745_v6 = vld [vmem:[%s14300_s4 + $0x70] sm:$0xff]  }
 0x548   : > { %10557 = vmatmul.mubr.msk.bf16.gmra.mrb[40].mxu0 %vm3184_vm6, %v13621_v7 }
 0x549   : > { %10560 = vmatprep.mubr.msk.bf16.mxu0 %vm3184_vm6, %v13614_v31 }
 0x550   : > { %10561 = vmatmul.mubr.msk.bf16.gmra.mrb[44].mxu0 %vm3184_vm6, %v13644_v47 }
 0x551   : > { %10564 = vmatprep.mubr.msk.bf16.mxu0 %vm3184_vm6, %v13653_v59 }
 0x558   : > { %10565 = vmatmul.mubr.msk.bf16.gmra.mrb[48].mxu0 %vm3184_vm6, %v13674_v8 }
 0x559   : > { %10568 = vmatprep.mubr.msk.bf16.mxu0 %vm3184_vm6, %v13696_v21 }
 0x560   : > { %10569 = vmatmul.mubr.msk.bf16.gmra.mrb[52].mxu0 %vm3184_vm6, %v13713_v24 }
 0x561   : > { %10572 = vmatprep.mubr.msk.bf16.mxu0 %vm3184_vm6, %v13706_v56 }
 0x568   : > { %10573 = vmatmul.mubr.msk.bf16.gmra.mrb[56].mxu0 %vm3184_vm6, %v13742_v54 }
 0x569   : > { %10576 = vmatprep.mubr.msk.bf16.mxu0 %vm3184_vm6, %v13760_v16 }
 0x570   : > { %10577 = vmatmul.mubr.msk.bf16.gmra.mrb[60].mxu0 %vm3184_vm6, %v13775_v36 }
 0x571   : > { %10584 = vmatprep.mubr.msk.bf16.mxu0 %vm3184_vm6, %v11813_v3 }
 0x578   : > { %10585 = vmatmul.mubr.msk.bf16.vlgmr.msra.gmra.mrb[32].mxu0 %vm3184_vm6, %v13852_v13 }
 0x579   : > { %10617 = vmatpush3.bf16.msra.mxu0 %v11737_v53  ;;  %10588 = vmatprep.mubr.msk.bf16.mxu0 %vm3184_vm6, %v13857_v52  ;;  %v13883_v53 = vsel %vm1252_vm5, %v6752_v0, %v6753_v1  ;;  %v6770_v0 = vrot.slane %v13713_v24, 1 }
 0x57a   : > { %10618 = vmatprep.subr.bf16.mxu0 %v11738_v62 }
 0x57b   : > { %v13925_v1 = vsel %vm1252_vm5, %v6770_v0, %v6771_v45 }
 0x57d   : > { %10619 = vmatpush3.bf16.msra.mxu0 %v11738_v62  ;;  %v13902_v62 = vsel %vm1252_vm5, %v6761_v11, %v6762_v22  ;;  %v6779_v11 = vrot.slane %v13760_v16, 1 }
 0x57e   : > { %10652 = vmatprep.subr.bf16.mxu0 %v11739_v28 }
 0x57f   : > { %v13944_v22 = vsel %vm1252_vm5, %v6779_v11, %v6780_v42 }
 0x580   : > { %10589 = vmatmul.mubr.msk.bf16.gmra.mrb[36].mxu0 %vm3184_vm6, %v13869_v50 }
 0x581   : > { %10592 = vmatprep.mubr.msk.bf16.mxu0 %vm3184_vm6, %v13874_v23 }
 0x588   : > { %10593 = vmatmul.mubr.msk.bf16.gmra.mrb[40].mxu0 %vm3184_vm6, %v13883_v53 }
 0x589   : > { %10596 = vmatprep.mubr.msk.bf16.mxu0 %vm3184_vm6, %v13888_v55 }
 0x590   : > { %10597 = vmatmul.mubr.msk.bf16.gmra.mrb[44].mxu0 %vm3184_vm6, %v13897_v4 }
 0x591   : > { %10600 = vmatprep.mubr.msk.bf16.mxu0 %vm3184_vm6, %v13902_v62 }
 0x598   : > { %10601 = vmatmul.mubr.msk.bf16.gmra.mrb[48].mxu0 %vm3184_vm6, %v13911_v29 }
 0x599   : > { %10604 = vmatprep.mubr.msk.bf16.mxu0 %vm3184_vm6, %v13916_v17 }
 0x5a0   : > { %10605 = vmatmul.mubr.msk.bf16.gmra.mrb[52].mxu0 %vm3184_vm6, %v13925_v1 }
 0x5a1   : > { %10608 = vmatprep.mubr.msk.bf16.mxu0 %vm3184_vm6, %v13930_v49 }
 0x5a8   : > { %10609 = vmatmul.mubr.msk.bf16.gmra.mrb[56].mxu0 %vm3184_vm6, %v13939_v38 }
 0x5a9   : > { %10612 = vmatprep.mubr.msk.bf16.mxu0 %vm3184_vm6, %v13944_v22 }
 0x5b0   : > { %10613 = vmatmul.mubr.msk.bf16.gmra.mrb[60].mxu0 %vm3184_vm6, %v13951_v39 }
 0x5b1   : > { %10620 = vmatprep.mubr.msk.bf16.mxu0 %vm3184_vm6, %v13542_v2  ;;  %v6026_v2 = vshrl.u32 %v13737_v63, 16  ;;  %v11743_v63 = vld [vmem:[%s14300_s4 + $0x60] sm:$0xff]  }
 0x5b8   : > { %10621 = vmatmul.mubr.msk.bf16.vlgmr.msra.gmra.mrb[32].mxu0 %vm3184_vm6, %v13538_v43 }
 0x5b9   : > { %10653 = vmatpush3.bf16.msra.mxu0 %v11739_v28  ;;  %10624 = vmatprep.mubr.msk.bf16.mxu0 %vm3184_vm6, %v13566_v44  ;;  %v6028_v28 = vrot.slane %v6026_v2, 7  ;;  %v11746_v2 = vld [vmem:[%s14300_s4 + $0x78] sm:$0xff]  }
 0x5ba   : > { %10654 = vmatprep.subr.bf16.mxu0 %v11740_v30 }
 0x5bb   : > { %v6031_v51 = vor.u32 %v6029_v57, %v6028_v28  ;;  %v6095_v45 = vsel %vm11852_vm3, %v6028_v28, 0  ;;  %v11747_v28 = vld [vmem:[%s14300_s4 + $0x80] sm:$0xff]  }
 0x5bc   : > { %v7262_v11 = vshll.u32 %v6095_v45, 16 }
 0x5bd   : > { %10655 = vmatpush3.bf16.msra.mxu0 %v11740_v30  ;;  %v13995_v0 = vsel %vm11852_vm3, 0, %v6031_v51  ;;  %v7482_v30 = vrot.slane %v6095_v45, 1 }
 0x5be   : > { %10688 = vmatprep.subr.bf16.mxu0 %v11741_v40  ;;  %v7255_v27 = vshrl.u32 %v13995_v0, 16  ;;  %v7264_v42 = vrot.slane %v7262_v11, 1 }
 0x5c0   : > { %10625 = vmatmul.mubr.msk.bf16.gmra.mrb[36].mxu0 %vm3184_vm6, %v13588_v35 }
 0x5c1   : > { %10628 = vmatprep.mubr.msk.bf16.mxu0 %vm3184_vm6, %v13621_v7 }
 0x5c8   : > { %10629 = vmatmul.mubr.msk.bf16.gmra.mrb[40].mxu0 %vm3184_vm6, %v13614_v31 }
 0x5c9   : > { %10632 = vmatprep.mubr.msk.bf16.mxu0 %vm3184_vm6, %v13644_v47 }
 0x5d0   : > { %10633 = vmatmul.mubr.msk.bf16.gmra.mrb[44].mxu0 %vm3184_vm6, %v13653_v59 }
 0x5d1   : > { %10636 = vmatprep.mubr.msk.bf16.mxu0 %vm3184_vm6, %v13674_v8 }
 0x5d8   : > { %10637 = vmatmul.mubr.msk.bf16.gmra.mrb[48].mxu0 %vm3184_vm6, %v13696_v21 }
 0x5d9   : > { %10640 = vmatprep.mubr.msk.bf16.mxu0 %vm3184_vm6, %v13713_v24 }
 0x5e0   : > { %10641 = vmatmul.mubr.msk.bf16.gmra.mrb[52].mxu0 %vm3184_vm6, %v13706_v56 }
 0x5e1   : > { %10644 = vmatprep.mubr.msk.bf16.mxu0 %vm3184_vm6, %v13742_v54 }
 0x5e8   : > { %10645 = vmatmul.mubr.msk.bf16.gmra.mrb[56].mxu0 %vm3184_vm6, %v13760_v16 }
 0x5e9   : > { %10648 = vmatprep.mubr.msk.bf16.mxu0 %vm3184_vm6, %v13775_v36 }
 0x5f0   : > { %10649 = vmatmul.mubr.msk.bf16.gmra.mrb[60].mxu0 %vm3184_vm6, %v13995_v0 }
 0x5f1   : > { %10656 = vmatprep.mubr.msk.bf16.mxu0 %vm3184_vm6, %v13562_v25  ;;  %v7257_v25 = vshll.u32 %v13995_v0, 16 }
 0x5f3   : > { %v7259_v15 = vrot.slane %v7257_v25, 1 }
 0x5f5   : > { %v7260_v19 = vor.u32 %v7259_v15, %v7255_v27 }
 0x5f7   : > { %v14040_v41 = vsel %vm572_vm4, %v7260_v19, %v7264_v42 }
 0x5f8   : > { %10657 = vmatmul.mubr.msk.bf16.vlgmr.msra.gmra.mrb[32].mxu0 %vm3184_vm6, %v13578_v10 }
 0x5f9   : > { %10689 = vmatpush3.bf16.msra.mxu0 %v11741_v40  ;;  %10660 = vmatprep.mubr.msk.bf16.mxu0 %vm3184_vm6, %v13609_v34 }
 0x5fa   : > { %10690 = vmatprep.subr.bf16.mxu0 %v11742_v61 }
 0x5fd   : > { %10691 = vmatpush3.bf16.msra.mxu0 %v11742_v61 }
 0x5fe   : > { %10724 = vmatprep.subr.bf16.mxu0 %v11743_v63 }
 0x600   : > { %10661 = vmatmul.mubr.msk.bf16.gmra.mrb[36].mxu0 %vm3184_vm6, %v13627_v37 }
 0x601   : > { %10664 = vmatprep.mubr.msk.bf16.mxu0 %vm3184_vm6, %v13656_v60 }
 0x608   : > { %10665 = vmatmul.mubr.msk.bf16.gmra.mrb[40].mxu0 %vm3184_vm6, %v13662_v48 }
 0x609   : > { %10668 = vmatprep.mubr.msk.bf16.mxu0 %vm3184_vm6, %v13687_v58 }
 0x610   : > { %10669 = vmatmul.mubr.msk.bf16.gmra.mrb[44].mxu0 %vm3184_vm6, %v13699_v9 }
 0x611   : > { %10672 = vmatprep.mubr.msk.bf16.mxu0 %vm3184_vm6, %v13723_v12 }
 0x618   : > { %10673 = vmatmul.mubr.msk.bf16.gmra.mrb[48].mxu0 %vm3184_vm6, %v13735_v46 }
 0x619   : > { %10676 = vmatprep.mubr.msk.bf16.mxu0 %vm3184_vm6, %v13764_v32 }
 0x620   : > { %10677 = vmatmul.mubr.msk.bf16.gmra.mrb[52].mxu0 %vm3184_vm6, %v13770_v18 }
 0x621   : > { %10680 = vmatprep.mubr.msk.bf16.mxu0 %vm3184_vm6, %v13788_v33 }
 0x628   : > { %10681 = vmatmul.mubr.msk.bf16.gmra.mrb[56].mxu0 %vm3184_vm6, %v13795_v20 }
 0x629   : > { %10684 = vmatprep.mubr.msk.bf16.mxu0 %vm3184_vm6, %v13800_v5 }
 0x630   : > { %10685 = vmatmul.mubr.msk.bf16.gmra.mrb[60].mxu0 %vm3184_vm6, %v14040_v41 }
 0x631   : > { %10692 = vmatprep.mubr.msk.bf16.mxu0 %vm3184_vm6, %v13852_v13  ;;  %v7481_v13 = vrot.slane %v13995_v0, 1 }
 0x633   : > { %v7483_v40 = vsel %vm1252_vm5, %v7481_v13, %v7482_v30 }
 0x638   : > { %10693 = vmatmul.mubr.msk.bf16.vlgmr.msra.gmra.mrb[32].mxu0 %vm3184_vm6, %v13857_v52 }
 0x639   : > { %10725 = vmatpush3.bf16.msra.mxu0 %v11743_v63  ;;  %10696 = vmatprep.mubr.msk.bf16.mxu0 %vm3184_vm6, %v13869_v50 }
 0x63a   : > { %10726 = vmatprep.subr.bf16.mxu0 %v11744_v14 }
 0x63d   : > { %10727 = vmatpush3.bf16.msra.mxu0 %v11744_v14 }
 0x63e   : > { %10760 = vmatprep.subr.bf16.mxu0 %v11745_v6 }
 0x640   : > { %10697 = vmatmul.mubr.msk.bf16.gmra.mrb[36].mxu0 %vm3184_vm6, %v13874_v23 }
 0x641   : > { %10700 = vmatprep.mubr.msk.bf16.mxu0 %vm3184_vm6, %v13883_v53 }
 0x648   : > { %10701 = vmatmul.mubr.msk.bf16.gmra.mrb[40].mxu0 %vm3184_vm6, %v13888_v55 }
 0x649   : > { %10704 = vmatprep.mubr.msk.bf16.mxu0 %vm3184_vm6, %v13897_v4 }
 0x650   : > { %10705 = vmatmul.mubr.msk.bf16.gmra.mrb[44].mxu0 %vm3184_vm6, %v13902_v62 }
 0x651   : > { %10708 = vmatprep.mubr.msk.bf16.mxu0 %vm3184_vm6, %v13911_v29 }
 0x658   : > { %10709 = vmatmul.mubr.msk.bf16.gmra.mrb[48].mxu0 %vm3184_vm6, %v13916_v17 }
 0x659   : > { %10712 = vmatprep.mubr.msk.bf16.mxu0 %vm3184_vm6, %v13925_v1 }
 0x660   : > { %10713 = vmatmul.mubr.msk.bf16.gmra.mrb[52].mxu0 %vm3184_vm6, %v13930_v49 }
 0x661   : > { %10716 = vmatprep.mubr.msk.bf16.mxu0 %vm3184_vm6, %v13939_v38 }
 0x668   : > { %10717 = vmatmul.mubr.msk.bf16.gmra.mrb[56].mxu0 %vm3184_vm6, %v13944_v22 }
 0x669   : > { %10720 = vmatprep.mubr.msk.bf16.mxu0 %vm3184_vm6, %v13951_v39 }
 0x670   : > { %10721 = vmatmul.mubr.msk.bf16.gmra.mrb[60].mxu0 %vm3184_vm6, %v7483_v40 }
 0x671   : > { %10728 = vmatprep.mubr.msk.bf16.mxu0 %vm3184_vm6, %v13538_v43  ;;  %v11748_v43 = vld [vmem:[%s14300_s4 + $0x88] sm:$0xff]  }
 0x678   : > { %10729 = vmatmul.mubr.msk.bf16.vlgmr.msra.gmra.mrb[32].mxu0 %vm3184_vm6, %v13566_v44 }
 0x679   : > { %10761 = vmatpush3.bf16.msra.mxu0 %v11745_v6  ;;  %10732 = vmatprep.mubr.msk.bf16.mxu0 %vm3184_vm6, %v13588_v35 }
 0x67a   : > { %10762 = vmatprep.subr.bf16.mxu0 %v11746_v2 }
 0x67d   : > { %10763 = vmatpush3.bf16.msra.mxu0 %v11746_v2 }
 0x67e   : > { %10796 = vmatprep.subr.bf16.mxu0 %v11747_v28 }
 0x680   : > { %10733 = vmatmul.mubr.msk.bf16.gmra.mrb[36].mxu0 %vm3184_vm6, %v13621_v7 }
 0x681   : > { %10736 = vmatprep.mubr.msk.bf16.mxu0 %vm3184_vm6, %v13614_v31 }
 0x688   : > { %10737 = vmatmul.mubr.msk.bf16.gmra.mrb[40].mxu0 %vm3184_vm6, %v13644_v47 }
 0x689   : > { %10740 = vmatprep.mubr.msk.bf16.mxu0 %vm3184_vm6, %v13653_v59 }
 0x690   : > { %10741 = vmatmul.mubr.msk.bf16.gmra.mrb[44].mxu0 %vm3184_vm6, %v13674_v8 }
 0x691   : > { %10744 = vmatprep.mubr.msk.bf16.mxu0 %vm3184_vm6, %v13696_v21 }
 0x698   : > { %10745 = vmatmul.mubr.msk.bf16.gmra.mrb[48].mxu0 %vm3184_vm6, %v13713_v24 }
 0x699   : > { %10748 = vmatprep.mubr.msk.bf16.mxu0 %vm3184_vm6, %v13706_v56 }
 0x6a0   : > { %10749 = vmatmul.mubr.msk.bf16.gmra.mrb[52].mxu0 %vm3184_vm6, %v13742_v54 }
 0x6a1   : > { %10752 = vmatprep.mubr.msk.bf16.mxu0 %vm3184_vm6, %v13760_v16 }
 0x6a8   : > { %10753 = vmatmul.mubr.msk.bf16.gmra.mrb[56].mxu0 %vm3184_vm6, %v13775_v36 }
 0x6a9   : > { %10756 = vmatprep.mubr.msk.bf16.mxu0 %vm3184_vm6, %v13995_v0 }
 0x6b0   : > { %10757 = vmatmul.mubr.bf16.gmra.mrb[60].mxu0 %v14313_v26  ;;  %v14189_v26 = vld [vmem:[%s14301_s5 + $0x2] ss:$0 sm:$0xff] }
 0x6b1   : > { %10764 = vmatprep.mubr.msk.bf16.mxu0 %vm3184_vm6, %v13578_v10 }
 0x6b8   : > { %10765 = vmatmul.mubr.msk.bf16.vlgmr.msra.gmra.mrb[32].mxu0 %vm3184_vm6, %v13609_v34 }
 0x6b9   : > { %10797 = vmatpush3.bf16.msra.mxu0 %v11747_v28  ;;  %10768 = vmatprep.mubr.msk.bf16.mxu0 %vm3184_vm6, %v13627_v37 }
 0x6ba   : > { %10798 = vmatprep.subr.bf16.mxu0 %v11748_v43 }
 0x6bd   : > { %10799 = vmatpush3.bf16.msra.mxu0 %v11748_v43 }
 0x6c0   : > { %10769 = vmatmul.mubr.msk.bf16.gmra.mrb[36].mxu0 %vm3184_vm6, %v13656_v60 }
 0x6c1   : > { %10772 = vmatprep.mubr.msk.bf16.mxu0 %vm3184_vm6, %v13662_v48 }
 0x6c8   : > { %10773 = vmatmul.mubr.msk.bf16.gmra.mrb[40].mxu0 %vm3184_vm6, %v13687_v58 }
 0x6c9   : > { %10776 = vmatprep.mubr.msk.bf16.mxu0 %vm3184_vm6, %v13699_v9 }
 0x6d0   : > { %10777 = vmatmul.mubr.msk.bf16.gmra.mrb[44].mxu0 %vm3184_vm6, %v13723_v12 }
 0x6d1   : > { %10780 = vmatprep.mubr.msk.bf16.mxu0 %vm3184_vm6, %v13735_v46 }
 0x6d8   : > { %10781 = vmatmul.mubr.msk.bf16.gmra.mrb[48].mxu0 %vm3184_vm6, %v13764_v32 }
 0x6d9   : > { %10784 = vmatprep.mubr.msk.bf16.mxu0 %vm3184_vm6, %v13770_v18 }
 0x6e0   : > { %10785 = vmatmul.mubr.msk.bf16.gmra.mrb[52].mxu0 %vm3184_vm6, %v13788_v33 }
 0x6e1   : > { %10788 = vmatprep.mubr.msk.bf16.mxu0 %vm3184_vm6, %v13795_v20 }
 0x6e8   : > { %10789 = vmatmul.mubr.msk.bf16.gmra.mrb[56].mxu0 %vm3184_vm6, %v13800_v5 }
 0x6e9   : > { %10792 = vmatprep.mubr.msk.bf16.mxu0 %vm3184_vm6, %v14040_v41 }
 0x6f0   : > { %10793 = vmatmul.mubr.msk.bf16.gmra.mrb[60].mxu0 %vm3184_vm6, %v11813_v3 }
 0x6f1   : > { %10800 = vmatprep.mubr.msk.bf16.mxu0 %vm3184_vm6, %v13857_v52 }
 0x6f8   : > { %10801 = vmatmul.mubr.msk.bf16.vlgmr.msra.gmra.mrb[32].mxu0 %vm3184_vm6, %v13869_v50 }
 0x6f9   : > { %10804 = vmatprep.mubr.msk.bf16.mxu0 %vm3184_vm6, %v13874_v23 }
 0x700   : > { %10805 = vmatmul.mubr.msk.bf16.gmra.mrb[36].mxu0 %vm3184_vm6, %v13883_v53 }
 0x701   : > { %10808 = vmatprep.mubr.msk.bf16.mxu0 %vm3184_vm6, %v13888_v55 }
 0x708   : > { %10809 = vmatmul.mubr.msk.bf16.gmra.mrb[40].mxu0 %vm3184_vm6, %v13897_v4 }
 0x709   : > { %10812 = vmatprep.mubr.msk.bf16.mxu0 %vm3184_vm6, %v13902_v62 }
 0x710   : > { %10813 = vmatmul.mubr.msk.bf16.gmra.mrb[44].mxu0 %vm3184_vm6, %v13911_v29 }
 0x711   : > { %10816 = vmatprep.mubr.msk.bf16.mxu0 %vm3184_vm6, %v13916_v17 }
 0x718   : > { %10817 = vmatmul.mubr.msk.bf16.gmra.mrb[48].mxu0 %vm3184_vm6, %v13925_v1 }
 0x719   : > { %10820 = vmatprep.mubr.msk.bf16.mxu0 %vm3184_vm6, %v13930_v49 }
 0x720   : > { %10821 = vmatmul.mubr.msk.bf16.gmra.mrb[52].mxu0 %vm3184_vm6, %v13939_v38 }
 0x721   : > { %10824 = vmatprep.mubr.msk.bf16.mxu0 %vm3184_vm6, %v13944_v22 }
 0x728   : > { %10825 = vmatmul.mubr.msk.bf16.gmra.mrb[56].mxu0 %vm3184_vm6, %v13951_v39 }
 0x729   : > { %10828 = vmatprep.mubr.msk.bf16.mxu0 %vm3184_vm6, %v7483_v40 }
 0x730   : > { %10829 = vmatmul.mubr.msk.bf16.gmra.mrb[60].mxu0 %vm3184_vm6, %v11813_v3 }
 0x7cb   : > { %v10802_v44 = vpop.f32.mrb[32].mxu0 }
 0x7cc   : > { %v8334_v10 = vadd.f32 %v10802_v44, %v14189_v26  ;;  %v8168_v35 = vpop.f32.mrb[33].mxu0 }
 0x7cd   : > { %v8332_v3 = vadd.f32 %v14189_v26, %v8168_v35  ;;  %v10803_v34 = vpop.f32.mrb[34].mxu0 }
 0x7ce   : > { %v8366_v31 = vmax.f32 %v8334_v10, 0.0  ;;  %v8335_v7 = vadd.f32 %v10803_v34, %v14189_v26  ;;  %v8171_v37 = vpop.f32.mrb[35].mxu0 }
 0x7cf   : > { %v8364_v47 = vmax.f32 %v8332_v3, 0.0  ;;  %v8333_v59 = vadd.f32 %v14189_v26, %v8171_v37 }
 0x7d0   : > { %8398 = vst.msk [vmem:[%s14196_s18 + $0x10] sm:$0xff] %vm3184_vm6, %v8366_v31  ;;  %v8367_v60 = vmax.f32 %v8335_v7, 0.0 }
 0x7d1   : > { %8396 = vst.msk [vmem:[%s14196_s18] sm:$0xff] %vm3184_vm6, %v8364_v47  ;;  %v8365_v48 = vmax.f32 %v8333_v59, 0.0 }
 0x7d2   : > { %8399 = vst.msk [vmem:[%s14196_s18 + $0x18] sm:$0xff] %vm3184_vm6, %v8367_v60 }
 0x7d3   : > { %8397 = vst.msk [vmem:[%s14196_s18 + $0x8] sm:$0xff] %vm3184_vm6, %v8365_v48  ;;  %v10806_v8 = vpop.f32.mrb[36].mxu0 }
 0x7d4   : > { %v8338_v58 = vadd.f32 %v10806_v8, %v14189_v26  ;;  %v8184_v21 = vpop.f32.mrb[37].mxu0 }
 0x7d5   : > { %v8336_v9 = vadd.f32 %v14189_v26, %v8184_v21  ;;  %v10807_v56 = vpop.f32.mrb[38].mxu0 }
 0x7d6   : > { %v8370_v24 = vmax.f32 %v8338_v58, 0.0  ;;  %v8339_v12 = vadd.f32 %v10807_v56, %v14189_v26  ;;  %v8187_v46 = vpop.f32.mrb[39].mxu0 }
 0x7d7   : > { %v8368_v54 = vmax.f32 %v8336_v9, 0.0  ;;  %v8337_v16 = vadd.f32 %v14189_v26, %v8187_v46 }
 0x7d8   : > { %8402 = vst.msk [vmem:[%s14196_s18 + $0x30] sm:$0xff] %vm3184_vm6, %v8370_v24  ;;  %v8371_v32 = vmax.f32 %v8339_v12, 0.0 }
 0x7d9   : > { %8400 = vst.msk [vmem:[%s14196_s18 + $0x20] sm:$0xff] %vm3184_vm6, %v8368_v54  ;;  %v8369_v18 = vmax.f32 %v8337_v16, 0.0 }
 0x7da   : > { %8403 = vst.msk [vmem:[%s14196_s18 + $0x38] sm:$0xff] %vm3184_vm6, %v8371_v32 }
 0x7db   : > { %8401 = vst.msk [vmem:[%s14196_s18 + $0x28] sm:$0xff] %vm3184_vm6, %v8369_v18  ;;  %v10810_v36 = vpop.f32.mrb[40].mxu0 }
 0x7dc   : > { %v8342_v33 = vadd.f32 %v10810_v36, %v14189_v26  ;;  %v8200_v20 = vpop.f32.mrb[41].mxu0 }
 0x7dd   : > { %v8340_v5 = vadd.f32 %v14189_v26, %v8200_v20  ;;  %v10811_v52 = vpop.f32.mrb[42].mxu0 }
 0x7de   : > { %v8374_v50 = vmax.f32 %v8342_v33, 0.0  ;;  %v8343_v23 = vadd.f32 %v10811_v52, %v14189_v26  ;;  %v8203_v53 = vpop.f32.mrb[43].mxu0 }
 0x7df   : > { %v8372_v55 = vmax.f32 %v8340_v5, 0.0  ;;  %v8341_v4 = vadd.f32 %v14189_v26, %v8203_v53 }
 0x7e0   : > { %8406 = vst.msk [vmem:[%s14196_s18 + $0x50] sm:$0xff] %vm3184_vm6, %v8374_v50  ;;  %v8375_v62 = vmax.f32 %v8343_v23, 0.0 }
 0x7e1   : > { %8404 = vst.msk [vmem:[%s14196_s18 + $0x40] sm:$0xff] %vm3184_vm6, %v8372_v55  ;;  %v8373_v29 = vmax.f32 %v8341_v4, 0.0 }
 0x7e2   : > { %8407 = vst.msk [vmem:[%s14196_s18 + $0x58] sm:$0xff] %vm3184_vm6, %v8375_v62 }
 0x7e3   : > { %8405 = vst.msk [vmem:[%s14196_s18 + $0x48] sm:$0xff] %vm3184_vm6, %v8373_v29  ;;  %v10814_v17 = vpop.f32.mrb[44].mxu0 }
 0x7e4   : > { %v8346_v1 = vadd.f32 %v10814_v17, %v14189_v26  ;;  %v8216_v49 = vpop.f32.mrb[45].mxu0 }
 0x7e5   : > { %v8344_v38 = vadd.f32 %v14189_v26, %v8216_v49  ;;  %v10815_v22 = vpop.f32.mrb[46].mxu0 }
 0x7e6   : > { %v8378_v39 = vmax.f32 %v8346_v1, 0.0  ;;  %v8347_v57 = vadd.f32 %v10815_v22, %v14189_v26  ;;  %v8219_v51 = vpop.f32.mrb[47].mxu0 }
 0x7e7   : > { %v8376_v0 = vmax.f32 %v8344_v38, 0.0  ;;  %v8345_v61 = vadd.f32 %v14189_v26, %v8219_v51 }
 0x7e8   : > { %8410 = vst.msk [vmem:[%s14196_s18 + $0x70] sm:$0xff] %vm3184_vm6, %v8378_v39  ;;  %v8379_v63 = vmax.f32 %v8347_v57, 0.0 }
 0x7e9   : > { %8408 = vst.msk [vmem:[%s14196_s18 + $0x60] sm:$0xff] %vm3184_vm6, %v8376_v0  ;;  %v8377_v25 = vmax.f32 %v8345_v61, 0.0 }
 0x7ea   : > { %8411 = vst.msk [vmem:[%s14196_s18 + $0x78] sm:$0xff] %vm3184_vm6, %v8379_v63 }
 0x7eb   : > { %8409 = vst.msk [vmem:[%s14196_s18 + $0x68] sm:$0xff] %vm3184_vm6, %v8377_v25  ;;  %v10818_v45 = vpop.f32.mrb[48].mxu0 }
 0x7ec   : > { %v8350_v15 = vadd.f32 %v10818_v45, %v14189_v26  ;;  %v8232_v27 = vpop.f32.mrb[49].mxu0 }
 0x7ed   : > { %v8348_v11 = vadd.f32 %v14189_v26, %v8232_v27  ;;  %v10819_v19 = vpop.f32.mrb[50].mxu0 }
 0x7ee   : > { %v8382_v42 = vmax.f32 %v8350_v15, 0.0  ;;  %v8351_v41 = vadd.f32 %v10819_v19, %v14189_v26  ;;  %v8235_v14 = vpop.f32.mrb[51].mxu0 }
 0x7ef   : > { %v8380_v6 = vmax.f32 %v8348_v11, 0.0  ;;  %v8349_v13 = vadd.f32 %v14189_v26, %v8235_v14 }
 0x7f0   : > { %8414 = vst.msk [vmem:[%s14196_s18 + $0x90] sm:$0xff] %vm3184_vm6, %v8382_v42  ;;  %v8383_v30 = vmax.f32 %v8351_v41, 0.0 }
 0x7f1   : > { %8412 = vst.msk [vmem:[%s14196_s18 + $0x80] sm:$0xff] %vm3184_vm6, %v8380_v6  ;;  %v8381_v40 = vmax.f32 %v8349_v13, 0.0 }
 0x7f2   : > { %8415 = vst.msk [vmem:[%s14196_s18 + $0x98] sm:$0xff] %vm3184_vm6, %v8383_v30 }
 0x7f3   : > { %8413 = vst.msk [vmem:[%s14196_s18 + $0x88] sm:$0xff] %vm3184_vm6, %v8381_v40  ;;  %v10822_v2 = vpop.f32.mrb[52].mxu0 }
 0x7f4   : > { %v8354_v28 = vadd.f32 %v10822_v2, %v14189_v26  ;;  %v8248_v43 = vpop.f32.mrb[53].mxu0 }
 0x7f5   : > { %v8352_v44 = vadd.f32 %v14189_v26, %v8248_v43  ;;  %v10823_v10 = vpop.f32.mrb[54].mxu0 }
 0x7f6   : > { %v8386_v35 = vmax.f32 %v8354_v28, 0.0  ;;  %v8355_v3 = vadd.f32 %v10823_v10, %v14189_v26  ;;  %v8251_v34 = vpop.f32.mrb[55].mxu0 }
 0x7f7   : > { %v8384_v31 = vmax.f32 %v8352_v44, 0.0  ;;  %v8353_v7 = vadd.f32 %v14189_v26, %v8251_v34 }
 0x7f8   : > { %8418 = vst.msk [vmem:[%s14196_s18 + $0xb0] sm:$0xff] %vm3184_vm6, %v8386_v35  ;;  %v8387_v37 = vmax.f32 %v8355_v3, 0.0 }
 0x7f9   : > { %8416 = vst.msk [vmem:[%s14196_s18 + $0xa0] sm:$0xff] %vm3184_vm6, %v8384_v31  ;;  %v8385_v47 = vmax.f32 %v8353_v7, 0.0 }
 0x7fa   : > { %8419 = vst.msk [vmem:[%s14196_s18 + $0xb8] sm:$0xff] %vm3184_vm6, %v8387_v37 }
 0x7fb   : > { %8417 = vst.msk [vmem:[%s14196_s18 + $0xa8] sm:$0xff] %vm3184_vm6, %v8385_v47  ;;  %v10826_v59 = vpop.f32.mrb[56].mxu0 }
 0x7fc   : > { %v8358_v60 = vadd.f32 %v10826_v59, %v14189_v26  ;;  %v8264_v48 = vpop.f32.mrb[57].mxu0 }
 0x7fd   : > { %v8356_v8 = vadd.f32 %v14189_v26, %v8264_v48  ;;  %v10827_v58 = vpop.f32.mrb[58].mxu0 }
 0x7fe   : > { %v8390_v21 = vmax.f32 %v8358_v60, 0.0  ;;  %v8359_v9 = vadd.f32 %v10827_v58, %v14189_v26  ;;  %v8267_v56 = vpop.f32.mrb[59].mxu0 }
 0x7ff   : > { %v8388_v24 = vmax.f32 %v8356_v8, 0.0  ;;  %v8357_v12 = vadd.f32 %v14189_v26, %v8267_v56 }
 0x800   : > { %8422 = vst.msk [vmem:[%s14196_s18 + $0xd0] sm:$0xff] %vm3184_vm6, %v8390_v21  ;;  %v8391_v46 = vmax.f32 %v8359_v9, 0.0 }
 0x801   : > { %8420 = vst.msk [vmem:[%s14196_s18 + $0xc0] sm:$0xff] %vm3184_vm6, %v8388_v24  ;;  %v8389_v54 = vmax.f32 %v8357_v12, 0.0 }
 0x802   : > { %8423 = vst.msk [vmem:[%s14196_s18 + $0xd8] sm:$0xff] %vm3184_vm6, %v8391_v46 }
 0x803   : > { %8421 = vst.msk [vmem:[%s14196_s18 + $0xc8] sm:$0xff] %vm3184_vm6, %v8389_v54  ;;  %v10830_v16 = vpop.f32.mrb[60].mxu0 }
 0x804   : > { %v8362_v32 = vadd.f32 %v10830_v16, %v14189_v26  ;;  %v8280_v18 = vpop.f32.mrb[61].mxu0 }
 0x805   : > { %v8360_v36 = vadd.f32 %v14189_v26, %v8280_v18  ;;  %v10831_v33 = vpop.f32.mrb[62].mxu0 }
 0x806   : > { %v8394_v20 = vmax.f32 %v8362_v32, 0.0  ;;  %v8363_v5 = vadd.f32 %v10831_v33, %v14189_v26  ;;  %v8283_v52 = vpop.f32.mrb[63].mxu0 }
 0x807   : > { %v8392_v50 = vmax.f32 %v8360_v36, 0.0  ;;  %v8361_v23 = vadd.f32 %v14189_v26, %v8283_v52 }
 0x808   : > { %8426 = vst.msk [vmem:[%s14196_s18 + $0xf0] sm:$0xff] %vm3184_vm6, %v8394_v20  ;;  %v8395_v53 = vmax.f32 %v8363_v5, 0.0 }
 0x809   : > { %8424 = vst.msk [vmem:[%s14196_s18 + $0xe0] sm:$0xff] %vm3184_vm6, %v8392_v50  ;;  %v8393_v55 = vmax.f32 %v8361_v23, 0.0 }
 0x80a   : > { %8427 = vst.msk [vmem:[%s14196_s18 + $0xf8] sm:$0xff] %vm3184_vm6, %v8395_v53 }
 0x80b   : > { %8425 = vst.msk [vmem:[%s14196_s18 + $0xe8] sm:$0xff] %vm3184_vm6, %v8393_v55 }
 0x80c PF: > { %s16_s21 = sadd.s32 1, %s11759_s21  }
 0x80d   : > { %p13_p4 = scmp.ge.s32.totalorder %s16_s21, 4  }
 0x80f   :  { %15 = sbr.rel (!%p13_p4) target bundleno = 1 (0x1), region = 101 }

</bundles_post_ra>
